<compile_context>
chip_gen: v7x
topology: tpu7x:2x2x1
jax: 0.10.0
libtpu: 0.0.40
codegen_flags: <defaults>
</compile_context>

<pallas_src>
import functools

import jax
import jax.numpy as jnp
from jax import lax
from jax.experimental import pallas as pl
from jax.experimental.pallas import tpu as pltpu

# ---- model dims (from the PyTorch module) -----------------------------------
FEATURES = 3
HEIGHT = 11
WIDTH = 11
H1 = 64       # conv1 out channels
H2 = 128      # conv2 out channels
H3 = 512      # fc3
H4 = 256      # fc4
ACTIONS = 4   # out
KSIZE = 5
PAD = 2

MAX_TK = 2048  # max K tile (keeps VMEM per step small everywhere, incl. v5e)


def _round_up(x, m):
    return ((x + m - 1) // m) * m


def _pick_tk(k):
    """Return (tk, Kp): K tile and padded K.  Prefers an exact divisor of the
    128-rounded K (e.g. 1408 for fc3's K=15488 -> 11 steps); otherwise pads."""
    k128 = _round_up(k, 128)
    if k128 <= MAX_TK:
        return k128, k128
    for cand in range(MAX_TK, 1023, -128):
        if k128 % cand == 0:
            return cand, k128
    return MAX_TK, _round_up(k128, MAX_TK)


# ---- Pallas kernel: K-tiled matmul, accumulate in o_ref, fused bias+ReLU -----
def _linear_kernel(x_ref, w_ref, b_ref, o_ref, *, apply_relu):
    k = pl.program_id(1)

    @pl.when(k == 0)
    def _():
        o_ref[...] = jnp.zeros_like(o_ref)

    o_ref[...] += jnp.dot(x_ref[...], w_ref[...],
                          preferred_element_type=jnp.float32)

    @pl.when(k == pl.num_programs(1) - 1)
    def _():
        r = o_ref[...] + b_ref[...]
        if apply_relu:
            r = jnp.maximum(r, 0.0)
        o_ref[...] = r


def linear_pallas(x, w, b, *, relu, n_valid):
    """y = relu?(x @ w + b).  x: (M, K) f32; w: (Kp, Np) bf16 pre-padded;
    b: (1, Np) f32.  Returns (M, n_valid) f32."""
    M, K = x.shape
    Kp, Np = w.shape
    tk, kp_chk = _pick_tk(K)
    assert Kp == kp_chk, (Kp, kp_chk)

    Mp = _round_up(M, 8)
    if Mp > 128:
        tm = 128
        Mp = _round_up(Mp, tm)   # split M -> "parallel" axis (both TCs on v7x)
    else:
        tm = Mp

    xp = jnp.pad(x, ((0, Mp - M), (0, Kp - K))).astype(jnp.bfloat16)

    out = pl.pallas_call(
        functools.partial(_linear_kernel, apply_relu=relu),
        out_shape=jax.ShapeDtypeStruct((Mp, Np), jnp.float32),
        grid_spec=pltpu.PrefetchScalarGridSpec(
            num_scalar_prefetch=0,
            grid=(Mp // tm, Kp // tk),
            in_specs=[
                pl.BlockSpec((tm, tk), lambda i, k: (i, k)),
                pl.BlockSpec((tk, Np), lambda i, k: (k, 0)),
                pl.BlockSpec((1, Np), lambda i, k: (0, 0)),
            ],
            out_specs=pl.BlockSpec((tm, Np), lambda i, k: (i, 0)),
        ),
        compiler_params=pltpu.CompilerParams(
            dimension_semantics=("parallel", "arbitrary")),
    )(xp, w, b)
    return out[:M, :n_valid]


# ---- Pallas kernel: fused fc3 -> relu -> fc4 -> relu -> out ------------------
def _fc_fused_kernel(x_ref, w3_ref, b3_ref, w4_ref, b4_ref, wo_ref, bo_ref,
                     o_ref, acc_ref):
    k = pl.program_id(0)

    @pl.when(k == 0)
    def _():
        acc_ref[...] = jnp.zeros_like(acc_ref)

    acc_ref[...] += jnp.dot(x_ref[...], w3_ref[...],
                            preferred_element_type=jnp.float32)

    @pl.when(k == pl.num_programs(0) - 1)
    def _():
        h3 = jnp.maximum(acc_ref[...] + b3_ref[...], 0.0)
        h4 = jnp.dot(h3.astype(jnp.bfloat16), w4_ref[...],
                     preferred_element_type=jnp.float32) + b4_ref[...]
        h4 = jnp.maximum(h4, 0.0)
        q = jnp.dot(h4.astype(jnp.bfloat16), wo_ref[...],
                    preferred_element_type=jnp.float32) + bo_ref[...]
        o_ref[...] = q


def fc_head_pallas(x, p):
    """x: (B, H*W*C2) f32 NHWC-flattened conv2 activations -> (B, ACTIONS)."""
    M, K = x.shape
    Kp, N3 = p["fc3_w"].shape
    tk, kp_chk = _pick_tk(K)
    assert Kp == kp_chk
    Mp = _round_up(M, 8)
    No = p["out_w"].shape[1]

    xp = jnp.pad(x, ((0, Mp - M), (0, Kp - K))).astype(jnp.bfloat16)

    out = pl.pallas_call(
        _fc_fused_kernel,
        out_shape=jax.ShapeDtypeStruct((Mp, No), jnp.float32),
        grid_spec=pltpu.PrefetchScalarGridSpec(
            num_scalar_prefetch=0,
            grid=(Kp // tk,),
            in_specs=[
                pl.BlockSpec((Mp, tk), lambda k: (0, k)),   # x
                pl.BlockSpec((tk, N3), lambda k: (k, 0)),   # fc3 w
                pl.BlockSpec((1, N3), lambda k: (0, 0)),    # fc3 b
                pl.BlockSpec((H3, H4), lambda k: (0, 0)),   # fc4 w (resident)
                pl.BlockSpec((1, H4), lambda k: (0, 0)),    # fc4 b
                pl.BlockSpec((H4, No), lambda k: (0, 0)),   # out w (resident)
                pl.BlockSpec((1, No), lambda k: (0, 0)),    # out b
            ],
            out_specs=pl.BlockSpec((Mp, No), lambda k: (0, 0)),
            scratch_shapes=[pltpu.VMEM((Mp, N3), jnp.float32)],
        ),
        compiler_params=pltpu.CompilerParams(
            dimension_semantics=("arbitrary",)),
    )(xp, p["fc3_w"], p["fc3_b"], p["fc4_w"], p["fc4_b"],
      p["out_w"], p["out_b"])
    return out[:M, :ACTIONS]


# ---- conv = im2col (NHWC, no transposes) + Pallas matmul ---------------------
def conv2d_relu_pallas(x, w, b, cout):
    """5x5 stride-1 pad-2 conv + ReLU.  x: (B,H,W,C) NHWC; w: (Kp, Np) bf16
    pre-reordered as rows (di, dj, cin).  Returns (B,H,W,cout)."""
    B, H, W, C = x.shape
    xp = jnp.pad(x, ((0, 0), (PAD, PAD), (PAD, PAD), (0, 0)))
    cols = [xp[:, di:di + H, dj:dj + W, :]
            for di in range(KSIZE) for dj in range(KSIZE)]
    xcol = jnp.concatenate(cols, axis=-1).reshape(B * H * W, KSIZE * KSIZE * C)
    y = linear_pallas(xcol, w, b, relu=True, n_valid=cout)
    return y.reshape(B, H, W, cout)


# ---- parameters --------------------------------------------------------------
def init_torch_params(key):
    """Deterministic params in the PyTorch layout (for the reference check)."""
    def uinit(key, shape, fan_in):
        bound = 1.0 / jnp.sqrt(jnp.float32(fan_in))
        return jax.random.uniform(key, shape, jnp.float32, -bound, bound)

    keys = jax.random.split(key, 10)
    p = {}
    p["conv1_w"] = uinit(keys[0], (H1, FEATURES, KSIZE, KSIZE), FEATURES * 25)
    p["conv1_b"] = uinit(keys[1], (H1,), FEATURES * 25)
    p["conv2_w"] = uinit(keys[2], (H2, H1, KSIZE, KSIZE), H1 * 25)
    p["conv2_b"] = uinit(keys[3], (H2,), H1 * 25)
    fc3_in = H2 * HEIGHT * WIDTH
    p["fc3_w"] = uinit(keys[4], (H3, fc3_in), fc3_in)   # torch Linear: (out, in)
    p["fc3_b"] = uinit(keys[5], (H3,), fc3_in)
    p["fc4_w"] = uinit(keys[6], (H4, H3), H3)
    p["fc4_b"] = uinit(keys[7], (H4,), H3)
    p["out_w"] = uinit(keys[8], (ACTIONS, H4), H4)
    p["out_b"] = uinit(keys[9], (ACTIONS,), H4)
    return p


def prepare_params(tp):
    """One-time: reorder for NHWC, transpose to (K, N), pad, cast to bf16."""
    kp = {}

    def prep_conv(w, b, cin, cout):
        # (Cout, Cin, kh, kw) -> rows ordered (kh, kw, cin), cols = cout
        wm = jnp.transpose(w, (2, 3, 1, 0)).reshape(KSIZE * KSIZE * cin, cout)
        _, Kp = _pick_tk(wm.shape[0])
        Np = _round_up(cout, 128)
        wm = jnp.pad(wm, ((0, Kp - wm.shape[0]), (0, Np - cout)))
        bm = jnp.pad(b, (0, Np - cout)).reshape(1, Np)
        return wm.astype(jnp.bfloat16), bm.astype(jnp.float32)

    kp["conv1_w"], kp["conv1_b"] = prep_conv(tp["conv1_w"], tp["conv1_b"],
                                             FEATURES, H1)
    kp["conv2_w"], kp["conv2_b"] = prep_conv(tp["conv2_w"], tp["conv2_b"],
                                             H1, H2)

    # fc3: torch columns are (c, h, w); reorder to NHWC flatten (h, w, c).
    w3 = tp["fc3_w"].reshape(H3, H2, HEIGHT, WIDTH)
    w3 = jnp.transpose(w3, (0, 2, 3, 1)).reshape(H3, H2 * HEIGHT * WIDTH).T
    _, Kp = _pick_tk(w3.shape[0])
    kp["fc3_w"] = jnp.pad(w3, ((0, Kp - w3.shape[0]), (0, 0))).astype(jnp.bfloat16)
    kp["fc3_b"] = tp["fc3_b"].reshape(1, H3).astype(jnp.float32)

    kp["fc4_w"] = tp["fc4_w"].T.astype(jnp.bfloat16)          # (512, 256)
    kp["fc4_b"] = tp["fc4_b"].reshape(1, H4).astype(jnp.float32)

    No = _round_up(ACTIONS, 128)
    kp["out_w"] = jnp.pad(tp["out_w"].T,
                          ((0, 0), (0, No - ACTIONS))).astype(jnp.bfloat16)
    kp["out_b"] = jnp.pad(tp["out_b"], (0, No - ACTIONS)).reshape(1, No) \
                     .astype(jnp.float32)
    return kp


# ---- full forward pass --------------------------------------------------------
def network_forward(kparams, x):
    # x: (B, 3, 11, 11) NCHW f32 (PyTorch input layout)
    B = x.shape[0]
    x = jnp.transpose(x, (0, 2, 3, 1))                        # tiny, one-time
    x = conv2d_relu_pallas(x, kparams["conv1_w"], kparams["conv1_b"], H1)
    x = conv2d_relu_pallas(x, kparams["conv2_w"], kparams["conv2_b"], H2)
    x = x.reshape(B, HEIGHT * WIDTH * H2)    # (h,w,c) order, matches fc3_w prep
    return fc_head_pallas(x, kparams)        # (B, ACTIONS)


# ---- pure-JAX reference (torch semantics) ------------------------------------
def reference_forward(p, x):
    def conv(x, w, b):
        y = lax.conv_general_dilated(
            x, w, window_strides=(1, 1), padding=((PAD, PAD), (PAD, PAD)),
            dimension_numbers=("NCHW", "OIHW", "NCHW"),
            precision=lax.Precision.HIGHEST)
        return jax.nn.relu(y + b[None, :, None, None])

    x = conv(x, p["conv1_w"], p["conv1_b"])
    x = conv(x, p["conv2_w"], p["conv2_b"])
    x = x.reshape(x.shape[0], -1)
    x = jax.nn.relu(jnp.dot(x, p["fc3_w"].T, precision=lax.Precision.HIGHEST)
                    + p["fc3_b"])
    x = jax.nn.relu(jnp.dot(x, p["fc4_w"].T, precision=lax.Precision.HIGHEST)
                    + p["fc4_b"])
    return jnp.dot(x, p["out_w"].T, precision=lax.Precision.HIGHEST) + p["out_b"]


if __name__ == "__main__":
    key = jax.random.PRNGKey(0)
    pkey, xkey = jax.random.split(key)
    torch_params = init_torch_params(pkey)
    kparams = prepare_params(torch_params)

    B = 2
    x = jax.random.normal(xkey, (B, FEATURES, HEIGHT, WIDTH), jnp.float32)

    out = jax.jit(network_forward)(kparams, x)
    jax.block_until_ready(out)
    assert out.shape == (B, ACTIONS)

    # Sanity check vs a pure-JAX reference using the same bf16-rounded weights
    # (isolates only the activation-rounding difference of the kernel path).
    ref_params = {k: (v.astype(jnp.bfloat16).astype(jnp.float32)
                      if k.endswith("_w") else v)
                  for k, v in torch_params.items()}
    ref = reference_forward(ref_params, x)
    max_diff = float(jnp.max(jnp.abs(out - ref)))
    assert jnp.allclose(out, ref, rtol=5e-2, atol=5e-2), f"max diff {max_diff}"

    print("KERNEL_OK")
</pallas_src>

<mosaic_0001>
module attributes {stable_mosaic.version = 11 : i64} {
  func.func @_linear_kernel(%arg0: i32, %arg1: i32, %arg2: memref<128x128xbf16, #tpu.memory_space<vmem>>, %arg3: memref<128x128xbf16, #tpu.memory_space<vmem>>, %arg4: memref<1x128xf32, #tpu.memory_space<vmem>>, %arg5: memref<128x128xf32, #tpu.memory_space<vmem>>) attributes {dimension_semantics = [#tpu.dimension_semantics<parallel>, #tpu.dimension_semantics<arbitrary>], iteration_bounds = array<i64: 2, 1>, scalar_prefetch = 0 : i64, scratch_operands = 0 : i64, tpu.core_type = #tpu.core_type<tc>, window_params = [{transform_indices = @transform_0, window_bounds = array<i64: 128, 128>}, {transform_indices = @transform_1, window_bounds = array<i64: 128, 128>}, {pipeline_mode = #tpu.pipeline_mode<synchronous>, transform_indices = @transform_2, window_bounds = array<i64: 1, 128>}, {transform_indices = @transform_3, window_bounds = array<i64: 128, 128>}]} {
    %c0_i32 = arith.constant 0 : i32
    %0 = arith.cmpi eq, %arg1, %c0_i32 : i32
    %1 = arith.extui %0 : i1 to i32
    %c0_i32_0 = arith.constant 0 : i32
    %2 = arith.cmpi ne, %1, %c0_i32_0 : i32
    scf.if %2 {
      %cst_10 = arith.constant 0.000000e+00 : f32
      %12 = vector.broadcast %cst_10 : f32 to vector<128x128xf32>
      %c0_11 = arith.constant 0 : index
      %c0_12 = arith.constant 0 : index
      %13 = vector.load %arg5[%c0_11, %c0_12] : memref<128x128xf32, #tpu.memory_space<vmem>>, vector<128x128xf32>
      tpu.vector_store %arg5[%c0_11, %c0_12], %12 {strides = array<i32>} : memref<128x128xf32, #tpu.memory_space<vmem>>, vector<128x128xf32>,
    } else {
    }
    %c0 = arith.constant 0 : index
    %c0_1 = arith.constant 0 : index
    %3 = vector.load %arg5[%c0, %c0_1] : memref<128x128xf32, #tpu.memory_space<vmem>>, vector<128x128xf32>
    %c0_2 = arith.constant 0 : index
    %c0_3 = arith.constant 0 : index
    %4 = vector.load %arg2[%c0_2, %c0_3] : memref<128x128xbf16, #tpu.memory_space<vmem>>, vector<128x128xbf16>
    %c0_4 = arith.constant 0 : index
    %c0_5 = arith.constant 0 : index
    %5 = vector.load %arg3[%c0_4, %c0_5] : memref<128x128xbf16, #tpu.memory_space<vmem>>, vector<128x128xbf16>
    %cst = arith.constant dense<0.000000e+00> : vector<128x128xf32>
    %6 = tpu.matmul %4, %5, %cst {dimension_numbers = #tpu.dot_dimension_numbers<[1], [0], [0], [1], [0, 0, 1, 1], [], []>} : vector<128x128xbf16>, vector<128x128xbf16>, vector<128x128xf32> -> vector<128x128xf32>
    %7 = arith.addf %3, %6 : vector<128x128xf32>
    %c0_6 = arith.constant 0 : index
    %c0_7 = arith.constant 0 : index
    %8 = vector.load %arg5[%c0_6, %c0_7] : memref<128x128xf32, #tpu.memory_space<vmem>>, vector<128x128xf32>
    tpu.vector_store %arg5[%c0_6, %c0_7], %7 {strides = array<i32>} : memref<128x128xf32, #tpu.memory_space<vmem>>, vector<128x128xf32>,
    %c0_i32_8 = arith.constant 0 : i32
    %9 = arith.cmpi eq, %arg1, %c0_i32_8 : i32
    %10 = arith.extui %9 : i1 to i32
    %c0_i32_9 = arith.constant 0 : i32
    %11 = arith.cmpi ne, %10, %c0_i32_9 : i32
    scf.if %11 {
      %c0_10 = arith.constant 0 : index
      %c0_11 = arith.constant 0 : index
      %12 = vector.load %arg5[%c0_10, %c0_11] : memref<128x128xf32, #tpu.memory_space<vmem>>, vector<128x128xf32>
      %c0_12 = arith.constant 0 : index
      %c0_13 = arith.constant 0 : index
      %13 = vector.load %arg4[%c0_12, %c0_13] : memref<1x128xf32, #tpu.memory_space<vmem>>, vector<1x128xf32>
      %14 = vector.broadcast %13 : vector<1x128xf32> to vector<128x128xf32>
      %15 = arith.addf %12, %14 : vector<128x128xf32>
      %cst_14 = arith.constant 0.000000e+00 : f32
      %16 = vector.broadcast %cst_14 : f32 to vector<128x128xf32>
      %17 = arith.maximumf %15, %16 : vector<128x128xf32>
      %c0_15 = arith.constant 0 : index
      %c0_16 = arith.constant 0 : index
      %18 = vector.load %arg5[%c0_15, %c0_16] : memref<128x128xf32, #tpu.memory_space<vmem>>, vector<128x128xf32>
      tpu.vector_store %arg5[%c0_15, %c0_16], %17 {strides = array<i32>} : memref<128x128xf32, #tpu.memory_space<vmem>>, vector<128x128xf32>,
    } else {
    }
    return
  }
  func.func @transform_0(%arg0: i32, %arg1: i32) -> (i32, i32) {
    %c0_i32 = arith.constant 0 : i32
    return %arg0, %arg1 : i32, i32
  }
  func.func @transform_1(%arg0: i32, %arg1: i32) -> (i32, i32) {
    %c0_i32 = arith.constant 0 : i32
    %c0_i32_0 = arith.constant 0 : i32
    return %arg1, %c0_i32 : i32, i32
  }
  func.func @transform_2(%arg0: i32, %arg1: i32) -> (i32, i32) {
    %c0_i32 = arith.constant 0 : i32
    %c0_i32_0 = arith.constant 0 : i32
    %c0_i32_1 = arith.constant 0 : i32
    return %c0_i32, %c0_i32_0 : i32, i32
  }
  func.func @transform_3(%arg0: i32, %arg1: i32) -> (i32, i32) {
    %c0_i32 = arith.constant 0 : i32
    %c0_i32_0 = arith.constant 0 : i32
    return %arg0, %c0_i32 : i32, i32
  }
}

module attributes {stable_mosaic.version = 11 : i64} {
  func.func @_linear_kernel(%arg0: i32, %arg1: i32, %arg2: memref<128x1664xbf16, #tpu.memory_space<vmem>>, %arg3: memref<1664x128xbf16, #tpu.memory_space<vmem>>, %arg4: memref<1x128xf32, #tpu.memory_space<vmem>>, %arg5: memref<128x128xf32, #tpu.memory_space<vmem>>) attributes {dimension_semantics = [#tpu.dimension_semantics<parallel>, #tpu.dimension_semantics<arbitrary>], iteration_bounds = array<i64: 2, 1>, scalar_prefetch = 0 : i64, scratch_operands = 0 : i64, tpu.core_type = #tpu.core_type<tc>, window_params = [{transform_indices = @transform_0, window_bounds = array<i64: 128, 1664>}, {transform_indices = @transform_1, window_bounds = array<i64: 1664, 128>}, {pipeline_mode = #tpu.pipeline_mode<synchronous>, transform_indices = @transform_2, window_bounds = array<i64: 1, 128>}, {transform_indices = @transform_3, window_bounds = array<i64: 128, 128>}]} {
    %c0_i32 = arith.constant 0 : i32
    %0 = arith.cmpi eq, %arg1, %c0_i32 : i32
    %1 = arith.extui %0 : i1 to i32
    %c0_i32_0 = arith.constant 0 : i32
    %2 = arith.cmpi ne, %1, %c0_i32_0 : i32
    scf.if %2 {
      %cst_10 = arith.constant 0.000000e+00 : f32
      %12 = vector.broadcast %cst_10 : f32 to vector<128x128xf32>
      %c0_11 = arith.constant 0 : index
      %c0_12 = arith.constant 0 : index
      %13 = vector.load %arg5[%c0_11, %c0_12] : memref<128x128xf32, #tpu.memory_space<vmem>>, vector<128x128xf32>
      tpu.vector_store %arg5[%c0_11, %c0_12], %12 {strides = array<i32>} : memref<128x128xf32, #tpu.memory_space<vmem>>, vector<128x128xf32>,
    } else {
    }
    %c0 = arith.constant 0 : index
    %c0_1 = arith.constant 0 : index
    %3 = vector.load %arg5[%c0, %c0_1] : memref<128x128xf32, #tpu.memory_space<vmem>>, vector<128x128xf32>
    %c0_2 = arith.constant 0 : index
    %c0_3 = arith.constant 0 : index
    %4 = vector.load %arg2[%c0_2, %c0_3] : memref<128x1664xbf16, #tpu.memory_space<vmem>>, vector<128x1664xbf16>
    %c0_4 = arith.constant 0 : index
    %c0_5 = arith.constant 0 : index
    %5 = vector.load %arg3[%c0_4, %c0_5] : memref<1664x128xbf16, #tpu.memory_space<vmem>>, vector<1664x128xbf16>
    %cst = arith.constant dense<0.000000e+00> : vector<128x128xf32>
    %6 = tpu.matmul %4, %5, %cst {dimension_numbers = #tpu.dot_dimension_numbers<[1], [0], [0], [1], [0, 0, 1, 1], [], []>} : vector<128x1664xbf16>, vector<1664x128xbf16>, vector<128x128xf32> -> vector<128x128xf32>
    %7 = arith.addf %3, %6 : vector<128x128xf32>
    %c0_6 = arith.constant 0 : index
    %c0_7 = arith.constant 0 : index
    %8 = vector.load %arg5[%c0_6, %c0_7] : memref<128x128xf32, #tpu.memory_space<vmem>>, vector<128x128xf32>
    tpu.vector_store %arg5[%c0_6, %c0_7], %7 {strides = array<i32>} : memref<128x128xf32, #tpu.memory_space<vmem>>, vector<128x128xf32>,
    %c0_i32_8 = arith.constant 0 : i32
    %9 = arith.cmpi eq, %arg1, %c0_i32_8 : i32
    %10 = arith.extui %9 : i1 to i32
    %c0_i32_9 = arith.constant 0 : i32
    %11 = arith.cmpi ne, %10, %c0_i32_9 : i32
    scf.if %11 {
      %c0_10 = arith.constant 0 : index
      %c0_11 = arith.constant 0 : index
      %12 = vector.load %arg5[%c0_10, %c0_11] : memref<128x128xf32, #tpu.memory_space<vmem>>, vector<128x128xf32>
      %c0_12 = arith.constant 0 : index
      %c0_13 = arith.constant 0 : index
      %13 = vector.load %arg4[%c0_12, %c0_13] : memref<1x128xf32, #tpu.memory_space<vmem>>, vector<1x128xf32>
      %14 = vector.broadcast %13 : vector<1x128xf32> to vector<128x128xf32>
      %15 = arith.addf %12, %14 : vector<128x128xf32>
      %cst_14 = arith.constant 0.000000e+00 : f32
      %16 = vector.broadcast %cst_14 : f32 to vector<128x128xf32>
      %17 = arith.maximumf %15, %16 : vector<128x128xf32>
      %c0_15 = arith.constant 0 : index
      %c0_16 = arith.constant 0 : index
      %18 = vector.load %arg5[%c0_15, %c0_16] : memref<128x128xf32, #tpu.memory_space<vmem>>, vector<128x128xf32>
      tpu.vector_store %arg5[%c0_15, %c0_16], %17 {strides = array<i32>} : memref<128x128xf32, #tpu.memory_space<vmem>>, vector<128x128xf32>,
    } else {
    }
    return
  }
  func.func @transform_0(%arg0: i32, %arg1: i32) -> (i32, i32) {
    %c0_i32 = arith.constant 0 : i32
    return %arg0, %arg1 : i32, i32
  }
  func.func @transform_1(%arg0: i32, %arg1: i32) -> (i32, i32) {
    %c0_i32 = arith.constant 0 : i32
    %c0_i32_0 = arith.constant 0 : i32
    return %arg1, %c0_i32 : i32, i32
  }
  func.func @transform_2(%arg0: i32, %arg1: i32) -> (i32, i32) {
    %c0_i32 = arith.constant 0 : i32
    %c0_i32_0 = arith.constant 0 : i32
    %c0_i32_1 = arith.constant 0 : i32
    return %c0_i32, %c0_i32_0 : i32, i32
  }
  func.func @transform_3(%arg0: i32, %arg1: i32) -> (i32, i32) {
    %c0_i32 = arith.constant 0 : i32
    %c0_i32_0 = arith.constant 0 : i32
    return %arg0, %c0_i32 : i32, i32
  }
}

module attributes {stable_mosaic.version = 11 : i64} {
  func.func @_fc_fused_kernel(%arg0: i32, %arg1: memref<8x1408xbf16, #tpu.memory_space<vmem>>, %arg2: memref<1408x512xbf16, #tpu.memory_space<vmem>>, %arg3: memref<1x512xf32, #tpu.memory_space<vmem>>, %arg4: memref<512x256xbf16, #tpu.memory_space<vmem>>, %arg5: memref<1x256xf32, #tpu.memory_space<vmem>>, %arg6: memref<256x128xbf16, #tpu.memory_space<vmem>>, %arg7: memref<1x128xf32, #tpu.memory_space<vmem>>, %arg8: memref<8x128xf32, #tpu.memory_space<vmem>>, %arg9: memref<8x512xf32, #tpu.memory_space<vmem>>) attributes {dimension_semantics = [#tpu.dimension_semantics<arbitrary>], iteration_bounds = array<i64: 11>, scalar_prefetch = 0 : i64, scratch_operands = 1 : i64, tpu.core_type = #tpu.core_type<tc>, window_params = [{transform_indices = @transform_0, window_bounds = array<i64: 8, 1408>}, {transform_indices = @transform_1, window_bounds = array<i64: 1408, 512>}, {pipeline_mode = #tpu.pipeline_mode<synchronous>, transform_indices = @transform_2, window_bounds = array<i64: 1, 512>}, {pipeline_mode = #tpu.pipeline_mode<synchronous>, transform_indices = @transform_3, window_bounds = array<i64: 512, 256>}, {pipeline_mode = #tpu.pipeline_mode<synchronous>, transform_indices = @transform_4, window_bounds = array<i64: 1, 256>}, {pipeline_mode = #tpu.pipeline_mode<synchronous>, transform_indices = @transform_5, window_bounds = array<i64: 256, 128>}, {pipeline_mode = #tpu.pipeline_mode<synchronous>, transform_indices = @transform_6, window_bounds = array<i64: 1, 128>}, {pipeline_mode = #tpu.pipeline_mode<synchronous>, transform_indices = @transform_7, window_bounds = array<i64: 8, 128>}]} {
    %c0_i32 = arith.constant 0 : i32
    %0 = arith.cmpi eq, %arg0, %c0_i32 : i32
    %1 = arith.extui %0 : i1 to i32
    %c0_i32_0 = arith.constant 0 : i32
    %2 = arith.cmpi ne, %1, %c0_i32_0 : i32
    scf.if %2 {
      %cst_9 = arith.constant 0.000000e+00 : f32
      %12 = vector.broadcast %cst_9 : f32 to vector<8x512xf32>
      %c0_10 = arith.constant 0 : index
      %c0_11 = arith.constant 0 : index
      %13 = vector.load %arg9[%c0_10, %c0_11] : memref<8x512xf32, #tpu.memory_space<vmem>>, vector<8x512xf32>
      tpu.vector_store %arg9[%c0_10, %c0_11], %12 {strides = array<i32>} : memref<8x512xf32, #tpu.memory_space<vmem>>, vector<8x512xf32>,
    } else {
    }
    %c0 = arith.constant 0 : index
    %c0_1 = arith.constant 0 : index
    %3 = vector.load %arg9[%c0, %c0_1] : memref<8x512xf32, #tpu.memory_space<vmem>>, vector<8x512xf32>
    %c0_2 = arith.constant 0 : index
    %c0_3 = arith.constant 0 : index
    %4 = vector.load %arg1[%c0_2, %c0_3] : memref<8x1408xbf16, #tpu.memory_space<vmem>>, vector<8x1408xbf16>
    %c0_4 = arith.constant 0 : index
    %c0_5 = arith.constant 0 : index
    %5 = vector.load %arg2[%c0_4, %c0_5] : memref<1408x512xbf16, #tpu.memory_space<vmem>>, vector<1408x512xbf16>
    %cst = arith.constant dense<0.000000e+00> : vector<8x512xf32>
    %6 = tpu.matmul %4, %5, %cst {dimension_numbers = #tpu.dot_dimension_numbers<[1], [0], [0], [1], [0, 0, 1, 1], [], []>} : vector<8x1408xbf16>, vector<1408x512xbf16>, vector<8x512xf32> -> vector<8x512xf32>
    %7 = arith.addf %3, %6 : vector<8x512xf32>
    %c0_6 = arith.constant 0 : index
    %c0_7 = arith.constant 0 : index
    %8 = vector.load %arg9[%c0_6, %c0_7] : memref<8x512xf32, #tpu.memory_space<vmem>>, vector<8x512xf32>
    tpu.vector_store %arg9[%c0_6, %c0_7], %7 {strides = array<i32>} : memref<8x512xf32, #tpu.memory_space<vmem>>, vector<8x512xf32>,
    %c10_i32 = arith.constant 10 : i32
    %9 = arith.cmpi eq, %arg0, %c10_i32 : i32
    %10 = arith.extui %9 : i1 to i32
    %c0_i32_8 = arith.constant 0 : i32
    %11 = arith.cmpi ne, %10, %c0_i32_8 : i32
    scf.if %11 {
      %c0_9 = arith.constant 0 : index
      %c0_10 = arith.constant 0 : index
      %12 = vector.load %arg9[%c0_9, %c0_10] : memref<8x512xf32, #tpu.memory_space<vmem>>, vector<8x512xf32>
      %c0_11 = arith.constant 0 : index
      %c0_12 = arith.constant 0 : index
      %13 = vector.load %arg3[%c0_11, %c0_12] : memref<1x512xf32, #tpu.memory_space<vmem>>, vector<1x512xf32>
      %14 = vector.broadcast %13 : vector<1x512xf32> to vector<8x512xf32>
      %15 = arith.addf %12, %14 : vector<8x512xf32>
      %cst_13 = arith.constant 0.000000e+00 : f32
      %16 = vector.broadcast %cst_13 : f32 to vector<8x512xf32>
      %17 = arith.maximumf %15, %16 : vector<8x512xf32>
      %18 = arith.truncf %17 : vector<8x512xf32> to vector<8x512xbf16>
      %c0_14 = arith.constant 0 : index
      %c0_15 = arith.constant 0 : index
      %19 = vector.load %arg4[%c0_14, %c0_15] : memref<512x256xbf16, #tpu.memory_space<vmem>>, vector<512x256xbf16>
      %cst_16 = arith.constant dense<0.000000e+00> : vector<8x256xf32>
      %20 = tpu.matmul %18, %19, %cst_16 {dimension_numbers = #tpu.dot_dimension_numbers<[1], [0], [0], [1], [0, 0, 1, 1], [], []>} : vector<8x512xbf16>, vector<512x256xbf16>, vector<8x256xf32> -> vector<8x256xf32>
      %c0_17 = arith.constant 0 : index
      %c0_18 = arith.constant 0 : index
      %21 = vector.load %arg5[%c0_17, %c0_18] : memref<1x256xf32, #tpu.memory_space<vmem>>, vector<1x256xf32>
      %22 = vector.broadcast %21 : vector<1x256xf32> to vector<8x256xf32>
      %23 = arith.addf %20, %22 : vector<8x256xf32>
      %cst_19 = arith.constant 0.000000e+00 : f32
      %24 = vector.broadcast %cst_19 : f32 to vector<8x256xf32>
      %25 = arith.maximumf %23, %24 : vector<8x256xf32>
      %26 = arith.truncf %25 : vector<8x256xf32> to vector<8x256xbf16>
      %c0_20 = arith.constant 0 : index
      %c0_21 = arith.constant 0 : index
      %27 = vector.load %arg6[%c0_20, %c0_21] : memref<256x128xbf16, #tpu.memory_space<vmem>>, vector<256x128xbf16>
      %cst_22 = arith.constant dense<0.000000e+00> : vector<8x128xf32>
      %28 = tpu.matmul %26, %27, %cst_22 {dimension_numbers = #tpu.dot_dimension_numbers<[1], [0], [0], [1], [0, 0, 1, 1], [], []>} : vector<8x256xbf16>, vector<256x128xbf16>, vector<8x128xf32> -> vector<8x128xf32>
      %c0_23 = arith.constant 0 : index
      %c0_24 = arith.constant 0 : index
      %29 = vector.load %arg7[%c0_23, %c0_24] : memref<1x128xf32, #tpu.memory_space<vmem>>, vector<1x128xf32>
      %30 = vector.broadcast %29 : vector<1x128xf32> to vector<8x128xf32>
      %31 = arith.addf %28, %30 : vector<8x128xf32>
      %c0_25 = arith.constant 0 : index
      %c0_26 = arith.constant 0 : index
      %32 = vector.load %arg8[%c0_25, %c0_26] : memref<8x128xf32, #tpu.memory_space<vmem>>, vector<8x128xf32>
      tpu.vector_store %arg8[%c0_25, %c0_26], %31 {strides = array<i32>} : memref<8x128xf32, #tpu.memory_space<vmem>>, vector<8x128xf32>,
    } else {
    }
    return
  }
  func.func @transform_0(%arg0: i32) -> (i32, i32) {
    %c0_i32 = arith.constant 0 : i32
    %c0_i32_0 = arith.constant 0 : i32
    return %c0_i32, %arg0 : i32, i32
  }
  func.func @transform_1(%arg0: i32) -> (i32, i32) {
    %c0_i32 = arith.constant 0 : i32
    %c0_i32_0 = arith.constant 0 : i32
    return %arg0, %c0_i32 : i32, i32
  }
  func.func @transform_2(%arg0: i32) -> (i32, i32) {
    %c0_i32 = arith.constant 0 : i32
    %c0_i32_0 = arith.constant 0 : i32
    %c0_i32_1 = arith.constant 0 : i32
    return %c0_i32, %c0_i32_0 : i32, i32
  }
  func.func @transform_3(%arg0: i32) -> (i32, i32) {
    %c0_i32 = arith.constant 0 : i32
    %c0_i32_0 = arith.constant 0 : i32
    %c0_i32_1 = arith.constant 0 : i32
    return %c0_i32, %c0_i32_0 : i32, i32
  }
  func.func @transform_4(%arg0: i32) -> (i32, i32) {
    %c0_i32 = arith.constant 0 : i32
    %c0_i32_0 = arith.constant 0 : i32
    %c0_i32_1 = arith.constant 0 : i32
    return %c0_i32, %c0_i32_0 : i32, i32
  }
  func.func @transform_5(%arg0: i32) -> (i32, i32) {
    %c0_i32 = arith.constant 0 : i32
    %c0_i32_0 = arith.constant 0 : i32
    %c0_i32_1 = arith.constant 0 : i32
    return %c0_i32, %c0_i32_0 : i32, i32
  }
  func.func @transform_6(%arg0: i32) -> (i32, i32) {
    %c0_i32 = arith.constant 0 : i32
    %c0_i32_0 = arith.constant 0 : i32
    %c0_i32_1 = arith.constant 0 : i32
    return %c0_i32, %c0_i32_0 : i32, i32
  }
  func.func @transform_7(%arg0: i32) -> (i32, i32) {
    %c0_i32 = arith.constant 0 : i32
    %c0_i32_0 = arith.constant 0 : i32
    %c0_i32_1 = arith.constant 0 : i32
    return %c0_i32, %c0_i32_0 : i32, i32
  }
}

</mosaic_0001>

<bundles_post_ra>
// kernel: network_forward.3
= control target key start
LH: loop header
LB: loop body
LE: loop exit
PB: predicated region body
PF: predicated region fallthrough
CT: control target
= control target key end

     0   :  { %8 = vsyncpa [#allocation3], 0  ;;  %s1111_s0 = inlined_call_operand.vmem [shape: bf16[256,128], index: 0, kind: input, shape index: {}]   ;;  %s1112_s1 = inlined_call_operand.hbm [shape: bf16[128,128], index: 1, kind: input, shape index: {}]   ;;  %s1113_s2 = inlined_call_operand.hbm [shape: f32[1,128], index: 2, kind: input, shape index: {}]   ;;  %s1114_s3 = inlined_call_operand.vmem [shape: f32[256,128], index: 3, kind: output, shape index: {}]  }
   0x1   :  { %9 = vsyncpa [#allocation5], 0  ;;  %s966_s12 = smov 0   ;;  %s968_s13 = smov 0  }
   0x2   :  { %s970_s14 = smov 0  }
   0x3 LB: > { %s694_s15 = sadd.s32 4294967295, %s940_s14   ;;  %s27_s16 = sadd.s32 1, %s936_s13  ;;  %s940_s14 = sphi %s970_s14, %s15_s14   ;;  %s936_s13 = sphi %s968_s13, %s1124_s13   ;;  %s932_s12 = sphi %s966_s12, %s1123_s12  }
   0x4   : > { %p29_p0 = scmp.ge.s32.totalorder %s27_s16, 2  ;;  %p696_p1 = scmp.ge.s32.totalorder %s940_s14, 1 }
   0x5   : > { %p133_p2 = scmp.lt.s32.totalorder %s940_s14, 3  ;;  %p991_p4 = scmp.eq.s32.totalorder %s694_s15, 0 }
   0x6   : > { %s1126_s16 = smov (%p29_p0, %s27_s16), 0  ;;  %s942_s19 = smov [#allocation2]  }
   0x7   : > { %p987_p3 = pnand %p696_p1, %p133_p2  ;;  %s148_s20 = sshll.u32 %s942_s19, 4  ;;  %s149_s20 = int_to_ptr.vmem [resolvable:$true] %s148_s20 }
   0x8   : > { %s1119_s18 = scalar_select %p991_p4, 1, 0 }
   0x9   : > { %s1118_s17 = scalar_select %p987_p3, 1, 0 }
   0xa   : > { %p798_p5 = pneg %p987_p3  ;;  %s943_s22 = smov [#allocation4]  }
   0xb   : > { %s162_s23 = sshll.u32 %s943_s22, 4  ;;  %s854_s26 = scalar_lea.hbm %s1112_s1, 1024  ;;  %s1003_s23 = int_to_ptr.vmem [resolvable:$true] %s162_s23 }
   0xc   : > { %p999_p6 = pnand %p991_p4, %p798_p5  ;;  %p855_p7 = scmp.ne.s32.totalorder %s1112_s1, %s854_s26 }
   0xd   : > { %p861_p11 = scmp.lt.u32.totalorder %s854_s26, %s1112_s1 }
   0xe   : > { %p856_p8 = pneg %p999_p6 }
  0x10   : > { %p857_p9 = pnand %p856_p8, %p855_p7 }
  0x12   : > { %p858_p10 = pneg %p857_p9 }
  0x14   : > { %p863_p12 = pnand %p861_p11, %p858_p10 }
  0x16   : > { %866 = shalt.err (!%p863_p12)
}
  0x17   : > { %s867_s4 = scalar_lea.vmem %s149_s20, 1024  ;;  %p875_p2 = scmp.lt.s32.totalorder %s149_s20, %s149_s20 }
  0x18   : > { %p868_p13 = scmp.ne.s32.totalorder %s149_s20, %s867_s4  ;;  %p876_p5 = scmp.lt.s32.totalorder %s867_s4, %s867_s4 }
  0x1a   : > { %p870_p0 = pnand %p868_p13, %p856_p8  ;;  %p877_p4 = por %p876_p5, %p875_p2 }
  0x1c   : > { %p871_p1 = pneg %p870_p0 }
  0x1e   : > { %p878_p3 = pnand %p877_p4, %p871_p1 }
  0x20   : > { %881 = shalt.err (!%p878_p3)
}
  0x21   : > { %s944_s5 = smov 64   ;;  %s945_s6 = smov 4  }
  0x22   : > { %801 = dma.hbm_to_vmem [thread:$0]  (!%p999_p6), %s1112_s1, 1024, %s149_s20, [#allocation3], %s944_s5, %s944_s5, %s945_s6  }
  0x23   : > { %s882_s11 = scalar_lea.hbm %s1113_s2, 16 }
  0x24   : > { %p883_p7 = scmp.ne.s32.totalorder %s1113_s2, %s882_s11  ;;  %p889_p9 = scmp.lt.u32.totalorder %s882_s11, %s1113_s2 }
  0x26   : > { %p885_p3 = pnand %p883_p7, %p856_p8 }
  0x28   : > { %p886_p4 = pneg %p885_p3 }
  0x2a   : > { %p891_p10 = pnand %p889_p9, %p886_p4 }
  0x2c   : > { %894 = shalt.err (!%p891_p10)
}
  0x2d   : > { %s895_s20 = scalar_lea.vmem %s1003_s23, 16  ;;  %s902_s25 = scalar_lea.vmem %s1003_s23, 32 }
  0x2e   : > { %p896_p11 = scmp.ne.s32.totalorder %s1003_s23, %s895_s20  ;;  %p903_p0 = scmp.lt.s32.totalorder %s1003_s23, %s1003_s23 }
  0x2f   : > { %p904_p1 = scmp.lt.s32.totalorder %s902_s25, %s895_s20 }
  0x30   : > { %p898_p12 = pnand %p896_p11, %p856_p8 }
  0x31   : > { %p905_p2 = por %p904_p1, %p903_p0 }
  0x32   : > { %p899_p13 = pneg %p898_p12 }
  0x34   : > { %p906_p5 = pnand %p905_p2, %p899_p13 }
  0x36   : > { %909 = shalt.err (!%p906_p5)
}
  0x37   : > { %804 = dma.hbm_to_vmem [thread:$0]  (!%p999_p6), %s1113_s2, 16, %s1003_s23, [#allocation5]  }
  0x38   : > { %p1121_p7 = scmp.ne.s32.totalorder %s1118_s17, 0 }
  0x39   : > { %p1122_p8 = scmp.ne.s32.totalorder (!%p1121_p7), %s1119_s18, 0 }
  0x3a   : > { %187 = sbr.rel (%p1121_p7) target bundleno = 329 (0x149), region = 32 }
  0x41   : > { %923 = dma.done.wait (%p1122_p8), [#allocation3], 1024  }
  0x42   : > { %925 = vsyncadd (%p1122_p8), [#allocation3], 4294966272 }
  0x43   : > { %927 = dma.done.wait (%p1122_p8), [#allocation5], 16  }
  0x44   : > { %929 = vsyncadd (%p1122_p8), [#allocation5], 4294967280  ;;  %s703_s21 = sshll.u32 %s932_s12, 4  ;;  %v838_v0 = vld [vmem:[#allocation2] sm:$0xff]   ;;  %v839_v1 = vld [vmem:[#allocation2 + $0x8] sm:$0xff]  }
  0x45   : > { %p219_p3 = scmp.lt.s32.totalorder %s703_s21, 31  ;;  %742 = vmatprep.subr.bf16.mxu0 %v838_v0  ;;  %774 = vmatprep.subr.bf16.mxu1 %v838_v0  ;;  %v840_v2 = vld [vmem:[#allocation2 + $0x10] sm:$0xff]   ;;  %v841_v3 = vld [vmem:[#allocation2 + $0x18] sm:$0xff]   ;;  %v842_v6 = vld [vmem:[#allocation2 + $0x20] sm:$0xff]  }
  0x46   : > { %743 = vmatpush3.bf16.msra.mxu0 %v838_v0  ;;  %782 = vmatpush3.bf16.msra.mxu1 %v838_v0  ;;  %v843_v7 = vld [vmem:[#allocation2 + $0x28] sm:$0xff]   ;;  %v844_v8 = vld [vmem:[#allocation2 + $0x30] sm:$0xff]   ;;  %v845_v9 = vld [vmem:[#allocation2 + $0x38] sm:$0xff]  }
  0x47   : > { %s1128_s21 = smov (!%p219_p3, %s703_s21), 31  ;;  %744 = vmatprep.subr.bf16.mxu0 %v839_v1  ;;  %775 = vmatprep.subr.bf16.mxu1 %v839_v1  ;;  %v723_v17 = vld [vmem:[#allocation4] ss:$0 sm:$0xff] }
  0x48   : > { %s704_s17 = sshll.u32 %s1128_s21, 2  ;;  %s706_s12 = sshll.u32 %s1128_s21, 3 }
  0x49   : > { %s1070_s18 = scalar_lea.vmem %s1111_s0, %s704_s17  ;;  %s1084_s4 = scalar_lea.vmem %s1114_s3, %s706_s12 }
  0x4a   : > { %745 = vmatpush3.bf16.msra.mxu0 %v839_v1  ;;  %783 = vmatpush3.bf16.msra.mxu1 %v839_v1  ;;  %v846_v4 = vld [vmem:[%s1070_s18] sm:$0xff]   ;;  %v848_v10 = vld [vmem:[%s1070_s18 + $0x8] sm:$0xff]   ;;  %v850_v12 = vld [vmem:[%s1070_s18 + $0x10] sm:$0xff]  }
  0x4b   : > { %746 = vmatprep.subr.bf16.mxu0 %v840_v2  ;;  %776 = vmatprep.subr.bf16.mxu1 %v840_v2  ;;  %v847_v5 = vld [vmem:[%s1070_s18 + $0x20] sm:$0xff]   ;;  %v849_v11 = vld [vmem:[%s1070_s18 + $0x28] sm:$0xff]   ;;  %v851_v13 = vld [vmem:[%s1070_s18 + $0x30] sm:$0xff]  }
  0x4c   : > { %758 = vmatprep.mubr.bf16.mxu0 %v846_v4  ;;  %766 = vmatprep.mubr.bf16.mxu1 %v847_v5  ;;  %v852_v14 = vld [vmem:[%s1070_s18 + $0x18] sm:$0xff]  }
  0x4d   : > { %v853_v15 = vld [vmem:[%s1070_s18 + $0x38] sm:$0xff]  }
  0x4e   : > { %747 = vmatpush3.bf16.msra.mxu0 %v840_v2  ;;  %784 = vmatpush3.bf16.msra.mxu1 %v840_v2 }
  0x4f   : > { %748 = vmatprep.subr.bf16.mxu0 %v841_v3  ;;  %777 = vmatprep.subr.bf16.mxu1 %v841_v3 }
  0x52   : > { %749 = vmatpush3.bf16.msra.mxu0 %v841_v3  ;;  %785 = vmatpush3.bf16.msra.mxu1 %v841_v3 }
  0x53   : > { %750 = vmatprep.subr.bf16.mxu0 %v842_v6  ;;  %778 = vmatprep.subr.bf16.mxu1 %v842_v6 }
  0x56   : > { %751 = vmatpush3.bf16.msra.mxu0 %v842_v6  ;;  %786 = vmatpush3.bf16.msra.mxu1 %v842_v6 }
  0x57   : > { %752 = vmatprep.subr.bf16.mxu0 %v843_v7  ;;  %779 = vmatprep.subr.bf16.mxu1 %v843_v7 }
  0x5a   : > { %753 = vmatpush3.bf16.msra.mxu0 %v843_v7  ;;  %787 = vmatpush3.bf16.msra.mxu1 %v843_v7 }
  0x5b   : > { %754 = vmatprep.subr.bf16.mxu0 %v844_v8  ;;  %780 = vmatprep.subr.bf16.mxu1 %v844_v8 }
  0x5e   : > { %755 = vmatpush3.bf16.msra.mxu0 %v844_v8  ;;  %788 = vmatpush3.bf16.msra.mxu1 %v844_v8 }
  0x5f   : > { %756 = vmatprep.subr.bf16.mxu0 %v845_v9  ;;  %781 = vmatprep.subr.bf16.mxu1 %v845_v9 }
  0x62   : > { %757 = vmatpush3.bf16.msra.mxu0 %v845_v9  ;;  %789 = vmatpush3.bf16.msra.mxu1 %v845_v9 }
  0x65   : > { %759 = vmatmul.mubr.bf16.vlgmr.msra.gmra.mrb[0].mxu0 %v848_v10  ;;  %767 = vmatmul.mubr.bf16.vlgmr.msra.gmra.mrb[0].mxu1 %v849_v11 }
  0x66   : > { %762 = vmatprep.mubr.bf16.mxu0 %v850_v12  ;;  %770 = vmatprep.mubr.bf16.mxu1 %v851_v13 }
  0x6d   : > { %763 = vmatmul.mubr.bf16.gmra.mrb[4].mxu0 %v852_v14  ;;  %771 = vmatmul.mubr.bf16.gmra.mrb[4].mxu1 %v853_v15 }
 0x138   : > { %v760_v16 = vpop.f32.mrb[0].mxu0  ;;  %v768_v18 = vpop.f32.mrb[0].mxu1 }
 0x139   : > { %v433_v19 = vpop.f32.mrb[1].mxu0  ;;  %v465_v20 = vpop.f32.mrb[1].mxu1  ;;  %v556_v23 = vadd.f32 %v760_v16, %v723_v17  ;;  %v564_v24 = vadd.f32 %v768_v18, %v723_v17 }
 0x13a   : > { %v761_v21 = vpop.f32.mrb[2].mxu0  ;;  %v769_v22 = vpop.f32.mrb[2].mxu1  ;;  %v554_v27 = vadd.f32 %v723_v17, %v433_v19  ;;  %v562_v28 = vadd.f32 %v723_v17, %v465_v20 }
 0x13b   : > { %v436_v25 = vpop.f32.mrb[3].mxu0  ;;  %v468_v26 = vpop.f32.mrb[3].mxu1  ;;  %v572_v29 = vmax.f32 %v556_v23, 0.0  ;;  %v580_v30 = vmax.f32 %v564_v24, 0.0  ;;  %v557_v31 = vadd.f32 %v761_v21, %v723_v17  ;;  %v565_v32 = vadd.f32 %v769_v22, %v723_v17 }
 0x13c   : > { %v570_v33 = vmax.f32 %v554_v27, 0.0  ;;  %v578_v34 = vmax.f32 %v562_v28, 0.0  ;;  %v555_v35 = vadd.f32 %v723_v17, %v436_v25  ;;  %v563_v36 = vadd.f32 %v723_v17, %v468_v26 }
 0x13d   : > { %588 = vst [vmem:[%s1084_s4 + $0x10] sm:$0xff] %v572_v29  ;;  %596 = vst [vmem:[%s1084_s4 + $0x50] sm:$0xff] %v580_v30  ;;  %v573_v37 = vmax.f32 %v557_v31, 0.0  ;;  %v581_v38 = vmax.f32 %v565_v32, 0.0 }
 0x13e   : > { %586 = vst [vmem:[%s1084_s4] sm:$0xff] %v570_v33  ;;  %594 = vst [vmem:[%s1084_s4 + $0x40] sm:$0xff] %v578_v34  ;;  %v571_v39 = vmax.f32 %v555_v35, 0.0  ;;  %v579_v40 = vmax.f32 %v563_v36, 0.0 }
 0x13f   : > { %589 = vst [vmem:[%s1084_s4 + $0x18] sm:$0xff] %v573_v37  ;;  %597 = vst [vmem:[%s1084_s4 + $0x58] sm:$0xff] %v581_v38 }
 0x140   : > { %v764_v41 = vpop.f32.mrb[4].mxu0  ;;  %v772_v42 = vpop.f32.mrb[4].mxu1  ;;  %587 = vst [vmem:[%s1084_s4 + $0x8] sm:$0xff] %v571_v39  ;;  %595 = vst [vmem:[%s1084_s4 + $0x48] sm:$0xff] %v579_v40 }
 0x141   : > { %v449_v43 = vpop.f32.mrb[5].mxu0  ;;  %v481_v44 = vpop.f32.mrb[5].mxu1  ;;  %v560_v47 = vadd.f32 %v764_v41, %v723_v17  ;;  %v568_v48 = vadd.f32 %v772_v42, %v723_v17 }
 0x142   : > { %v765_v45 = vpop.f32.mrb[6].mxu0  ;;  %v773_v46 = vpop.f32.mrb[6].mxu1  ;;  %v558_v51 = vadd.f32 %v723_v17, %v449_v43  ;;  %v566_v52 = vadd.f32 %v723_v17, %v481_v44 }
 0x143   : > { %v452_v49 = vpop.f32.mrb[7].mxu0  ;;  %v484_v50 = vpop.f32.mrb[7].mxu1  ;;  %v576_v53 = vmax.f32 %v560_v47, 0.0  ;;  %v584_v54 = vmax.f32 %v568_v48, 0.0  ;;  %v561_v55 = vadd.f32 %v765_v45, %v723_v17  ;;  %v569_v56 = vadd.f32 %v773_v46, %v723_v17 }
 0x144   : > { %v574_v57 = vmax.f32 %v558_v51, 0.0  ;;  %v582_v58 = vmax.f32 %v566_v52, 0.0  ;;  %v559_v59 = vadd.f32 %v723_v17, %v452_v49  ;;  %v567_v60 = vadd.f32 %v723_v17, %v484_v50 }
 0x145   : > { %592 = vst [vmem:[%s1084_s4 + $0x30] sm:$0xff] %v576_v53  ;;  %600 = vst [vmem:[%s1084_s4 + $0x70] sm:$0xff] %v584_v54  ;;  %v577_v61 = vmax.f32 %v561_v55, 0.0  ;;  %v585_v62 = vmax.f32 %v569_v56, 0.0 }
 0x146   : > { %590 = vst [vmem:[%s1084_s4 + $0x20] sm:$0xff] %v574_v57  ;;  %598 = vst [vmem:[%s1084_s4 + $0x60] sm:$0xff] %v582_v58  ;;  %v575_v63 = vmax.f32 %v559_v59, 0.0  ;;  %v583_v0 = vmax.f32 %v567_v60, 0.0 }
 0x147   : > { %593 = vst [vmem:[%s1084_s4 + $0x38] sm:$0xff] %v577_v61  ;;  %601 = vst [vmem:[%s1084_s4 + $0x78] sm:$0xff] %v585_v62 }
 0x148   : > { %591 = vst [vmem:[%s1084_s4 + $0x28] sm:$0xff] %v575_v63  ;;  %599 = vst [vmem:[%s1084_s4 + $0x68] sm:$0xff] %v583_v0 }
 0x149 PF: > { %s15_s14 = sadd.s32 1, %s940_s14   ;;  %s1123_s12 = smov %s936_s13 }
 0x14a   : > { %p12_p6 = scmp.ge.s32.totalorder %s15_s14, 4   ;;  %s1124_s13 = smov %s1126_s16 }
 0x14c   :  { %14 = sbr.rel (!%p12_p6) target bundleno = 3 (0x3), region = 80 }
 0x153   :  { %624 = vsyncpa [#allocation3], 1 }
 0x154   :  { %626 = vsyncpa [#allocation3 + $0x1], 1 }
 0x155   :  { %627 = vsyncpa [#allocation5], 1 }

// kernel: network_forward.4
= control target key start
LH: loop header
LB: loop body
LE: loop exit
PB: predicated region body
PF: predicated region fallthrough
CT: control target
= control target key end

     0   :  { %s3602_s12 = smov 0   ;;  %s3604_s13 = smov 0   ;;  %s4228_s0 = inlined_call_operand.vmem [shape: bf16[256,1664], index: 0, kind: input, shape index: {}]   ;;  %s4229_s1 = inlined_call_operand.vmem [shape: bf16[1664,128], index: 1, kind: input, shape index: {}]   ;;  %s4230_s2 = inlined_call_operand.vmem [shape: f32[1,128], index: 2, kind: input, shape index: {}]   ;;  %s4231_s3 = inlined_call_operand.vmem [shape: f32[256,128], index: 3, kind: output, shape index: {}]  }
   0x1   :  { %s3606_s14 = smov 0  }
   0x2 LB: > { %s25_s15 = sadd.s32 1, %s3576_s13  ;;  %p2612_p0 = scmp.ge.s32.totalorder %s3580_s14, 1  ;;  %s3580_s14 = sphi %s3606_s14, %s13_s14   ;;  %s3576_s13 = sphi %s3604_s13, %s4233_s13   ;;  %s3572_s12 = sphi %s3602_s12, %s4232_s12  }
   0x3   : > { %p27_p1 = scmp.ge.s32.totalorder %s25_s15, 2  ;;  %p169_p2 = scmp.lt.s32.totalorder %s3580_s14, 3 }
   0x5   : > { %s4235_s15 = smov (%p27_p1, %s25_s15), 0  ;;  %p170_p3 = pnand %p2612_p0, %p169_p2 }
   0x6   : > { %v3302_v0 = vld [vmem:[%s4229_s1 + $0x40] sm:$0xff] (!%p170_p3)   ;;  %v3306_v4 = vld [vmem:[%s4229_s1 + $0x48] sm:$0xff] (!%p170_p3)   ;;  %v3310_v8 = vld [vmem:[%s4229_s1 + $0x50] sm:$0xff] (!%p170_p3)   ;;  %s2613_s23 = sshll.u32 (!%p170_p3), %s3572_s12, 4 }
   0x7   : > { %173 = sbr.rel (%p170_p3) target bundleno = 463 (0x1cf), region = 32  ;;  %v3303_v1 = vld [vmem:[%s4229_s1 + $0xc0] sm:$0xff] (!%p170_p3)   ;;  %2828 = vmatprep.subr.bf16.mxu0 (!%p170_p3), %v3302_v0  ;;  %v3307_v5 = vld [vmem:[%s4229_s1 + $0xc8] sm:$0xff] (!%p170_p3)   ;;  %v3311_v9 = vld [vmem:[%s4229_s1 + $0xd0] sm:$0xff] (!%p170_p3)   ;;  %p205_p4 = scmp.lt.s32.totalorder (!%p170_p3), %s2613_s23, 31 }
   0x8   : > { %v3304_v2 = vld [vmem:[%s4229_s1] sm:$0xff] (!%p170_p3)   ;;  %2892 = vmatprep.subr.bf16.mxu1 (!%p170_p3), %v3303_v1  ;;  %v3308_v6 = vld [vmem:[%s4229_s1 + $0x8] sm:$0xff] (!%p170_p3)   ;;  %v3312_v10 = vld [vmem:[%s4229_s1 + $0x10] sm:$0xff] (!%p170_p3)  }
   0x9   : > { %v3305_v3 = vld [vmem:[%s4229_s1 + $0x80] sm:$0xff] (!%p170_p3)   ;;  %2829 = vmatpush3.bf16.msra.mxu0 (!%p170_p3), %v3304_v2  ;;  %v3309_v7 = vld [vmem:[%s4229_s1 + $0x88] sm:$0xff] (!%p170_p3)   ;;  %v3313_v11 = vld [vmem:[%s4229_s1 + $0x90] sm:$0xff] (!%p170_p3)  }
   0xa   : > { %2893 = vmatpush3.bf16.msra.mxu1 (!%p170_p3), %v3305_v3  ;;  %2830 = vmatprep.subr.bf16.mxu0 (!%p170_p3), %v3306_v4  ;;  %v3314_v12 = vld [vmem:[%s4229_s1 + $0x58] sm:$0xff] (!%p170_p3)   ;;  %v3318_v16 = vld [vmem:[%s4229_s1 + $0x60] sm:$0xff] (!%p170_p3)   ;;  %v3322_v20 = vld [vmem:[%s4229_s1 + $0x68] sm:$0xff] (!%p170_p3)  }
   0xb   : > { %2894 = vmatprep.subr.bf16.mxu1 (!%p170_p3), %v3307_v5  ;;  %v3315_v13 = vld [vmem:[%s4229_s1 + $0xd8] sm:$0xff] (!%p170_p3)   ;;  %v3319_v17 = vld [vmem:[%s4229_s1 + $0xe0] sm:$0xff] (!%p170_p3)   ;;  %v3323_v21 = vld [vmem:[%s4229_s1 + $0xe8] sm:$0xff] (!%p170_p3)  }
   0xc   : > { %v3316_v14 = vld [vmem:[%s4229_s1 + $0x18] sm:$0xff] (!%p170_p3)   ;;  %v3320_v18 = vld [vmem:[%s4229_s1 + $0x20] sm:$0xff] (!%p170_p3)   ;;  %v3324_v22 = vld [vmem:[%s4229_s1 + $0x28] sm:$0xff] (!%p170_p3)  }
   0xd   : > { %2831 = vmatpush3.bf16.msra.mxu0 (!%p170_p3), %v3308_v6  ;;  %v3317_v15 = vld [vmem:[%s4229_s1 + $0x98] sm:$0xff] (!%p170_p3)   ;;  %v3321_v19 = vld [vmem:[%s4229_s1 + $0xa0] sm:$0xff] (!%p170_p3)   ;;  %v3325_v23 = vld [vmem:[%s4229_s1 + $0xa8] sm:$0xff] (!%p170_p3)  }
   0xe   : > { %2895 = vmatpush3.bf16.msra.mxu1 %v3309_v7  ;;  %2832 = vmatprep.subr.bf16.mxu0 %v3310_v8  ;;  %s4237_s23 = smov (!%p205_p4, %s2613_s23), 31  ;;  %v3326_v24 = vld [vmem:[%s4229_s1 + $0x70] sm:$0xff]   ;;  %v3330_v28 = vld [vmem:[%s4229_s1 + $0x78] sm:$0xff]   ;;  %v3340_v36 = vld [vmem:[%s4229_s1 + $0x140] sm:$0xff]  }
   0xf   : > { %2896 = vmatprep.subr.bf16.mxu1 %v3311_v9  ;;  %v3327_v25 = vld [vmem:[%s4229_s1 + $0xf0] sm:$0xff]   ;;  %s3276_s22 = smul.u32 52, %s4237_s23  ;;  %v3331_v29 = vld [vmem:[%s4229_s1 + $0xf8] sm:$0xff]   ;;  %v3341_v37 = vld [vmem:[%s4229_s1 + $0x1c0] sm:$0xff]   ;;  %s2616_s29 = sshll.u32 %s4237_s23, 3 }
  0x10   : > { %v3328_v26 = vld [vmem:[%s4229_s1 + $0x30] sm:$0xff]   ;;  %v3332_v30 = vld [vmem:[%s4229_s1 + $0x38] sm:$0xff]   ;;  %v3342_v38 = vld [vmem:[%s4229_s1 + $0x100] sm:$0xff]   ;;  %s4180_s12 = scalar_lea.vmem %s4231_s3, %s2616_s29 }
  0x11   : > { %2833 = vmatpush3.bf16.msra.mxu0 %v3312_v10  ;;  %v3329_v27 = vld [vmem:[%s4229_s1 + $0xb0] sm:$0xff]   ;;  %s3719_s6 = scalar_lea.vmem %s4228_s0, %s3276_s22  ;;  %v3333_v31 = vld [vmem:[%s4229_s1 + $0xb8] sm:$0xff]   ;;  %v3343_v39 = vld [vmem:[%s4229_s1 + $0x180] sm:$0xff]  }
  0x12   : > { %2897 = vmatpush3.bf16.msra.mxu1 %v3313_v11  ;;  %2834 = vmatprep.subr.bf16.mxu0 %v3314_v12  ;;  %v3334_v32 = vld [vmem:[%s3719_s6] ss:$52 sps:$4 sm:$0xff]   ;;  %v3336_v33 = vld [vmem:[%s3719_s6 + $0x4] ss:$52 sps:$4 sm:$0xff]   ;;  %v3337_v34 = vld [vmem:[%s3719_s6 + $0x8] ss:$52 sps:$4 sm:$0xff]  }
  0x13   : > { %2898 = vmatprep.subr.bf16.mxu1 %v3315_v13  ;;  %v3339_v35 = vld [vmem:[%s3719_s6 + $0xc] ss:$52 sps:$4 sm:$0xff]   ;;  %1768 = vmatprep.mubr.bf16.mxu0 %v3336_v33  ;;  %v3346_v41 = vld [vmem:[%s3719_s6 + $0x74] ss:$52 sps:$4 sm:$0xff]   ;;  %v3349_v43 = vld [vmem:[%s3719_s6 + $0x70] ss:$52 sps:$4 sm:$0xff]  }
  0x14   : > { %1865 = vmatprep.mubr.bf16.mxu1 %v3339_v35  ;;  %v3344_v40 = vld [vmem:[%s3719_s6 + $0x6c] ss:$52 sps:$4 sm:$0xff]   ;;  %v3348_v42 = vld [vmem:[%s3719_s6 + $0x68] ss:$52 sps:$4 sm:$0xff]   ;;  %v3358_v50 = vld [vmem:[%s3719_s6 + $0xd0] ss:$52 sps:$4 sm:$0xff]  }
  0x15   : > { %2835 = vmatpush3.bf16.msra.mxu0 %v3316_v14  ;;  %v3350_v44 = vld [vmem:[%s4229_s1 + $0x148] sm:$0xff]   ;;  %v3356_v49 = vld [vmem:[%s3719_s6 + $0xdc] ss:$52 sps:$4 sm:$0xff]   ;;  %v3366_v57 = vld [vmem:[%s3719_s6 + $0x144] ss:$52 sps:$4 sm:$0xff]  }
  0x16   : > { %2899 = vmatpush3.bf16.msra.mxu1 %v3317_v15  ;;  %2836 = vmatprep.subr.bf16.mxu0 %v3318_v16  ;;  %v3351_v45 = vld [vmem:[%s4229_s1 + $0x1c8] sm:$0xff]   ;;  %v3360_v52 = vld [vmem:[%s4229_s1 + $0x150] sm:$0xff]   ;;  %v3370_v60 = vld [vmem:[%s4229_s1 + $0x158] sm:$0xff]  }
  0x17   : > { %2900 = vmatprep.subr.bf16.mxu1 %v3319_v17  ;;  %v3352_v46 = vld [vmem:[%s4229_s1 + $0x108] sm:$0xff]   ;;  %v3361_v53 = vld [vmem:[%s4229_s1 + $0x1d0] sm:$0xff]   ;;  %v3371_v61 = vld [vmem:[%s4229_s1 + $0x1d8] sm:$0xff]  }
  0x18   : > { %v3353_v47 = vld [vmem:[%s4229_s1 + $0x188] sm:$0xff]   ;;  %v3362_v54 = vld [vmem:[%s4229_s1 + $0x110] sm:$0xff]   ;;  %v3372_v62 = vld [vmem:[%s4229_s1 + $0x118] sm:$0xff]  }
  0x19   : > { %2837 = vmatpush3.bf16.msra.mxu0 %v3320_v18  ;;  %v3354_v48 = vld [vmem:[%s3719_s6 + $0xd4] ss:$52 sps:$4 sm:$0xff]   ;;  %v3359_v51 = vld [vmem:[%s3719_s6 + $0xd8] ss:$52 sps:$4 sm:$0xff]   ;;  %v3364_v56 = vld [vmem:[%s3719_s6 + $0x13c] ss:$52 sps:$4 sm:$0xff]  }
  0x1a   : > { %2901 = vmatpush3.bf16.msra.mxu1 %v3321_v19  ;;  %2838 = vmatprep.subr.bf16.mxu0 %v3322_v20  ;;  %v3363_v55 = vld [vmem:[%s4229_s1 + $0x190] sm:$0xff]   ;;  %v3368_v58 = vld [vmem:[%s3719_s6 + $0x138] ss:$52 sps:$4 sm:$0xff]   ;;  %v3380_v3 = vld [vmem:[%s4229_s1 + $0x160] sm:$0xff]  }
  0x1b   : > { %2902 = vmatprep.subr.bf16.mxu1 %v3323_v21  ;;  %v3369_v59 = vld [vmem:[%s3719_s6 + $0x140] ss:$52 sps:$4 sm:$0xff]   ;;  %v3373_v63 = vld [vmem:[%s4229_s1 + $0x198] sm:$0xff]   ;;  %v3390_v10 = vld [vmem:[%s4229_s1 + $0x168] sm:$0xff]  }
  0x1c   : > { %v3374_v0 = vld [vmem:[%s3719_s6 + $0x1a4] ss:$52 sps:$4 sm:$0xff]   ;;  %v3376_v1 = vld [vmem:[%s3719_s6 + $0x1ac] ss:$52 sps:$4 sm:$0xff]   ;;  %v3379_v4 = vld [vmem:[%s3719_s6 + $0x1a8] ss:$52 sps:$4 sm:$0xff]  }
  0x1d   : > { %2839 = vmatpush3.bf16.msra.mxu0 %v3324_v22  ;;  %v3378_v2 = vld [vmem:[%s3719_s6 + $0x1a0] ss:$52 sps:$4 sm:$0xff]   ;;  %v3391_v11 = vld [vmem:[%s4229_s1 + $0x1e8] sm:$0xff]   ;;  %v3389_v15 = vld [vmem:[%s3719_s6 + $0x210] ss:$52 sps:$4 sm:$0xff]  }
  0x1e   : > { %2903 = vmatpush3.bf16.msra.mxu1 %v3325_v23  ;;  %2840 = vmatprep.subr.bf16.mxu0 %v3326_v24  ;;  %v3381_v5 = vld [vmem:[%s4229_s1 + $0x1e0] sm:$0xff]   ;;  %v3386_v9 = vld [vmem:[%s3719_s6 + $0x214] ss:$52 sps:$4 sm:$0xff]   ;;  %v3396_v17 = vld [vmem:[%s3719_s6 + $0x27c] ss:$52 sps:$4 sm:$0xff]  }
  0x1f   : > { %2904 = vmatprep.subr.bf16.mxu1 %v3327_v25  ;;  %v3382_v6 = vld [vmem:[%s4229_s1 + $0x120] sm:$0xff]   ;;  %v3388_v12 = vld [vmem:[%s3719_s6 + $0x208] ss:$52 sps:$4 sm:$0xff]   ;;  %v3400_v18 = vld [vmem:[%s4229_s1 + $0x170] sm:$0xff]  }
  0x20   : > { %v3383_v7 = vld [vmem:[%s4229_s1 + $0x1a0] sm:$0xff]   ;;  %v3392_v13 = vld [vmem:[%s4229_s1 + $0x128] sm:$0xff]   ;;  %v3401_v19 = vld [vmem:[%s4229_s1 + $0x1f0] sm:$0xff]  }
  0x21   : > { %2841 = vmatpush3.bf16.msra.mxu0 %v3328_v26  ;;  %v3384_v8 = vld [vmem:[%s3719_s6 + $0x20c] ss:$52 sps:$4 sm:$0xff]   ;;  %v3394_v16 = vld [vmem:[%s3719_s6 + $0x274] ss:$52 sps:$4 sm:$0xff]   ;;  %v3398_v22 = vld [vmem:[%s3719_s6 + $0x270] ss:$52 sps:$4 sm:$0xff]  }
  0x22   : > { %2905 = vmatpush3.bf16.msra.mxu1 %v3329_v27  ;;  %2842 = vmatprep.subr.bf16.mxu0 %v3330_v28  ;;  %v3393_v14 = vld [vmem:[%s4229_s1 + $0x1a8] sm:$0xff]   ;;  %v3402_v20 = vld [vmem:[%s4229_s1 + $0x130] sm:$0xff]   ;;  %v3406_v25 = vld [vmem:[%s3719_s6 + $0x2e4] ss:$52 sps:$4 sm:$0xff]  }
  0x23   : > { %2906 = vmatprep.subr.bf16.mxu1 %v3331_v29  ;;  %v3403_v21 = vld [vmem:[%s4229_s1 + $0x1b0] sm:$0xff]   ;;  %v3399_v23 = vld [vmem:[%s3719_s6 + $0x278] ss:$52 sps:$4 sm:$0xff]   ;;  %v3420_v33 = vld [vmem:[%s4229_s1 + $0x240] sm:$0xff]  }
  0x24   : > { %v3404_v24 = vld [vmem:[%s3719_s6 + $0x2dc] ss:$52 sps:$4 sm:$0xff]  }
  0x25   : > { %2843 = vmatpush3.bf16.msra.mxu0 %v3332_v30  ;;  %v3410_v26 = vld [vmem:[%s4229_s1 + $0x178] sm:$0xff]  }
  0x26   : > { %2907 = vmatpush3.bf16.msra.mxu1 %v3333_v31  ;;  %2956 = vmatprep.subr.bf16.mxu0 %v3340_v36  ;;  %v3411_v27 = vld [vmem:[%s4229_s1 + $0x1f8] sm:$0xff]   ;;  %v3409_v31 = vld [vmem:[%s3719_s6 + $0x2e0] ss:$52 sps:$4 sm:$0xff]   ;;  %v3414_v36 = vld [vmem:[%s3719_s6 + $0x10] ss:$52 sps:$4 sm:$0xff]  }
  0x27   : > { %3020 = vmatprep.subr.bf16.mxu1 %v3341_v37  ;;  %v3412_v28 = vld [vmem:[%s4229_s1 + $0x138] sm:$0xff]  }
  0x28   : > { %1769 = vmatmul.mubr.bf16.vlgmr.msra.gmra.mrb[0].mxu0 %v3334_v32  ;;  %v3413_v29 = vld [vmem:[%s4229_s1 + $0x1b8] sm:$0xff]   ;;  %v3416_v32 = vld [vmem:[%s3719_s6 + $0x14] ss:$52 sps:$4 sm:$0xff]  }
  0x29   : > { %1866 = vmatmul.mubr.bf16.vlgmr.msra.gmra.mrb[0].mxu1 %v3337_v34  ;;  %2957 = vmatpush3.bf16.msra.mxu0 %v3342_v38  ;;  %v3408_v30 = vld [vmem:[%s3719_s6 + $0x2d8] ss:$52 sps:$4 sm:$0xff]   ;;  %v3421_v34 = vld [vmem:[%s4229_s1 + $0x2c0] sm:$0xff]   ;;  %v3419_v35 = vld [vmem:[%s3719_s6 + $0x1c] ss:$52 sps:$4 sm:$0xff]  }
  0x2a   : > { %3021 = vmatpush3.bf16.msra.mxu1 %v3343_v39  ;;  %1776 = vmatprep.mubr.bf16.mxu0 %v3344_v40  ;;  %v3417_v37 = vld [vmem:[%s3719_s6 + $0x18] ss:$52 sps:$4 sm:$0xff]   ;;  %v3422_v38 = vld [vmem:[%s4229_s1 + $0x200] sm:$0xff]   ;;  %v3424_v40 = vld [vmem:[%s3719_s6 + $0x7c] ss:$52 sps:$4 sm:$0xff]  }
  0x2b   : > { %1873 = vmatprep.mubr.bf16.mxu1 %v3346_v41  ;;  %2958 = vmatprep.subr.bf16.mxu0 %v3350_v44  ;;  %v3423_v39 = vld [vmem:[%s4229_s1 + $0x280] sm:$0xff]   ;;  %v3432_v44 = vld [vmem:[%s4229_s1 + $0x208] sm:$0xff]  }
  0x2c   : > { %3022 = vmatprep.subr.bf16.mxu1 %v3351_v45  ;;  %v3426_v41 = vld [vmem:[%s3719_s6 + $0x84] ss:$52 sps:$4 sm:$0xff]   ;;  %v3433_v45 = vld [vmem:[%s4229_s1 + $0x288] sm:$0xff]  }
  0x2d   : > { %2959 = vmatpush3.bf16.msra.mxu0 %v3352_v46  ;;  %v3428_v46 = vld [vmem:[%s3719_s6 + $0x78] ss:$52 sps:$4 sm:$0xff]  }
  0x2e   : > { %3023 = vmatpush3.bf16.msra.mxu1 %v3353_v47  ;;  %2960 = vmatprep.subr.bf16.mxu0 %v3360_v52  ;;  %v3440_v47 = vld [vmem:[%s4229_s1 + $0x250] sm:$0xff]  }
  0x2f   : > { %3024 = vmatprep.subr.bf16.mxu1 %v3361_v53  ;;  %v3442_v52 = vld [vmem:[%s4229_s1 + $0x210] sm:$0xff]  }
  0x30   : > { %1777 = vmatmul.mubr.bf16.gmra.mrb[4].mxu0 %v3348_v42  ;;  %v3430_v42 = vld [vmem:[%s4229_s1 + $0x248] sm:$0xff]   ;;  %v3443_v53 = vld [vmem:[%s4229_s1 + $0x290] sm:$0xff]  }
  0x31   : > { %1874 = vmatmul.mubr.bf16.gmra.mrb[4].mxu1 %v3349_v43  ;;  %1784 = vmatprep.mubr.bf16.mxu0 %v3354_v48  ;;  %v3431_v43 = vld [vmem:[%s4229_s1 + $0x2c8] sm:$0xff]   ;;  %v3429_v48 = vld [vmem:[%s3719_s6 + $0x80] ss:$52 sps:$4 sm:$0xff]  }
  0x32   : > { %1881 = vmatprep.mubr.bf16.mxu1 %v3356_v49  ;;  %2961 = vmatpush3.bf16.msra.mxu0 %v3362_v54  ;;  %v3441_v49 = vld [vmem:[%s4229_s1 + $0x2d0] sm:$0xff]   ;;  %v3450_v54 = vld [vmem:[%s4229_s1 + $0x258] sm:$0xff]  }
  0x33   : > { %3025 = vmatpush3.bf16.msra.mxu1 %v3363_v55  ;;  %2962 = vmatprep.subr.bf16.mxu0 %v3370_v60  ;;  %v3451_v55 = vld [vmem:[%s4229_s1 + $0x2d8] sm:$0xff]   ;;  %v3444_v60 = vld [vmem:[%s3719_s6 + $0x14c] ss:$52 sps:$4 sm:$0xff]  }
  0x34   : > { %3026 = vmatprep.subr.bf16.mxu1 %v3371_v61  ;;  %v3446_v61 = vld [vmem:[%s3719_s6 + $0x154] ss:$52 sps:$4 sm:$0xff]  }
  0x36   : > { %2963 = vmatpush3.bf16.msra.mxu0 %v3372_v62  ;;  %v3460_v62 = vld [vmem:[%s4229_s1 + $0x260] sm:$0xff]  }
  0x37   : > { %3027 = vmatpush3.bf16.msra.mxu1 %v3373_v63  ;;  %2964 = vmatprep.subr.bf16.mxu0 %v3380_v3  ;;  %v3461_v63 = vld [vmem:[%s4229_s1 + $0x2e0] sm:$0xff]  }
  0x38   : > { %1785 = vmatmul.mubr.bf16.gmra.mrb[8].mxu0 %v3358_v50  ;;  %3028 = vmatprep.subr.bf16.mxu1 %v3381_v5  ;;  %v3434_v50 = vld [vmem:[%s3719_s6 + $0xe4] ss:$52 sps:$4 sm:$0xff]   ;;  %v3456_v5 = vld [vmem:[%s3719_s6 + $0x1bc] ss:$52 sps:$4 sm:$0xff]  }
  0x39   : > { %1882 = vmatmul.mubr.bf16.gmra.mrb[8].mxu1 %v3359_v51  ;;  %1792 = vmatprep.mubr.bf16.mxu0 %v3364_v56  ;;  %v3436_v51 = vld [vmem:[%s3719_s6 + $0xec] ss:$52 sps:$4 sm:$0xff]   ;;  %v3449_v3 = vld [vmem:[%s3719_s6 + $0x150] ss:$52 sps:$4 sm:$0xff]  }
  0x3a   : > { %1889 = vmatprep.mubr.bf16.mxu1 %v3366_v57  ;;  %2965 = vmatpush3.bf16.msra.mxu0 %v3382_v6  ;;  %v3438_v56 = vld [vmem:[%s3719_s6 + $0xe0] ss:$52 sps:$4 sm:$0xff]   ;;  %v3452_v57 = vld [vmem:[%s4229_s1 + $0x218] sm:$0xff]   ;;  %v3470_v6 = vld [vmem:[%s4229_s1 + $0x268] sm:$0xff]  }
  0x3b   : > { %3029 = vmatpush3.bf16.msra.mxu1 %v3383_v7  ;;  %2966 = vmatprep.subr.bf16.mxu0 %v3390_v10  ;;  %v3471_v7 = vld [vmem:[%s4229_s1 + $0x2e8] sm:$0xff]   ;;  %v3458_v10 = vld [vmem:[%s3719_s6 + $0x1b0] ss:$52 sps:$4 sm:$0xff]  }
  0x3c   : > { %3030 = vmatprep.subr.bf16.mxu1 %v3391_v11  ;;  %v3459_v11 = vld [vmem:[%s3719_s6 + $0x1b8] ss:$52 sps:$4 sm:$0xff]  }
  0x3e   : > { %2967 = vmatpush3.bf16.msra.mxu0 %v3392_v13  ;;  %v3466_v13 = vld [vmem:[%s3719_s6 + $0x224] ss:$52 sps:$4 sm:$0xff]  }
  0x3f   : > { %3031 = vmatpush3.bf16.msra.mxu1 %v3393_v14  ;;  %2968 = vmatprep.subr.bf16.mxu0 %v3400_v18  ;;  %v3480_v14 = vld [vmem:[%s4229_s1 + $0x270] sm:$0xff]   ;;  %v3468_v18 = vld [vmem:[%s3719_s6 + $0x218] ss:$52 sps:$4 sm:$0xff]  }
  0x40   : > { %1793 = vmatmul.mubr.bf16.gmra.mrb[12].mxu0 %v3368_v58  ;;  %3032 = vmatprep.subr.bf16.mxu1 %v3401_v19  ;;  %v3453_v58 = vld [vmem:[%s4229_s1 + $0x298] sm:$0xff]   ;;  %v3469_v19 = vld [vmem:[%s3719_s6 + $0x220] ss:$52 sps:$4 sm:$0xff]  }
  0x41   : > { %1890 = vmatmul.mubr.bf16.gmra.mrb[12].mxu1 %v3369_v59  ;;  %1800 = vmatprep.mubr.bf16.mxu0 %v3374_v0  ;;  %v3439_v59 = vld [vmem:[%s3719_s6 + $0xe8] ss:$52 sps:$4 sm:$0xff]   ;;  %v3462_v0 = vld [vmem:[%s4229_s1 + $0x220] sm:$0xff]  }
  0x42   : > { %1897 = vmatprep.mubr.bf16.mxu1 %v3376_v1  ;;  %2969 = vmatpush3.bf16.msra.mxu0 %v3402_v20  ;;  %v3463_v1 = vld [vmem:[%s4229_s1 + $0x2a0] sm:$0xff]  }
  0x43   : > { %3033 = vmatpush3.bf16.msra.mxu1 %v3403_v21  ;;  %2970 = vmatprep.subr.bf16.mxu0 %v3410_v26  ;;  %v3474_v20 = vld [vmem:[%s3719_s6 + $0x284] ss:$52 sps:$4 sm:$0xff]  }
  0x44   : > { %3034 = vmatprep.subr.bf16.mxu1 %v3411_v27  ;;  %v3490_v21 = vld [vmem:[%s4229_s1 + $0x278] sm:$0xff]   ;;  %v3500_v26 = vld [vmem:[%s4229_s1 + $0x300] sm:$0xff]  }
  0x45   : > { %v3478_v27 = vld [vmem:[%s3719_s6 + $0x280] ss:$52 sps:$4 sm:$0xff]  }
  0x46   : > { %2971 = vmatpush3.bf16.msra.mxu0 %v3412_v28  ;;  %v3479_v28 = vld [vmem:[%s3719_s6 + $0x288] ss:$52 sps:$4 sm:$0xff]  }
  0x47   : > { %3035 = vmatpush3.bf16.msra.mxu1 %v3413_v29  ;;  %3084 = vmatprep.subr.bf16.mxu0 %v3420_v33  ;;  %v3484_v29 = vld [vmem:[%s3719_s6 + $0x2ec] ss:$52 sps:$4 sm:$0xff]   ;;  %v3496_v33 = vld [vmem:[%s3719_s6 + $0x24] ss:$52 sps:$4 sm:$0xff]  }
  0x48   : > { %1801 = vmatmul.mubr.bf16.gmra.mrb[16].mxu0 %v3378_v2  ;;  %3148 = vmatprep.subr.bf16.mxu1 %v3421_v34  ;;  %v3448_v2 = vld [vmem:[%s3719_s6 + $0x148] ss:$52 sps:$4 sm:$0xff]   ;;  %v3499_v34 = vld [vmem:[%s3719_s6 + $0x2c] ss:$52 sps:$4 sm:$0xff]  }
  0x49   : > { %1898 = vmatmul.mubr.bf16.gmra.mrb[16].mxu1 %v3379_v4  ;;  %1808 = vmatprep.mubr.bf16.mxu0 %v3384_v8  ;;  %v3454_v4 = vld [vmem:[%s3719_s6 + $0x1b4] ss:$52 sps:$4 sm:$0xff]  }
  0x4a   : > { %1905 = vmatprep.mubr.bf16.mxu1 %v3386_v9  ;;  %v3472_v8 = vld [vmem:[%s4229_s1 + $0x228] sm:$0xff]  }
  0x4b   : > { %v3473_v9 = vld [vmem:[%s4229_s1 + $0x2a8] sm:$0xff]  }
  0x50   : > { %1809 = vmatmul.mubr.bf16.gmra.mrb[20].mxu0 %v3388_v12  ;;  %v3464_v12 = vld [vmem:[%s3719_s6 + $0x21c] ss:$52 sps:$4 sm:$0xff]  }
  0x51   : > { %1906 = vmatmul.mubr.bf16.gmra.mrb[20].mxu1 %v3389_v15  ;;  %1816 = vmatprep.mubr.bf16.mxu0 %v3394_v16  ;;  %v3481_v15 = vld [vmem:[%s4229_s1 + $0x2f0] sm:$0xff]  }
  0x52   : > { %1913 = vmatprep.mubr.bf16.mxu1 %v3396_v17  ;;  %v3482_v16 = vld [vmem:[%s4229_s1 + $0x230] sm:$0xff]  }
  0x53   : > { %v3483_v17 = vld [vmem:[%s4229_s1 + $0x2b0] sm:$0xff]  }
  0x58   : > { %1817 = vmatmul.mubr.bf16.gmra.mrb[24].mxu0 %v3398_v22  ;;  %v3476_v22 = vld [vmem:[%s3719_s6 + $0x28c] ss:$52 sps:$4 sm:$0xff]  }
  0x59   : > { %1914 = vmatmul.mubr.bf16.gmra.mrb[24].mxu1 %v3399_v23  ;;  %1824 = vmatprep.mubr.bf16.mxu0 %v3404_v24  ;;  %v3491_v23 = vld [vmem:[%s4229_s1 + $0x2f8] sm:$0xff]  }
  0x5a   : > { %1921 = vmatprep.mubr.bf16.mxu1 %v3406_v25  ;;  %v3492_v24 = vld [vmem:[%s4229_s1 + $0x238] sm:$0xff]  }
  0x5b   : > { %v3493_v25 = vld [vmem:[%s4229_s1 + $0x2b8] sm:$0xff]  }
  0x60   : > { %1825 = vmatmul.mubr.bf16.gmra.mrb[28].mxu0 %v3408_v30  ;;  %v3486_v30 = vld [vmem:[%s3719_s6 + $0x2f4] ss:$52 sps:$4 sm:$0xff]  }
  0x61   : > { %1922 = vmatmul.mubr.bf16.gmra.mrb[28].mxu1 %v3409_v31  ;;  %1962 = vmatprep.mubr.bf16.mxu0 %v3416_v32  ;;  %v3488_v31 = vld [vmem:[%s3719_s6 + $0x2e8] ss:$52 sps:$4 sm:$0xff]   ;;  %v3489_v32 = vld [vmem:[%s3719_s6 + $0x2f0] ss:$52 sps:$4 sm:$0xff]  }
  0x62   : > { %2059 = vmatprep.mubr.bf16.mxu1 %v3419_v35  ;;  %v3494_v35 = vld [vmem:[%s3719_s6 + $0x20] ss:$52 sps:$4 sm:$0xff]  }
  0x68   : > { %1963 = vmatmul.mubr.bf16.vlgmr.msra.gmra.mrb[32].mxu0 %v3414_v36  ;;  %v3497_v36 = vld [vmem:[%s3719_s6 + $0x28] ss:$52 sps:$4 sm:$0xff]  }
  0x69   : > { %2060 = vmatmul.mubr.bf16.vlgmr.msra.gmra.mrb[32].mxu1 %v3417_v37  ;;  %3085 = vmatpush3.bf16.msra.mxu0 %v3422_v38  ;;  %v3501_v37 = vld [vmem:[%s3719_s6 + $0x8c] ss:$52 sps:$4 sm:$0xff]   ;;  %v3503_v38 = vld [vmem:[%s3719_s6 + $0x94] ss:$52 sps:$4 sm:$0xff]  }
  0x6a   : > { %3149 = vmatpush3.bf16.msra.mxu1 %v3423_v39  ;;  %1970 = vmatprep.mubr.bf16.mxu0 %v3424_v40  ;;  %v3507_v39 = vld [vmem:[%s4229_s1 + $0x308] sm:$0xff]   ;;  %v3514_v40 = vld [vmem:[%s4229_s1 + $0x310] sm:$0xff]  }
  0x6b   : > { %2067 = vmatprep.mubr.bf16.mxu1 %v3426_v41  ;;  %3086 = vmatprep.subr.bf16.mxu0 %v3430_v42  ;;  %v3505_v41 = vld [vmem:[%s3719_s6 + $0x88] ss:$52 sps:$4 sm:$0xff]   ;;  %v3506_v42 = vld [vmem:[%s3719_s6 + $0x90] ss:$52 sps:$4 sm:$0xff]  }
  0x6c   : > { %3150 = vmatprep.subr.bf16.mxu1 %v3431_v43  ;;  %v3508_v43 = vld [vmem:[%s3719_s6 + $0xf4] ss:$52 sps:$4 sm:$0xff]  }
  0x6d   : > { %3087 = vmatpush3.bf16.msra.mxu0 %v3432_v44  ;;  %v3510_v44 = vld [vmem:[%s3719_s6 + $0xfc] ss:$52 sps:$4 sm:$0xff]  }
  0x6e   : > { %3151 = vmatpush3.bf16.msra.mxu1 %v3433_v45  ;;  %3088 = vmatprep.subr.bf16.mxu0 %v3440_v47  ;;  %v3521_v45 = vld [vmem:[%s4229_s1 + $0x318] sm:$0xff]   ;;  %v3512_v47 = vld [vmem:[%s3719_s6 + $0xf0] ss:$52 sps:$4 sm:$0xff]  }
  0x6f   : > { %3152 = vmatprep.subr.bf16.mxu1 %v3441_v49  ;;  %v3515_v49 = vld [vmem:[%s3719_s6 + $0x15c] ss:$52 sps:$4 sm:$0xff]  }
  0x70   : > { %1971 = vmatmul.mubr.bf16.gmra.mrb[36].mxu0 %v3428_v46  ;;  %v3528_v46 = vld [vmem:[%s4229_s1 + $0x320] sm:$0xff]  }
  0x71   : > { %2068 = vmatmul.mubr.bf16.gmra.mrb[36].mxu1 %v3429_v48  ;;  %1978 = vmatprep.mubr.bf16.mxu0 %v3434_v50  ;;  %v3513_v48 = vld [vmem:[%s3719_s6 + $0xf8] ss:$52 sps:$4 sm:$0xff]  }
  0x72   : > { %2075 = vmatprep.mubr.bf16.mxu1 %v3436_v51  ;;  %3089 = vmatpush3.bf16.msra.mxu0 %v3442_v52  ;;  %v3517_v50 = vld [vmem:[%s3719_s6 + $0x164] ss:$52 sps:$4 sm:$0xff]   ;;  %v3535_v51 = vld [vmem:[%s4229_s1 + $0x328] sm:$0xff]   ;;  %v3542_v52 = vld [vmem:[%s4229_s1 + $0x330] sm:$0xff]  }
  0x73   : > { %3153 = vmatpush3.bf16.msra.mxu1 %v3443_v53  ;;  %3090 = vmatprep.subr.bf16.mxu0 %v3450_v54  ;;  %v3519_v53 = vld [vmem:[%s3719_s6 + $0x158] ss:$52 sps:$4 sm:$0xff]   ;;  %v3520_v54 = vld [vmem:[%s3719_s6 + $0x160] ss:$52 sps:$4 sm:$0xff]  }
  0x74   : > { %3154 = vmatprep.subr.bf16.mxu1 %v3451_v55  ;;  %v3522_v55 = vld [vmem:[%s3719_s6 + $0x1c4] ss:$52 sps:$4 sm:$0xff]  }
  0x76   : > { %3091 = vmatpush3.bf16.msra.mxu0 %v3452_v57  ;;  %v3549_v57 = vld [vmem:[%s4229_s1 + $0x338] sm:$0xff]  }
  0x77   : > { %3155 = vmatpush3.bf16.msra.mxu1 %v3453_v58  ;;  %3092 = vmatprep.subr.bf16.mxu0 %v3460_v62  ;;  %v3526_v58 = vld [vmem:[%s3719_s6 + $0x1c0] ss:$52 sps:$4 sm:$0xff]   ;;  %v3533_v62 = vld [vmem:[%s3719_s6 + $0x228] ss:$52 sps:$4 sm:$0xff]  }
  0x78   : > { %1979 = vmatmul.mubr.bf16.gmra.mrb[40].mxu0 %v3438_v56  ;;  %3156 = vmatprep.subr.bf16.mxu1 %v3461_v63  ;;  %v3524_v56 = vld [vmem:[%s3719_s6 + $0x1cc] ss:$52 sps:$4 sm:$0xff]   ;;  %v3534_v63 = vld [vmem:[%s3719_s6 + $0x230] ss:$52 sps:$4 sm:$0xff]  }
  0x79   : > { %2076 = vmatmul.mubr.bf16.gmra.mrb[40].mxu1 %v3439_v59  ;;  %1986 = vmatprep.mubr.bf16.mxu0 %v3444_v60  ;;  %v3527_v59 = vld [vmem:[%s3719_s6 + $0x1c8] ss:$52 sps:$4 sm:$0xff]   ;;  %v3529_v60 = vld [vmem:[%s3719_s6 + $0x22c] ss:$52 sps:$4 sm:$0xff]  }
  0x7a   : > { %2083 = vmatprep.mubr.bf16.mxu1 %v3446_v61  ;;  %3093 = vmatpush3.bf16.msra.mxu0 %v3462_v0  ;;  %v3531_v61 = vld [vmem:[%s3719_s6 + $0x234] ss:$52 sps:$4 sm:$0xff]  }
  0x7b   : > { %3157 = vmatpush3.bf16.msra.mxu1 %v3463_v1  ;;  %3094 = vmatprep.subr.bf16.mxu0 %v3470_v6  ;;  %v3536_v0 = vld [vmem:[%s3719_s6 + $0x294] ss:$52 sps:$4 sm:$0xff]   ;;  %v3538_v1 = vld [vmem:[%s3719_s6 + $0x29c] ss:$52 sps:$4 sm:$0xff]   ;;  %v3547_v6 = vld [vmem:[%s3719_s6 + $0x2f8] ss:$52 sps:$4 sm:$0xff]  }
  0x7c   : > { %3158 = vmatprep.subr.bf16.mxu1 %v3471_v7  ;;  %v3548_v7 = vld [vmem:[%s3719_s6 + $0x300] ss:$52 sps:$4 sm:$0xff]  }
  0x7e   : > { %3095 = vmatpush3.bf16.msra.mxu0 %v3472_v8  ;;  %v3550_v8 = vld [vmem:[%s3719_s6 + $0x30] ss:$52 sps:$4 sm:$0xff]  }
  0x7f   : > { %3159 = vmatpush3.bf16.msra.mxu1 %v3473_v9  ;;  %3096 = vmatprep.subr.bf16.mxu0 %v3480_v14  ;;  %v3551_v9 = vld [vmem:[%s3719_s6 + $0x1d0] ss:$52 sps:$4 sm:$0xff]   ;;  %v3556_v14 = vld [vmem:[%s3719_s6 + $0x168] ss:$52 sps:$4 sm:$0xff]  }
  0x80   : > { %1987 = vmatmul.mubr.bf16.gmra.mrb[44].mxu0 %v3448_v2  ;;  %3160 = vmatprep.subr.bf16.mxu1 %v3481_v15  ;;  %v3540_v2 = vld [vmem:[%s3719_s6 + $0x290] ss:$52 sps:$4 sm:$0xff]   ;;  %v3557_v15 = vld [vmem:[%s3719_s6 + $0x308] ss:$52 sps:$4 sm:$0xff]  }
  0x81   : > { %2084 = vmatmul.mubr.bf16.gmra.mrb[44].mxu1 %v3449_v3  ;;  %1994 = vmatprep.mubr.bf16.mxu0 %v3454_v4  ;;  %v3541_v3 = vld [vmem:[%s3719_s6 + $0x298] ss:$52 sps:$4 sm:$0xff]   ;;  %v3543_v4 = vld [vmem:[%s3719_s6 + $0x2fc] ss:$52 sps:$4 sm:$0xff]  }
  0x82   : > { %2091 = vmatprep.mubr.bf16.mxu1 %v3456_v5  ;;  %3097 = vmatpush3.bf16.msra.mxu0 %v3482_v16  ;;  %v3545_v5 = vld [vmem:[%s3719_s6 + $0x304] ss:$52 sps:$4 sm:$0xff]  }
  0x83   : > { %3161 = vmatpush3.bf16.msra.mxu1 %v3483_v17  ;;  %3098 = vmatprep.subr.bf16.mxu0 %v3490_v21 }
  0x84   : > { %3162 = vmatprep.subr.bf16.mxu1 %v3491_v23 }
  0x86   : > { %3099 = vmatpush3.bf16.msra.mxu0 %v3492_v24 }
  0x87   : > { %3163 = vmatpush3.bf16.msra.mxu1 %v3493_v25  ;;  %3228 = vmatprep.subr.bf16.mxu0 %v3500_v26 }
  0x88   : > { %1995 = vmatmul.mubr.bf16.gmra.mrb[48].mxu0 %v3458_v10  ;;  %3260 = vmatprep.subr.bf16.mxu1 %v3500_v26  ;;  %v3552_v10 = vld [vmem:[%s3719_s6 + $0x98] ss:$52 sps:$4 sm:$0xff]  }
  0x89   : > { %2092 = vmatmul.mubr.bf16.gmra.mrb[48].mxu1 %v3459_v11  ;;  %2002 = vmatprep.mubr.bf16.mxu0 %v3464_v12  ;;  %v3553_v11 = vld [vmem:[%s3719_s6 + $0x238] ss:$52 sps:$4 sm:$0xff]   ;;  %v3554_v12 = vld [vmem:[%s3719_s6 + $0x100] ss:$52 sps:$4 sm:$0xff]  }
  0x8a   : > { %2099 = vmatprep.mubr.bf16.mxu1 %v3466_v13  ;;  %v3555_v13 = vld [vmem:[%s3719_s6 + $0x2a0] ss:$52 sps:$4 sm:$0xff]  }
  0x90   : > { %2003 = vmatmul.mubr.bf16.gmra.mrb[52].mxu0 %v3468_v18 }
  0x91   : > { %2100 = vmatmul.mubr.bf16.gmra.mrb[52].mxu1 %v3469_v19  ;;  %2010 = vmatprep.mubr.bf16.mxu0 %v3474_v20 }
  0x92   : > { %2107 = vmatprep.mubr.bf16.mxu1 %v3476_v22 }
  0x98   : > { %2011 = vmatmul.mubr.bf16.gmra.mrb[56].mxu0 %v3478_v27 }
  0x99   : > { %2108 = vmatmul.mubr.bf16.gmra.mrb[56].mxu1 %v3479_v28  ;;  %2018 = vmatprep.mubr.bf16.mxu0 %v3484_v29 }
  0x9a   : > { %2115 = vmatprep.mubr.bf16.mxu1 %v3486_v30 }
  0xa0   : > { %2019 = vmatmul.mubr.bf16.gmra.mrb[60].mxu0 %v3488_v31 }
  0xa1   : > { %2116 = vmatmul.mubr.bf16.gmra.mrb[60].mxu1 %v3489_v32  ;;  %2156 = vmatprep.mubr.bf16.mxu0 %v3496_v33 }
  0xa2   : > { %2253 = vmatprep.mubr.bf16.mxu1 %v3499_v34 }
  0xa8   : > { %2157 = vmatmul.mubr.bf16.vlgmr.msra.gmra.mrb[64].mxu0 %v3494_v35 }
  0xa9   : > { %2254 = vmatmul.mubr.bf16.vlgmr.msra.gmra.mrb[64].mxu1 %v3497_v36  ;;  %3229 = vmatpush3.bf16.msra.mxu0 %v3500_v26 }
  0xaa   : > { %3268 = vmatpush3.bf16.msra.mxu1 %v3500_v26  ;;  %2164 = vmatprep.mubr.bf16.mxu0 %v3501_v37 }
  0xab   : > { %2261 = vmatprep.mubr.bf16.mxu1 %v3503_v38  ;;  %3230 = vmatprep.subr.bf16.mxu0 %v3507_v39 }
  0xac   : > { %3261 = vmatprep.subr.bf16.mxu1 %v3507_v39 }
  0xad   : > { %3231 = vmatpush3.bf16.msra.mxu0 %v3507_v39 }
  0xae   : > { %3269 = vmatpush3.bf16.msra.mxu1 %v3507_v39  ;;  %3232 = vmatprep.subr.bf16.mxu0 %v3514_v40 }
  0xaf   : > { %3262 = vmatprep.subr.bf16.mxu1 %v3514_v40 }
  0xb0   : > { %2165 = vmatmul.mubr.bf16.gmra.mrb[68].mxu0 %v3505_v41 }
  0xb1   : > { %2262 = vmatmul.mubr.bf16.gmra.mrb[68].mxu1 %v3506_v42  ;;  %2172 = vmatprep.mubr.bf16.mxu0 %v3508_v43 }
  0xb2   : > { %2269 = vmatprep.mubr.bf16.mxu1 %v3510_v44  ;;  %3233 = vmatpush3.bf16.msra.mxu0 %v3514_v40 }
  0xb3   : > { %3270 = vmatpush3.bf16.msra.mxu1 %v3514_v40  ;;  %3234 = vmatprep.subr.bf16.mxu0 %v3521_v45 }
  0xb4   : > { %3263 = vmatprep.subr.bf16.mxu1 %v3521_v45 }
  0xb6   : > { %3235 = vmatpush3.bf16.msra.mxu0 %v3521_v45 }
  0xb7   : > { %3271 = vmatpush3.bf16.msra.mxu1 %v3521_v45  ;;  %3236 = vmatprep.subr.bf16.mxu0 %v3528_v46 }
  0xb8   : > { %2173 = vmatmul.mubr.bf16.gmra.mrb[72].mxu0 %v3512_v47  ;;  %3264 = vmatprep.subr.bf16.mxu1 %v3528_v46 }
  0xb9   : > { %2270 = vmatmul.mubr.bf16.gmra.mrb[72].mxu1 %v3513_v48  ;;  %2180 = vmatprep.mubr.bf16.mxu0 %v3515_v49 }
  0xba   : > { %2277 = vmatprep.mubr.bf16.mxu1 %v3517_v50  ;;  %3237 = vmatpush3.bf16.msra.mxu0 %v3528_v46 }
  0xbb   : > { %3272 = vmatpush3.bf16.msra.mxu1 %v3528_v46  ;;  %3238 = vmatprep.subr.bf16.mxu0 %v3535_v51 }
  0xbc   : > { %3265 = vmatprep.subr.bf16.mxu1 %v3535_v51 }
  0xbe   : > { %3239 = vmatpush3.bf16.msra.mxu0 %v3535_v51 }
  0xbf   : > { %3273 = vmatpush3.bf16.msra.mxu1 %v3535_v51  ;;  %3240 = vmatprep.subr.bf16.mxu0 %v3542_v52 }
  0xc0   : > { %2181 = vmatmul.mubr.bf16.gmra.mrb[76].mxu0 %v3519_v53  ;;  %3266 = vmatprep.subr.bf16.mxu1 %v3542_v52 }
  0xc1   : > { %2278 = vmatmul.mubr.bf16.gmra.mrb[76].mxu1 %v3520_v54  ;;  %2188 = vmatprep.mubr.bf16.mxu0 %v3522_v55 }
  0xc2   : > { %2285 = vmatprep.mubr.bf16.mxu1 %v3524_v56  ;;  %3241 = vmatpush3.bf16.msra.mxu0 %v3542_v52 }
  0xc3   : > { %3274 = vmatpush3.bf16.msra.mxu1 %v3542_v52  ;;  %3242 = vmatprep.subr.bf16.mxu0 %v3549_v57 }
  0xc4   : > { %3267 = vmatprep.subr.bf16.mxu1 %v3549_v57 }
  0xc6   : > { %3243 = vmatpush3.bf16.msra.mxu0 %v3549_v57 }
  0xc7   : > { %3275 = vmatpush3.bf16.msra.mxu1 %v3549_v57 }
  0xc8   : > { %2189 = vmatmul.mubr.bf16.gmra.mrb[80].mxu0 %v3526_v58 }
  0xc9   : > { %2286 = vmatmul.mubr.bf16.gmra.mrb[80].mxu1 %v3527_v59  ;;  %2196 = vmatprep.mubr.bf16.mxu0 %v3529_v60 }
  0xca   : > { %2293 = vmatprep.mubr.bf16.mxu1 %v3531_v61 }
  0xd0   : > { %2197 = vmatmul.mubr.bf16.gmra.mrb[84].mxu0 %v3533_v62 }
  0xd1   : > { %2294 = vmatmul.mubr.bf16.gmra.mrb[84].mxu1 %v3534_v63  ;;  %2204 = vmatprep.mubr.bf16.mxu0 %v3536_v0 }
  0xd2   : > { %2301 = vmatprep.mubr.bf16.mxu1 %v3538_v1 }
  0xd8   : > { %2205 = vmatmul.mubr.bf16.gmra.mrb[88].mxu0 %v3540_v2 }
  0xd9   : > { %2302 = vmatmul.mubr.bf16.gmra.mrb[88].mxu1 %v3541_v3  ;;  %2212 = vmatprep.mubr.bf16.mxu0 %v3543_v4 }
  0xda   : > { %2309 = vmatprep.mubr.bf16.mxu1 %v3545_v5 }
  0xe0   : > { %2213 = vmatmul.mubr.bf16.gmra.mrb[92].mxu0 %v3547_v6 }
  0xe1   : > { %2310 = vmatmul.mubr.bf16.gmra.mrb[92].mxu1 %v3548_v7  ;;  %3244 = vmatprep.mubr.bf16.mxu0 %v3550_v8 }
  0xe2   : > { %3252 = vmatprep.mubr.bf16.mxu1 %v3551_v9 }
  0xe8   : > { %3245 = vmatmul.mubr.bf16.vlgmr.msra.gmra.mrb[96].mxu0 %v3552_v10 }
  0xe9   : > { %3253 = vmatmul.mubr.bf16.vlgmr.msra.gmra.mrb[96].mxu1 %v3553_v11  ;;  %3248 = vmatprep.mubr.bf16.mxu0 %v3554_v12 }
  0xea   : > { %3256 = vmatprep.mubr.bf16.mxu1 %v3555_v13 }
  0xf0   : > { %3249 = vmatmul.mubr.bf16.gmra.mrb[100].mxu0 %v3556_v14 }
  0xf1   : > { %3257 = vmatmul.mubr.bf16.gmra.mrb[100].mxu1 %v3557_v15 }
  0xfb   : > { %v2844_v16 = vpop.f32.mrb[0].mxu0 }
  0xfc   : > { %v2908_v17 = vpop.f32.mrb[0].mxu1  ;;  %v2845_v18 = vpop.f32.mrb[1].mxu0 }
  0xfd   : > { %v2846_v19 = vadd.f32 %v2845_v18, %v2844_v16  ;;  %v2909_v20 = vpop.f32.mrb[1].mxu1  ;;  %v2847_v21 = vpop.f32.mrb[2].mxu0 }
  0xfe   : > { %v2910_v22 = vadd.f32 %v2909_v20, %v2908_v17  ;;  %v2911_v23 = vpop.f32.mrb[2].mxu1  ;;  %v2848_v24 = vpop.f32.mrb[3].mxu0 }
  0xff   : > { %v2849_v25 = vadd.f32 %v2848_v24, %v2847_v21  ;;  %v2912_v26 = vpop.f32.mrb[3].mxu1 }
 0x100   : > { %v4047_v27 = vadd.f32 %v2910_v22, %v2846_v19  ;;  %v2913_v28 = vadd.f32 %v2912_v26, %v2911_v23 }
 0x102   : > { %v4049_v29 = vadd.f32 %v2913_v28, %v2849_v25 }
 0x103   : > { %v2850_v30 = vpop.f32.mrb[4].mxu0 }
 0x104   : > { %v2914_v31 = vpop.f32.mrb[4].mxu1  ;;  %v2851_v32 = vpop.f32.mrb[5].mxu0 }
 0x105   : > { %v2852_v33 = vadd.f32 %v2851_v32, %v2850_v30  ;;  %v2915_v34 = vpop.f32.mrb[5].mxu1  ;;  %v2853_v35 = vpop.f32.mrb[6].mxu0 }
 0x106   : > { %v2916_v36 = vadd.f32 %v2915_v34, %v2914_v31  ;;  %v2917_v37 = vpop.f32.mrb[6].mxu1  ;;  %v2854_v38 = vpop.f32.mrb[7].mxu0 }
 0x107   : > { %v2855_v39 = vadd.f32 %v2854_v38, %v2853_v35  ;;  %v2918_v40 = vpop.f32.mrb[7].mxu1 }
 0x108   : > { %v4051_v41 = vadd.f32 %v2916_v36, %v2852_v33  ;;  %v2919_v42 = vadd.f32 %v2918_v40, %v2917_v37 }
 0x10a   : > { %v4053_v43 = vadd.f32 %v2919_v42, %v2855_v39 }
 0x10b   : > { %v2856_v44 = vpop.f32.mrb[8].mxu0 }
 0x10c   : > { %v2920_v45 = vpop.f32.mrb[8].mxu1  ;;  %v2857_v46 = vpop.f32.mrb[9].mxu0 }
 0x10d   : > { %v2858_v47 = vadd.f32 %v2857_v46, %v2856_v44  ;;  %v2921_v48 = vpop.f32.mrb[9].mxu1  ;;  %v2859_v49 = vpop.f32.mrb[10].mxu0 }
 0x10e   : > { %v2922_v50 = vadd.f32 %v2921_v48, %v2920_v45  ;;  %v2923_v51 = vpop.f32.mrb[10].mxu1  ;;  %v2860_v52 = vpop.f32.mrb[11].mxu0 }
 0x10f   : > { %v2861_v53 = vadd.f32 %v2860_v52, %v2859_v49  ;;  %v2924_v54 = vpop.f32.mrb[11].mxu1 }
 0x110   : > { %v4055_v55 = vadd.f32 %v2922_v50, %v2858_v47  ;;  %v2925_v56 = vadd.f32 %v2924_v54, %v2923_v51 }
 0x112   : > { %v4057_v57 = vadd.f32 %v2925_v56, %v2861_v53 }
 0x113   : > { %v2862_v58 = vpop.f32.mrb[12].mxu0 }
 0x114   : > { %v2926_v59 = vpop.f32.mrb[12].mxu1  ;;  %v2863_v60 = vpop.f32.mrb[13].mxu0 }
 0x115   : > { %v2864_v61 = vadd.f32 %v2863_v60, %v2862_v58  ;;  %v2927_v62 = vpop.f32.mrb[13].mxu1  ;;  %v2865_v63 = vpop.f32.mrb[14].mxu0 }
 0x116   : > { %v2928_v0 = vadd.f32 %v2927_v62, %v2926_v59  ;;  %v2929_v1 = vpop.f32.mrb[14].mxu1  ;;  %v2866_v2 = vpop.f32.mrb[15].mxu0 }
 0x117   : > { %v2867_v3 = vadd.f32 %v2866_v2, %v2865_v63  ;;  %v2930_v4 = vpop.f32.mrb[15].mxu1 }
 0x118   : > { %v4059_v5 = vadd.f32 %v2928_v0, %v2864_v61  ;;  %v2931_v6 = vadd.f32 %v2930_v4, %v2929_v1 }
 0x11a   : > { %v4061_v7 = vadd.f32 %v2931_v6, %v2867_v3 }
 0x11b   : > { %v2868_v8 = vpop.f32.mrb[16].mxu0 }
 0x11c   : > { %v2932_v9 = vpop.f32.mrb[16].mxu1  ;;  %v2869_v10 = vpop.f32.mrb[17].mxu0 }
 0x11d   : > { %v2870_v11 = vadd.f32 %v2869_v10, %v2868_v8  ;;  %v2933_v12 = vpop.f32.mrb[17].mxu1  ;;  %v2871_v13 = vpop.f32.mrb[18].mxu0 }
 0x11e   : > { %v2934_v14 = vadd.f32 %v2933_v12, %v2932_v9  ;;  %v2935_v15 = vpop.f32.mrb[18].mxu1  ;;  %v2872_v16 = vpop.f32.mrb[19].mxu0 }
 0x11f   : > { %v2873_v17 = vadd.f32 %v2872_v16, %v2871_v13  ;;  %v2936_v18 = vpop.f32.mrb[19].mxu1 }
 0x120   : > { %v4063_v19 = vadd.f32 %v2934_v14, %v2870_v11  ;;  %v2937_v20 = vadd.f32 %v2936_v18, %v2935_v15 }
 0x122   : > { %v4065_v21 = vadd.f32 %v2937_v20, %v2873_v17 }
 0x123   : > { %v2874_v22 = vpop.f32.mrb[20].mxu0 }
 0x124   : > { %v2938_v23 = vpop.f32.mrb[20].mxu1  ;;  %v2875_v24 = vpop.f32.mrb[21].mxu0 }
 0x125   : > { %v2876_v25 = vadd.f32 %v2875_v24, %v2874_v22  ;;  %v2939_v26 = vpop.f32.mrb[21].mxu1  ;;  %v2877_v28 = vpop.f32.mrb[22].mxu0 }
 0x126   : > { %v2940_v30 = vadd.f32 %v2939_v26, %v2938_v23  ;;  %v2941_v31 = vpop.f32.mrb[22].mxu1  ;;  %v2878_v32 = vpop.f32.mrb[23].mxu0 }
 0x127   : > { %v2879_v33 = vadd.f32 %v2878_v32, %v2877_v28  ;;  %v2942_v34 = vpop.f32.mrb[23].mxu1 }
 0x128   : > { %v4067_v35 = vadd.f32 %v2940_v30, %v2876_v25  ;;  %v2943_v36 = vadd.f32 %v2942_v34, %v2941_v31 }
 0x12a   : > { %v4069_v37 = vadd.f32 %v2943_v36, %v2879_v33 }
 0x12b   : > { %v2880_v38 = vpop.f32.mrb[24].mxu0 }
 0x12c   : > { %v2944_v39 = vpop.f32.mrb[24].mxu1  ;;  %v2881_v40 = vpop.f32.mrb[25].mxu0 }
 0x12d   : > { %v2882_v42 = vadd.f32 %v2881_v40, %v2880_v38  ;;  %v2945_v44 = vpop.f32.mrb[25].mxu1  ;;  %v2883_v45 = vpop.f32.mrb[26].mxu0 }
 0x12e   : > { %v2946_v46 = vadd.f32 %v2945_v44, %v2944_v39  ;;  %v2947_v47 = vpop.f32.mrb[26].mxu1  ;;  %v2884_v48 = vpop.f32.mrb[27].mxu0 }
 0x12f   : > { %v2885_v49 = vadd.f32 %v2884_v48, %v2883_v45  ;;  %v2948_v50 = vpop.f32.mrb[27].mxu1 }
 0x130   : > { %v4071_v51 = vadd.f32 %v2946_v46, %v2882_v42  ;;  %v2949_v52 = vadd.f32 %v2948_v50, %v2947_v47 }
 0x132   : > { %v4073_v53 = vadd.f32 %v2949_v52, %v2885_v49 }
 0x133   : > { %v2886_v54 = vpop.f32.mrb[28].mxu0 }
 0x134   : > { %v2950_v56 = vpop.f32.mrb[28].mxu1  ;;  %v2887_v58 = vpop.f32.mrb[29].mxu0 }
 0x135   : > { %v2888_v59 = vadd.f32 %v2887_v58, %v2886_v54  ;;  %v2951_v60 = vpop.f32.mrb[29].mxu1  ;;  %v2889_v61 = vpop.f32.mrb[30].mxu0 }
 0x136   : > { %v2952_v62 = vadd.f32 %v2951_v60, %v2950_v56  ;;  %v2953_v63 = vpop.f32.mrb[30].mxu1  ;;  %v2890_v0 = vpop.f32.mrb[31].mxu0 }
 0x137   : > { %v2891_v1 = vadd.f32 %v2890_v0, %v2889_v61  ;;  %v2954_v2 = vpop.f32.mrb[31].mxu1 }
 0x138   : > { %v4075_v3 = vadd.f32 %v2952_v62, %v2888_v59  ;;  %v2955_v4 = vadd.f32 %v2954_v2, %v2953_v63 }
 0x13a   : > { %v4077_v6 = vadd.f32 %v2955_v4, %v2891_v1 }
 0x13b   : > { %v2972_v8 = vpop.f32.mrb[32].mxu0 }
 0x13c   : > { %v3036_v9 = vpop.f32.mrb[32].mxu1  ;;  %v2973_v10 = vpop.f32.mrb[33].mxu0 }
 0x13d   : > { %v2974_v11 = vadd.f32 %v2973_v10, %v2972_v8  ;;  %v3037_v12 = vpop.f32.mrb[33].mxu1  ;;  %v2975_v13 = vpop.f32.mrb[34].mxu0 }
 0x13e   : > { %v3038_v14 = vadd.f32 %v3037_v12, %v3036_v9  ;;  %v3039_v15 = vpop.f32.mrb[34].mxu1  ;;  %v2976_v16 = vpop.f32.mrb[35].mxu0 }
 0x13f   : > { %v1965_v17 = vadd.f32 %v2974_v11, %v4047_v27  ;;  %v2977_v18 = vadd.f32 %v2976_v16, %v2975_v13  ;;  %v3040_v20 = vpop.f32.mrb[35].mxu1 }
 0x140   : > { %v3041_v22 = vadd.f32 %v3040_v20, %v3039_v15 }
 0x141   : > { %v4080_v23 = vadd.f32 %v3038_v14, %v1965_v17  ;;  %v1968_v24 = vadd.f32 %v2977_v18, %v4049_v29 }
 0x143   : > { %v4083_v25 = vadd.f32 %v3041_v22, %v1968_v24  ;;  %v2978_v26 = vpop.f32.mrb[36].mxu0 }
 0x144   : > { %v3042_v28 = vpop.f32.mrb[36].mxu1  ;;  %v2979_v30 = vpop.f32.mrb[37].mxu0 }
 0x145   : > { %v2980_v31 = vadd.f32 %v2979_v30, %v2978_v26  ;;  %v3043_v32 = vpop.f32.mrb[37].mxu1  ;;  %v2981_v33 = vpop.f32.mrb[38].mxu0 }
 0x146   : > { %v3044_v34 = vadd.f32 %v3043_v32, %v3042_v28  ;;  %v3045_v36 = vpop.f32.mrb[38].mxu1  ;;  %v2982_v38 = vpop.f32.mrb[39].mxu0 }
 0x147   : > { %v1973_v27 = vadd.f32 %v2980_v31, %v4051_v41  ;;  %v2983_v39 = vadd.f32 %v2982_v38, %v2981_v33  ;;  %v3046_v40 = vpop.f32.mrb[39].mxu1 }
 0x148   : > { %v3047_v42 = vadd.f32 %v3046_v40, %v3045_v36 }
 0x149   : > { %v4086_v44 = vadd.f32 %v3044_v34, %v1973_v27  ;;  %v1976_v29 = vadd.f32 %v2983_v39, %v4053_v43 }
 0x14b   : > { %v4089_v45 = vadd.f32 %v3047_v42, %v1976_v29  ;;  %v2984_v46 = vpop.f32.mrb[40].mxu0 }
 0x14c   : > { %v3048_v47 = vpop.f32.mrb[40].mxu1  ;;  %v2985_v48 = vpop.f32.mrb[41].mxu0 }
 0x14d   : > { %v2986_v49 = vadd.f32 %v2985_v48, %v2984_v46  ;;  %v3049_v50 = vpop.f32.mrb[41].mxu1  ;;  %v2987_v52 = vpop.f32.mrb[42].mxu0 }
 0x14e   : > { %v3050_v54 = vadd.f32 %v3049_v50, %v3048_v47  ;;  %v3051_v56 = vpop.f32.mrb[42].mxu1  ;;  %v2988_v58 = vpop.f32.mrb[43].mxu0 }
 0x14f   : > { %v1981_v41 = vadd.f32 %v2986_v49, %v4055_v55  ;;  %v2989_v59 = vadd.f32 %v2988_v58, %v2987_v52  ;;  %v3052_v60 = vpop.f32.mrb[43].mxu1 }
 0x150   : > { %v3053_v61 = vadd.f32 %v3052_v60, %v3051_v56 }
 0x151   : > { %v4092_v62 = vadd.f32 %v3050_v54, %v1981_v41  ;;  %v1984_v43 = vadd.f32 %v2989_v59, %v4057_v57 }
 0x153   : > { %v4095_v63 = vadd.f32 %v3053_v61, %v1984_v43  ;;  %v2990_v0 = vpop.f32.mrb[44].mxu0 }
 0x154   : > { %v3054_v1 = vpop.f32.mrb[44].mxu1  ;;  %v2991_v2 = vpop.f32.mrb[45].mxu0 }
 0x155   : > { %v2992_v4 = vadd.f32 %v2991_v2, %v2990_v0  ;;  %v3055_v8 = vpop.f32.mrb[45].mxu1  ;;  %v2993_v9 = vpop.f32.mrb[46].mxu0 }
 0x156   : > { %v3056_v10 = vadd.f32 %v3055_v8, %v3054_v1  ;;  %v3057_v11 = vpop.f32.mrb[46].mxu1  ;;  %v2994_v12 = vpop.f32.mrb[47].mxu0 }
 0x157   : > { %v1989_v55 = vadd.f32 %v2992_v4, %v4059_v5  ;;  %v2995_v13 = vadd.f32 %v2994_v12, %v2993_v9  ;;  %v3058_v14 = vpop.f32.mrb[47].mxu1 }
 0x158   : > { %v3059_v15 = vadd.f32 %v3058_v14, %v3057_v11 }
 0x159   : > { %v4098_v16 = vadd.f32 %v3056_v10, %v1989_v55  ;;  %v1992_v57 = vadd.f32 %v2995_v13, %v4061_v7 }
 0x15b   : > { %v4101_v17 = vadd.f32 %v3059_v15, %v1992_v57  ;;  %v2996_v18 = vpop.f32.mrb[48].mxu0 }
 0x15c   : > { %v3060_v20 = vpop.f32.mrb[48].mxu1  ;;  %v2997_v22 = vpop.f32.mrb[49].mxu0 }
 0x15d   : > { %v2998_v24 = vadd.f32 %v2997_v22, %v2996_v18  ;;  %v3061_v26 = vpop.f32.mrb[49].mxu1  ;;  %v2999_v28 = vpop.f32.mrb[50].mxu0 }
 0x15e   : > { %v3062_v30 = vadd.f32 %v3061_v26, %v3060_v20  ;;  %v3063_v31 = vpop.f32.mrb[50].mxu1  ;;  %v3000_v32 = vpop.f32.mrb[51].mxu0 }
 0x15f   : > { %v1997_v5 = vadd.f32 %v2998_v24, %v4063_v19  ;;  %v3001_v33 = vadd.f32 %v3000_v32, %v2999_v28  ;;  %v3064_v34 = vpop.f32.mrb[51].mxu1 }
 0x160   : > { %v3065_v36 = vadd.f32 %v3064_v34, %v3063_v31 }
 0x161   : > { %v4104_v38 = vadd.f32 %v3062_v30, %v1997_v5  ;;  %v2000_v7 = vadd.f32 %v3001_v33, %v4065_v21 }
 0x163   : > { %v4107_v27 = vadd.f32 %v3065_v36, %v2000_v7  ;;  %v3002_v39 = vpop.f32.mrb[52].mxu0 }
 0x164   : > { %v3066_v40 = vpop.f32.mrb[52].mxu1  ;;  %v3003_v42 = vpop.f32.mrb[53].mxu0 }
 0x165   : > { %v3004_v29 = vadd.f32 %v3003_v42, %v3002_v39  ;;  %v3067_v46 = vpop.f32.mrb[53].mxu1  ;;  %v3005_v47 = vpop.f32.mrb[54].mxu0 }
 0x166   : > { %v3068_v48 = vadd.f32 %v3067_v46, %v3066_v40  ;;  %v3069_v49 = vpop.f32.mrb[54].mxu1  ;;  %v3006_v50 = vpop.f32.mrb[55].mxu0 }
 0x167   : > { %v2005_v19 = vadd.f32 %v3004_v29, %v4067_v35  ;;  %v3007_v52 = vadd.f32 %v3006_v50, %v3005_v47  ;;  %v3070_v54 = vpop.f32.mrb[55].mxu1 }
 0x168   : > { %v3071_v56 = vadd.f32 %v3070_v54, %v3069_v49 }
 0x169   : > { %v4110_v58 = vadd.f32 %v3068_v48, %v2005_v19  ;;  %v2008_v21 = vadd.f32 %v3007_v52, %v4069_v37 }
 0x16b   : > { %v4113_v41 = vadd.f32 %v3071_v56, %v2008_v21  ;;  %v3008_v59 = vpop.f32.mrb[56].mxu0 }
 0x16c   : > { %v3072_v60 = vpop.f32.mrb[56].mxu1  ;;  %v3009_v61 = vpop.f32.mrb[57].mxu0 }
 0x16d   : > { %v3010_v43 = vadd.f32 %v3009_v61, %v3008_v59  ;;  %v3073_v0 = vpop.f32.mrb[57].mxu1  ;;  %v3011_v1 = vpop.f32.mrb[58].mxu0 }
 0x16e   : > { %v3074_v2 = vadd.f32 %v3073_v0, %v3072_v60  ;;  %v3075_v4 = vpop.f32.mrb[58].mxu1  ;;  %v3012_v8 = vpop.f32.mrb[59].mxu0 }
 0x16f   : > { %v2013_v35 = vadd.f32 %v3010_v43, %v4071_v51  ;;  %v3013_v9 = vadd.f32 %v3012_v8, %v3011_v1  ;;  %v3076_v10 = vpop.f32.mrb[59].mxu1 }
 0x170   : > { %v3077_v11 = vadd.f32 %v3076_v10, %v3075_v4 }
 0x171   : > { %v4116_v12 = vadd.f32 %v3074_v2, %v2013_v35  ;;  %v2016_v37 = vadd.f32 %v3013_v9, %v4073_v53 }
 0x173   : > { %v4119_v55 = vadd.f32 %v3077_v11, %v2016_v37  ;;  %v3014_v13 = vpop.f32.mrb[60].mxu0 }
 0x174   : > { %v3078_v14 = vpop.f32.mrb[60].mxu1  ;;  %v3015_v15 = vpop.f32.mrb[61].mxu0 }
 0x175   : > { %v3016_v57 = vadd.f32 %v3015_v15, %v3014_v13  ;;  %v3079_v18 = vpop.f32.mrb[61].mxu1  ;;  %v3017_v20 = vpop.f32.mrb[62].mxu0 }
 0x176   : > { %v3080_v22 = vadd.f32 %v3079_v18, %v3078_v14  ;;  %v3081_v24 = vpop.f32.mrb[62].mxu1  ;;  %v3018_v26 = vpop.f32.mrb[63].mxu0 }
 0x177   : > { %v2021_v51 = vadd.f32 %v3016_v57, %v4075_v3  ;;  %v3019_v28 = vadd.f32 %v3018_v26, %v3017_v20  ;;  %v3082_v30 = vpop.f32.mrb[63].mxu1 }
 0x178   : > { %v3083_v31 = vadd.f32 %v3082_v30, %v3081_v24 }
 0x179   : > { %v4122_v32 = vadd.f32 %v3080_v22, %v2021_v51  ;;  %v2024_v53 = vadd.f32 %v3019_v28, %v4077_v6 }
 0x17b   : > { %v4125_v5 = vadd.f32 %v3083_v31, %v2024_v53  ;;  %v3100_v33 = vpop.f32.mrb[64].mxu0 }
 0x17c   : > { %v3164_v34 = vpop.f32.mrb[64].mxu1  ;;  %v3101_v36 = vpop.f32.mrb[65].mxu0 }
 0x17d   : > { %v3102_v7 = vadd.f32 %v3101_v36, %v3100_v33  ;;  %v3165_v39 = vpop.f32.mrb[65].mxu1  ;;  %v3103_v40 = vpop.f32.mrb[66].mxu0 }
 0x17e   : > { %v3166_v42 = vadd.f32 %v3165_v39, %v3164_v34  ;;  %v3167_v29 = vpop.f32.mrb[66].mxu1  ;;  %v3104_v46 = vpop.f32.mrb[67].mxu0 }
 0x17f   : > { %v2159_v3 = vadd.f32 %v3102_v7, %v4080_v23  ;;  %v3105_v47 = vadd.f32 %v3104_v46, %v3103_v40  ;;  %v3168_v48 = vpop.f32.mrb[67].mxu1 }
 0x180   : > { %v3169_v49 = vadd.f32 %v3168_v48, %v3167_v29 }
 0x181   : > { %v2162_v50 = vadd.f32 %v3105_v47, %v4083_v25  ;;  %v4129_v19 = vadd.f32 %v3166_v42, %v2159_v3 }
 0x183   : > { %v3106_v6 = vpop.f32.mrb[68].mxu0  ;;  %v4131_v52 = vadd.f32 %v3169_v49, %v2162_v50 }
 0x184   : > { %v3170_v54 = vpop.f32.mrb[68].mxu1  ;;  %v3107_v56 = vpop.f32.mrb[69].mxu0 }
 0x185   : > { %v3108_v21 = vadd.f32 %v3107_v56, %v3106_v6  ;;  %v3171_v59 = vpop.f32.mrb[69].mxu1  ;;  %v3109_v60 = vpop.f32.mrb[70].mxu0 }
 0x186   : > { %v3172_v61 = vadd.f32 %v3171_v59, %v3170_v54  ;;  %v3173_v43 = vpop.f32.mrb[70].mxu1  ;;  %v3110_v0 = vpop.f32.mrb[71].mxu0 }
 0x187   : > { %v2167_v23 = vadd.f32 %v3108_v21, %v4086_v44  ;;  %v3111_v1 = vadd.f32 %v3110_v0, %v3109_v60  ;;  %v3174_v2 = vpop.f32.mrb[71].mxu1 }
 0x188   : > { %v3175_v4 = vadd.f32 %v3174_v2, %v3173_v43 }
 0x189   : > { %v2170_v25 = vadd.f32 %v3111_v1, %v4089_v45  ;;  %v4135_v8 = vadd.f32 %v3172_v61, %v2167_v23 }
 0x18b   : > { %v3112_v35 = vpop.f32.mrb[72].mxu0  ;;  %v4137_v9 = vadd.f32 %v3175_v4, %v2170_v25 }
 0x18c   : > { %v3176_v10 = vpop.f32.mrb[72].mxu1  ;;  %v3113_v11 = vpop.f32.mrb[73].mxu0 }
 0x18d   : > { %v3114_v37 = vadd.f32 %v3113_v11, %v3112_v35  ;;  %v3177_v13 = vpop.f32.mrb[73].mxu1  ;;  %v3115_v14 = vpop.f32.mrb[74].mxu0 }
 0x18e   : > { %v3178_v15 = vadd.f32 %v3177_v13, %v3176_v10  ;;  %v3179_v57 = vpop.f32.mrb[74].mxu1  ;;  %v3116_v18 = vpop.f32.mrb[75].mxu0 }
 0x18f   : > { %v2175_v44 = vadd.f32 %v3114_v37, %v4092_v62  ;;  %v3117_v20 = vadd.f32 %v3116_v18, %v3115_v14  ;;  %v3180_v22 = vpop.f32.mrb[75].mxu1 }
 0x190   : > { %v3181_v24 = vadd.f32 %v3180_v22, %v3179_v57 }
 0x191   : > { %v2178_v45 = vadd.f32 %v3117_v20, %v4095_v63  ;;  %v4141_v26 = vadd.f32 %v3178_v15, %v2175_v44 }
 0x193   : > { %v3118_v51 = vpop.f32.mrb[76].mxu0  ;;  %v4143_v28 = vadd.f32 %v3181_v24, %v2178_v45 }
 0x194   : > { %v3182_v30 = vpop.f32.mrb[76].mxu1  ;;  %v3119_v31 = vpop.f32.mrb[77].mxu0 }
 0x195   : > { %v3120_v53 = vadd.f32 %v3119_v31, %v3118_v51  ;;  %v3183_v33 = vpop.f32.mrb[77].mxu1  ;;  %v3121_v34 = vpop.f32.mrb[78].mxu0 }
 0x196   : > { %v3184_v36 = vadd.f32 %v3183_v33, %v3182_v30  ;;  %v3185_v7 = vpop.f32.mrb[78].mxu1  ;;  %v3122_v39 = vpop.f32.mrb[79].mxu0 }
 0x197   : > { %v2183_v62 = vadd.f32 %v3120_v53, %v4098_v16  ;;  %v3123_v40 = vadd.f32 %v3122_v39, %v3121_v34  ;;  %v3186_v42 = vpop.f32.mrb[79].mxu1 }
 0x198   : > { %v3187_v29 = vadd.f32 %v3186_v42, %v3185_v7 }
 0x199   : > { %v2186_v63 = vadd.f32 %v3123_v40, %v4101_v17  ;;  %v4147_v46 = vadd.f32 %v3184_v36, %v2183_v62 }
 0x19b   : > { %v3124_v3 = vpop.f32.mrb[80].mxu0  ;;  %v4149_v47 = vadd.f32 %v3187_v29, %v2186_v63 }
 0x19c   : > { %v3188_v48 = vpop.f32.mrb[80].mxu1  ;;  %v3125_v49 = vpop.f32.mrb[81].mxu0 }
 0x19d   : > { %v3126_v50 = vadd.f32 %v3125_v49, %v3124_v3  ;;  %v3189_v6 = vpop.f32.mrb[81].mxu1  ;;  %v3127_v54 = vpop.f32.mrb[82].mxu0 }
 0x19e   : > { %v3190_v56 = vadd.f32 %v3189_v6, %v3188_v48  ;;  %v3191_v21 = vpop.f32.mrb[82].mxu1  ;;  %v3128_v59 = vpop.f32.mrb[83].mxu0 }
 0x19f   : > { %v2191_v16 = vadd.f32 %v3126_v50, %v4104_v38  ;;  %v3129_v60 = vadd.f32 %v3128_v59, %v3127_v54  ;;  %v3192_v61 = vpop.f32.mrb[83].mxu1 }
 0x1a0   : > { %v3193_v43 = vadd.f32 %v3192_v61, %v3191_v21 }
 0x1a1   : > { %v2194_v17 = vadd.f32 %v3129_v60, %v4107_v27  ;;  %v2288_v0 = vadd.f32 %v3190_v56, %v2191_v16 }
 0x1a3   : > { %v3130_v23 = vpop.f32.mrb[84].mxu0  ;;  %v4153_v1 = vadd.f32 %v3193_v43, %v2194_v17 }
 0x1a4   : > { %v3194_v2 = vpop.f32.mrb[84].mxu1  ;;  %v3131_v4 = vpop.f32.mrb[85].mxu0 }
 0x1a5   : > { %v3132_v25 = vadd.f32 %v3131_v4, %v3130_v23  ;;  %v3195_v35 = vpop.f32.mrb[85].mxu1  ;;  %v3133_v10 = vpop.f32.mrb[86].mxu0  ;;  %v4169_v23 = vld [vmem:[%s4230_s2] ss:$0 sm:$0xff] }
 0x1a6   : > { %v3196_v11 = vadd.f32 %v3195_v35, %v3194_v2  ;;  %v3197_v37 = vpop.f32.mrb[86].mxu1  ;;  %v3134_v13 = vpop.f32.mrb[87].mxu0 }
 0x1a7   : > { %v2199_v14 = vadd.f32 %v3132_v25, %v4110_v58  ;;  %v3135_v38 = vadd.f32 %v3134_v13, %v3133_v10  ;;  %v3198_v15 = vpop.f32.mrb[87].mxu1 }
 0x1a8   : > { %v3199_v57 = vadd.f32 %v3198_v15, %v3197_v37 }
 0x1a9   : > { %v2202_v18 = vadd.f32 %v3135_v38, %v4113_v41  ;;  %v2296_v27 = vadd.f32 %v3196_v11, %v2199_v14 }
 0x1ab   : > { %v3136_v44 = vpop.f32.mrb[88].mxu0  ;;  %v2299_v20 = vadd.f32 %v3199_v57, %v2202_v18 }
 0x1ac   : > { %v3200_v22 = vpop.f32.mrb[88].mxu1  ;;  %v3137_v24 = vpop.f32.mrb[89].mxu0 }
 0x1ad   : > { %v3138_v45 = vadd.f32 %v3137_v24, %v3136_v44  ;;  %v3201_v51 = vpop.f32.mrb[89].mxu1  ;;  %v3139_v30 = vpop.f32.mrb[90].mxu0 }
 0x1ae   : > { %v3202_v31 = vadd.f32 %v3201_v51, %v3200_v22  ;;  %v3203_v53 = vpop.f32.mrb[90].mxu1  ;;  %v3140_v33 = vpop.f32.mrb[91].mxu0 }
 0x1af   : > { %v2207_v34 = vadd.f32 %v3138_v45, %v4116_v12  ;;  %v3141_v36 = vadd.f32 %v3140_v33, %v3139_v30  ;;  %v3204_v58 = vpop.f32.mrb[91].mxu1 }
 0x1b0   : > { %v3205_v7 = vadd.f32 %v3204_v58, %v3203_v53 }
 0x1b1   : > { %v2210_v39 = vadd.f32 %v3141_v36, %v4119_v55  ;;  %v4159_v62 = vadd.f32 %v3202_v31, %v2207_v34 }
 0x1b3   : > { %v3142_v41 = vpop.f32.mrb[92].mxu0  ;;  %v4161_v40 = vadd.f32 %v3205_v7, %v2210_v39 }
 0x1b4   : > { %v3206_v42 = vpop.f32.mrb[92].mxu1  ;;  %v3143_v29 = vpop.f32.mrb[93].mxu0 }
 0x1b5   : > { %v3144_v63 = vadd.f32 %v3143_v29, %v3142_v41  ;;  %v3207_v3 = vpop.f32.mrb[93].mxu1  ;;  %v3145_v48 = vpop.f32.mrb[94].mxu0 }
 0x1b6   : > { %v3208_v49 = vadd.f32 %v3207_v3, %v3206_v42  ;;  %v3209_v50 = vpop.f32.mrb[94].mxu1  ;;  %v3146_v6 = vpop.f32.mrb[95].mxu0 }
 0x1b7   : > { %v2215_v12 = vadd.f32 %v3144_v63, %v4122_v32  ;;  %v3147_v54 = vadd.f32 %v3146_v6, %v3145_v48  ;;  %v3210_v56 = vpop.f32.mrb[95].mxu1 }
 0x1b8   : > { %v3211_v21 = vadd.f32 %v3210_v56, %v3209_v50 }
 0x1b9   : > { %v2218_v55 = vadd.f32 %v3147_v54, %v4125_v5  ;;  %v2312_v59 = vadd.f32 %v3208_v49, %v2215_v12 }
 0x1bb   : > { %v3246_v16 = vpop.f32.mrb[96].mxu0  ;;  %v2315_v60 = vadd.f32 %v3211_v21, %v2218_v55 }
 0x1bc   : > { %v2361_v61 = vadd.f32 %v3246_v16, %v4135_v8  ;;  %v3254_v43 = vpop.f32.mrb[96].mxu1  ;;  %v2352_v17 = vpop.f32.mrb[97].mxu0 }
 0x1bd   : > { %v2393_v2 = vadd.f32 %v3254_v43, %v2296_v27  ;;  %v2353_v32 = vadd.f32 %v2352_v17, %v4129_v19  ;;  %v2384_v4 = vpop.f32.mrb[97].mxu1  ;;  %v3247_v25 = vpop.f32.mrb[98].mxu0 }
 0x1be   : > { %v2385_v35 = vadd.f32 %v2384_v4, %v2288_v0  ;;  %v2364_v5 = vadd.f32 %v3247_v25, %v4137_v9  ;;  %v3255_v10 = vpop.f32.mrb[98].mxu1  ;;  %v2355_v11 = vpop.f32.mrb[99].mxu0  ;;  %v2475_v14 = vadd.f32 %v4169_v23, %v2361_v61 }
 0x1bf   : > { %v2396_v37 = vadd.f32 %v3255_v10, %v2299_v20  ;;  %v2356_v8 = vadd.f32 %v2355_v11, %v4131_v52  ;;  %v2387_v13 = vpop.f32.mrb[99].mxu1  ;;  %v2483_v19 = vadd.f32 %v4169_v23, %v2393_v2  ;;  %v2473_v9 = vadd.f32 %v4169_v23, %v2353_v32 }
 0x1c0   : > { %v2388_v38 = vadd.f32 %v2387_v13, %v4153_v1  ;;  %v2491_v0 = vmax.f32 %v2475_v14, 0.0  ;;  %v2481_v52 = vadd.f32 %v4169_v23, %v2385_v35  ;;  %v2476_v15 = vadd.f32 %v4169_v23, %v2364_v5 }
 0x1c1   : > { %v2499_v57 = vmax.f32 %v2483_v19, 0.0  ;;  %v2489_v18 = vmax.f32 %v2473_v9, 0.0  ;;  %v2484_v1 = vadd.f32 %v4169_v23, %v2396_v37  ;;  %v2474_v27 = vadd.f32 %v4169_v23, %v2356_v8 }
 0x1c2   : > { %2507 = vst [vmem:[%s4180_s12 + $0x10] sm:$0xff] %v2491_v0  ;;  %v2497_v20 = vmax.f32 %v2481_v52, 0.0  ;;  %v2492_v22 = vmax.f32 %v2476_v15, 0.0  ;;  %v2482_v24 = vadd.f32 %v4169_v23, %v2388_v38 }
 0x1c3   : > { %v3250_v44 = vpop.f32.mrb[100].mxu0  ;;  %2515 = vst [vmem:[%s4180_s12 + $0x50] sm:$0xff] %v2499_v57  ;;  %2505 = vst [vmem:[%s4180_s12] sm:$0xff] %v2489_v18  ;;  %v2500_v31 = vmax.f32 %v2484_v1, 0.0  ;;  %v2490_v53 = vmax.f32 %v2474_v27, 0.0 }
 0x1c4   : > { %v2377_v45 = vadd.f32 %v3250_v44, %v4147_v46  ;;  %v3258_v51 = vpop.f32.mrb[100].mxu1  ;;  %v2368_v30 = vpop.f32.mrb[101].mxu0  ;;  %2513 = vst [vmem:[%s4180_s12 + $0x40] sm:$0xff] %v2497_v20  ;;  %2508 = vst [vmem:[%s4180_s12 + $0x18] sm:$0xff] %v2492_v22  ;;  %v2498_v7 = vmax.f32 %v2482_v24, 0.0 }
 0x1c5   : > { %v2409_v33 = vadd.f32 %v3258_v51, %v2312_v59  ;;  %v2369_v34 = vadd.f32 %v2368_v30, %v4141_v26  ;;  %v2400_v36 = vpop.f32.mrb[101].mxu1  ;;  %v3251_v58 = vpop.f32.mrb[102].mxu0  ;;  %2516 = vst [vmem:[%s4180_s12 + $0x58] sm:$0xff] %v2500_v31  ;;  %2506 = vst [vmem:[%s4180_s12 + $0x8] sm:$0xff] %v2490_v53 }
 0x1c6   : > { %v2401_v39 = vadd.f32 %v2400_v36, %v4159_v62  ;;  %v2380_v46 = vadd.f32 %v3251_v58, %v4149_v47  ;;  %v3259_v41 = vpop.f32.mrb[102].mxu1  ;;  %v2371_v42 = vpop.f32.mrb[103].mxu0  ;;  %2514 = vst [vmem:[%s4180_s12 + $0x48] sm:$0xff] %v2498_v7  ;;  %v2479_v26 = vadd.f32 %v4169_v23, %v2377_v45 }
 0x1c7   : > { %v2412_v29 = vadd.f32 %v3259_v41, %v2315_v60  ;;  %v2372_v63 = vadd.f32 %v2371_v42, %v4143_v28  ;;  %v2403_v3 = vpop.f32.mrb[103].mxu1  ;;  %v2487_v62 = vadd.f32 %v4169_v23, %v2409_v33  ;;  %v2477_v47 = vadd.f32 %v4169_v23, %v2369_v34 }
 0x1c8   : > { %v2404_v48 = vadd.f32 %v2403_v3, %v4161_v40  ;;  %v2495_v49 = vmax.f32 %v2479_v26, 0.0  ;;  %v2485_v50 = vadd.f32 %v4169_v23, %v2401_v39  ;;  %v2480_v6 = vadd.f32 %v4169_v23, %v2380_v46 }
 0x1c9   : > { %v2503_v28 = vmax.f32 %v2487_v62, 0.0  ;;  %v2493_v12 = vmax.f32 %v2477_v47, 0.0  ;;  %v2488_v54 = vadd.f32 %v4169_v23, %v2412_v29  ;;  %v2478_v40 = vadd.f32 %v4169_v23, %v2372_v63 }
 0x1ca   : > { %2511 = vst [vmem:[%s4180_s12 + $0x30] sm:$0xff] %v2495_v49  ;;  %v2501_v56 = vmax.f32 %v2485_v50, 0.0  ;;  %v2496_v21 = vmax.f32 %v2480_v6, 0.0  ;;  %v2486_v55 = vadd.f32 %v4169_v23, %v2404_v48 }
 0x1cb   : > { %2519 = vst [vmem:[%s4180_s12 + $0x70] sm:$0xff] %v2503_v28  ;;  %2509 = vst [vmem:[%s4180_s12 + $0x20] sm:$0xff] %v2493_v12  ;;  %v2504_v59 = vmax.f32 %v2488_v54, 0.0  ;;  %v2494_v16 = vmax.f32 %v2478_v40, 0.0 }
 0x1cc   : > { %2517 = vst [vmem:[%s4180_s12 + $0x60] sm:$0xff] %v2501_v56  ;;  %2512 = vst [vmem:[%s4180_s12 + $0x38] sm:$0xff] %v2496_v21  ;;  %v2502_v60 = vmax.f32 %v2486_v55, 0.0 }
 0x1cd   : > { %2520 = vst [vmem:[%s4180_s12 + $0x78] sm:$0xff] %v2504_v59  ;;  %2510 = vst [vmem:[%s4180_s12 + $0x28] sm:$0xff] %v2494_v16 }
 0x1ce   : > { %2518 = vst [vmem:[%s4180_s12 + $0x68] sm:$0xff] %v2502_v60 }
 0x1cf PF: > { %s13_s14 = sadd.s32 1, %s3580_s14   ;;  %s4232_s12 = smov %s3576_s13 }
 0x1d0   : > { %p10_p5 = scmp.ge.s32.totalorder %s13_s14, 4   ;;  %s4233_s13 = smov %s4235_s15 }
 0x1d2   :  { %12 = sbr.rel (!%p10_p5) target bundleno = 2 (0x2), region = 73 }

// kernel: network_forward.5
= control target key start
LH: loop header
LB: loop body
LE: loop exit
PB: predicated region body
PF: predicated region fallthrough
CT: control target
= control target key end

     0   :  { %s4895_s24 = smov 0   ;;  %s5613_s0 = inlined_call_operand.vmem [shape: bf16[8,15488], index: 0, kind: input, shape index: {}]   ;;  %s5614_s1 = inlined_call_operand.vmem [shape: bf16[15488,512], index: 1, kind: input, shape index: {}]   ;;  %s5615_s2 = inlined_call_operand.vmem [shape: f32[1,512], index: 2, kind: input, shape index: {}]   ;;  %s5616_s3 = inlined_call_operand.vmem [shape: bf16[512,256], index: 3, kind: input, shape index: {}]   ;;  %s5617_s4 = inlined_call_operand.vmem [shape: f32[1,256], index: 4, kind: input, shape index: {}]   ;;  %s5618_s5 = inlined_call_operand.vmem [shape: bf16[256,128], index: 5, kind: input, shape index: {}]   ;;  %s5619_s6 = inlined_call_operand.vmem [shape: f32[1,128], index: 6, kind: input, shape index: {}]   ;;  %s5620_s7 = inlined_call_operand.vmem [shape: f32[8,128], index: 7, kind: output, shape index: {}]  }
   0x1 LB: > { %s4901_s25 = sadd.s32 4294967295, %s4851_s24   ;;  %p3704_p0 = scmp.ge.s32.totalorder %s4851_s24, 1  ;;  %s4851_s24 = sphi %s4895_s24, %s17_s24  }
   0x2   : > { %p245_p1 = scmp.lt.s32.totalorder %s4851_s24, 12 }
   0x4   : > { %p246_p2 = pnand %p3704_p0, %p245_p1 }
   0x5   : > { %s278_s26 = smul.u32 (!%p246_p2), 11, %s4901_s25  ;;  %p3708_p5 = scmp.ne.s32.totalorder (!%p246_p2), %s4901_s25, 0 }
   0x6   : > { %249 = sbr.rel (%p246_p2) target bundleno = 1052 (0x41c), region = 48 }
   0x7   : > { %s284_s27 = smul.u32 (!%p246_p2), 176, %s4901_s25  ;;  %p279_p3 = scmp.lt.s32.totalorder (!%p246_p2), %s278_s26, 120 }
   0x9   : > { %p285_p4 = scmp.lt.s32.totalorder (!%p246_p2), %s284_s27, 1935 }
   0xd   : > { %s5622_s26 = smov (!%p279_p3, %s278_s26), 120  ;;  %s5624_s27 = smov (!%p285_p4, %s284_s27), 1935 }
   0xe   : > { %s3705_s28 = sshll.u32 %s5622_s26, 2  ;;  %s4156_s9 = sshll.u32 %s5624_s27, 4  ;;  %v4853_v0 = vmov (!%p3708_p5), 0.0  }
   0xf   : > { %s4910_s8 = scalar_lea.vmem %s5613_s0, %s3705_s28  ;;  %s4915_s12 = scalar_lea.vmem %s5614_s1, %s4156_s9  ;;  %296 = vst [vmem:[#allocation2] sm:$0xff] (!%p3708_p5), %v4853_v0  ;;  %297 = vst [vmem:[#allocation2 + $0x8] sm:$0xff] (!%p3708_p5), %v4853_v0 }
  0x10   : > { %295 = sbr.rel (%p3708_p5) target bundleno = 23 (0x17), region = 52  ;;  %298 = vst [vmem:[#allocation2 + $0x10] sm:$0xff] (!%p3708_p5), %v4853_v0  ;;  %299 = vst [vmem:[#allocation2 + $0x18] sm:$0xff] (!%p3708_p5), %v4853_v0 }
  0x17 PF: > { %v4193_v1 = vld [vmem:[%s4915_s12 + $0x4] ss:$16 sps:$4 sm:$0xff]   ;;  %v4197_v3 = vld [vmem:[%s4915_s12] ss:$16 sps:$4 sm:$0xff]   ;;  %v305_v49 = vld [vmem:[%s4910_s8 + $0x8] sm:$0xff]  ;;  %p4072_p6 = scmp.ne.s32.totalorder %s4901_s25, 10 }
  0x18   : > { %v4195_v2 = vld [vmem:[%s4915_s12 + $0x204] ss:$16 sps:$4 sm:$0xff]   ;;  %2461 = vmatprep.subr.bf16.mxu0 %v4193_v1  ;;  %v4198_v4 = vld [vmem:[%s4915_s12 + $0x200] ss:$16 sps:$4 sm:$0xff]   ;;  %v4970_v52 = vcombine.high %v305_v49, %v305_v49 }
  0x19   : > { %2502 = vmatprep.subr.bf16.mxu1 %v4195_v2  ;;  %v4199_v5 = vld [vmem:[%s4915_s12 + $0x24] ss:$16 sps:$4 sm:$0xff]   ;;  %2462 = vmatpush1.bf16.msra.mxu0 %v4197_v3  ;;  %v4203_v7 = vld [vmem:[%s4915_s12 + $0x20] ss:$16 sps:$4 sm:$0xff]  }
  0x1a   : > { %2503 = vmatpush1.bf16.msra.mxu1 %v4198_v4  ;;  %v4201_v6 = vld [vmem:[%s4915_s12 + $0x224] ss:$16 sps:$4 sm:$0xff]   ;;  %2463 = vmatprep.subr.bf16.mxu0 %v4199_v5  ;;  %v4204_v8 = vld [vmem:[%s4915_s12 + $0x220] ss:$16 sps:$4 sm:$0xff]  }
  0x1b   : > { %2504 = vmatprep.subr.bf16.mxu1 %v4201_v6  ;;  %v4205_v9 = vld [vmem:[%s4915_s12 + $0x44] ss:$16 sps:$4 sm:$0xff]   ;;  %v4209_v11 = vld [vmem:[%s4915_s12 + $0x40] ss:$16 sps:$4 sm:$0xff]   ;;  %2534 = vmatprep.mubr.bf16.mxu1 %v4970_v52 }
  0x1c   : > { %v4207_v10 = vld [vmem:[%s4915_s12 + $0x244] ss:$16 sps:$4 sm:$0xff]   ;;  %v4210_v12 = vld [vmem:[%s4915_s12 + $0x240] ss:$16 sps:$4 sm:$0xff]  }
  0x1d   : > { %2464 = vmatpush1.bf16.msra.mxu0 %v4203_v7  ;;  %v4211_v13 = vld [vmem:[%s4915_s12 + $0x64] ss:$16 sps:$4 sm:$0xff]   ;;  %v4215_v15 = vld [vmem:[%s4915_s12 + $0x60] ss:$16 sps:$4 sm:$0xff]  }
  0x1e   : > { %2505 = vmatpush1.bf16.msra.mxu1 %v4204_v8  ;;  %2465 = vmatprep.subr.bf16.mxu0 %v4205_v9  ;;  %v4213_v14 = vld [vmem:[%s4915_s12 + $0x264] ss:$16 sps:$4 sm:$0xff]   ;;  %v4216_v16 = vld [vmem:[%s4915_s12 + $0x260] ss:$16 sps:$4 sm:$0xff]   ;;  %v4994_v8 = vcombine.low %v305_v49, %v305_v49 }
  0x1f   : > { %2506 = vmatprep.subr.bf16.mxu1 %v4207_v10  ;;  %v4217_v17 = vld [vmem:[%s4915_s12 + $0x84] ss:$16 sps:$4 sm:$0xff]   ;;  %v4221_v19 = vld [vmem:[%s4915_s12 + $0x80] ss:$16 sps:$4 sm:$0xff]  }
  0x20   : > { %v4219_v18 = vld [vmem:[%s4915_s12 + $0x284] ss:$16 sps:$4 sm:$0xff]   ;;  %v4222_v20 = vld [vmem:[%s4915_s12 + $0x280] ss:$16 sps:$4 sm:$0xff]  }
  0x21   : > { %2466 = vmatpush1.bf16.msra.mxu0 %v4209_v11  ;;  %v4223_v21 = vld [vmem:[%s4915_s12 + $0xa4] ss:$16 sps:$4 sm:$0xff]   ;;  %v4227_v23 = vld [vmem:[%s4915_s12 + $0xa0] ss:$16 sps:$4 sm:$0xff]  }
  0x22   : > { %2507 = vmatpush1.bf16.msra.mxu1 %v4210_v12  ;;  %2467 = vmatprep.subr.bf16.mxu0 %v4211_v13  ;;  %v4225_v22 = vld [vmem:[%s4915_s12 + $0x2a4] ss:$16 sps:$4 sm:$0xff]   ;;  %v4228_v24 = vld [vmem:[%s4915_s12 + $0x2a0] ss:$16 sps:$4 sm:$0xff]  }
  0x23   : > { %2508 = vmatprep.subr.bf16.mxu1 %v4213_v14  ;;  %v4229_v25 = vld [vmem:[%s4915_s12 + $0xc4] ss:$16 sps:$4 sm:$0xff]   ;;  %v4233_v27 = vld [vmem:[%s4915_s12 + $0xc0] ss:$16 sps:$4 sm:$0xff]  }
  0x24   : > { %v4231_v26 = vld [vmem:[%s4915_s12 + $0x2c4] ss:$16 sps:$4 sm:$0xff]   ;;  %v4234_v28 = vld [vmem:[%s4915_s12 + $0x2c0] ss:$16 sps:$4 sm:$0xff]  }
  0x25   : > { %2468 = vmatpush1.bf16.msra.mxu0 %v4215_v15  ;;  %v4235_v29 = vld [vmem:[%s4915_s12 + $0xe4] ss:$16 sps:$4 sm:$0xff]   ;;  %v4239_v31 = vld [vmem:[%s4915_s12 + $0xe0] ss:$16 sps:$4 sm:$0xff]  }
  0x26   : > { %2509 = vmatpush1.bf16.msra.mxu1 %v4216_v16  ;;  %2469 = vmatprep.subr.bf16.mxu0 %v4217_v17  ;;  %v4237_v30 = vld [vmem:[%s4915_s12 + $0x2e4] ss:$16 sps:$4 sm:$0xff]   ;;  %v4240_v32 = vld [vmem:[%s4915_s12 + $0x2e0] ss:$16 sps:$4 sm:$0xff]  }
  0x27   : > { %2510 = vmatprep.subr.bf16.mxu1 %v4219_v18  ;;  %v4241_v33 = vld [vmem:[%s4915_s12 + $0x104] ss:$16 sps:$4 sm:$0xff]   ;;  %v4245_v35 = vld [vmem:[%s4915_s12 + $0x100] ss:$16 sps:$4 sm:$0xff]  }
  0x28   : > { %v4243_v34 = vld [vmem:[%s4915_s12 + $0x304] ss:$16 sps:$4 sm:$0xff]   ;;  %v4246_v36 = vld [vmem:[%s4915_s12 + $0x300] ss:$16 sps:$4 sm:$0xff]  }
  0x29   : > { %2470 = vmatpush1.bf16.msra.mxu0 %v4221_v19  ;;  %v4247_v37 = vld [vmem:[%s4915_s12 + $0x124] ss:$16 sps:$4 sm:$0xff]   ;;  %v4251_v39 = vld [vmem:[%s4915_s12 + $0x120] ss:$16 sps:$4 sm:$0xff]  }
  0x2a   : > { %2511 = vmatpush1.bf16.msra.mxu1 %v4222_v20  ;;  %2471 = vmatprep.subr.bf16.mxu0 %v4223_v21  ;;  %v4249_v38 = vld [vmem:[%s4915_s12 + $0x324] ss:$16 sps:$4 sm:$0xff]   ;;  %v4252_v40 = vld [vmem:[%s4915_s12 + $0x320] ss:$16 sps:$4 sm:$0xff]  }
  0x2b   : > { %2512 = vmatprep.subr.bf16.mxu1 %v4225_v22  ;;  %v4253_v41 = vld [vmem:[%s4915_s12 + $0x144] ss:$16 sps:$4 sm:$0xff]   ;;  %v4257_v43 = vld [vmem:[%s4915_s12 + $0x140] ss:$16 sps:$4 sm:$0xff]  }
  0x2c   : > { %v4255_v42 = vld [vmem:[%s4915_s12 + $0x344] ss:$16 sps:$4 sm:$0xff]   ;;  %v4258_v44 = vld [vmem:[%s4915_s12 + $0x340] ss:$16 sps:$4 sm:$0xff]  }
  0x2d   : > { %2472 = vmatpush1.bf16.msra.mxu0 %v4227_v23  ;;  %v4259_v45 = vld [vmem:[%s4915_s12 + $0x164] ss:$16 sps:$4 sm:$0xff]   ;;  %v4263_v50 = vld [vmem:[%s4915_s12 + $0x160] ss:$16 sps:$4 sm:$0xff]  }
  0x2e   : > { %2513 = vmatpush1.bf16.msra.mxu1 %v4228_v24  ;;  %2473 = vmatprep.subr.bf16.mxu0 %v4229_v25  ;;  %v4261_v46 = vld [vmem:[%s4915_s12 + $0x364] ss:$16 sps:$4 sm:$0xff]   ;;  %v4264_v51 = vld [vmem:[%s4915_s12 + $0x360] ss:$16 sps:$4 sm:$0xff]  }
  0x2f   : > { %2514 = vmatprep.subr.bf16.mxu1 %v4231_v26  ;;  %v304_v47 = vld [vmem:[%s4910_s8] sm:$0xff] }
  0x30   : > { %v4965_v48 = vcombine.high %v304_v47, %v304_v47  ;;  %v4265_v53 = vld [vmem:[%s4915_s12 + $0x184] ss:$16 sps:$4 sm:$0xff]   ;;  %v4269_v55 = vld [vmem:[%s4915_s12 + $0x180] ss:$16 sps:$4 sm:$0xff]   ;;  %v4992_v7 = vcombine.low %v304_v47, %v304_v47 }
  0x31   : > { %2474 = vmatpush1.bf16.msra.mxu0 %v4233_v27  ;;  %v4267_v54 = vld [vmem:[%s4915_s12 + $0x384] ss:$16 sps:$4 sm:$0xff]   ;;  %v4270_v56 = vld [vmem:[%s4915_s12 + $0x380] ss:$16 sps:$4 sm:$0xff]  }
  0x32   : > { %2515 = vmatpush1.bf16.msra.mxu1 %v4234_v28  ;;  %2475 = vmatprep.subr.bf16.mxu0 %v4235_v29  ;;  %v4271_v57 = vld [vmem:[%s4915_s12 + $0x1a4] ss:$16 sps:$4 sm:$0xff]   ;;  %v4275_v59 = vld [vmem:[%s4915_s12 + $0x1a0] ss:$16 sps:$4 sm:$0xff]  }
  0x33   : > { %2516 = vmatprep.subr.bf16.mxu1 %v4237_v30  ;;  %2493 = vmatprep.mubr.bf16.mxu0 %v4965_v48  ;;  %v4273_v58 = vld [vmem:[%s4915_s12 + $0x3a4] ss:$16 sps:$4 sm:$0xff]   ;;  %v4276_v60 = vld [vmem:[%s4915_s12 + $0x3a0] ss:$16 sps:$4 sm:$0xff]  }
  0x34   : > { %v4277_v61 = vld [vmem:[%s4915_s12 + $0x1c4] ss:$16 sps:$4 sm:$0xff]   ;;  %v4281_v63 = vld [vmem:[%s4915_s12 + $0x1c0] ss:$16 sps:$4 sm:$0xff]  }
  0x35   : > { %2476 = vmatpush1.bf16.msra.mxu0 %v4239_v31  ;;  %v4279_v62 = vld [vmem:[%s4915_s12 + $0x3c4] ss:$16 sps:$4 sm:$0xff]   ;;  %v4282_v0 = vld [vmem:[%s4915_s12 + $0x3c0] ss:$16 sps:$4 sm:$0xff]  }
  0x36   : > { %2517 = vmatpush1.bf16.msra.mxu1 %v4240_v32  ;;  %2477 = vmatprep.subr.bf16.mxu0 %v4241_v33  ;;  %v4283_v1 = vld [vmem:[%s4915_s12 + $0x1e4] ss:$16 sps:$4 sm:$0xff]   ;;  %v4287_v3 = vld [vmem:[%s4915_s12 + $0x1e0] ss:$16 sps:$4 sm:$0xff]  }
  0x37   : > { %2518 = vmatprep.subr.bf16.mxu1 %v4243_v34  ;;  %v4285_v2 = vld [vmem:[%s4915_s12 + $0x3e4] ss:$16 sps:$4 sm:$0xff]   ;;  %v4288_v4 = vld [vmem:[%s4915_s12 + $0x3e0] ss:$16 sps:$4 sm:$0xff]   ;;  %v5026_v34 = vld [vmem:[%s4910_s8 + $0x18] sm:$0xff] }
  0x38   : > { %v4295_v5 = vld [vmem:[%s4915_s12 + $0x404] ss:$16 sps:$4 sm:$0xff]   ;;  %v4293_v9 = vld [vmem:[%s4915_s12 + $0x400] ss:$16 sps:$4 sm:$0xff]  }
  0x39   : > { %2478 = vmatpush1.bf16.msra.mxu0 %v4245_v35  ;;  %v4298_v6 = vld [vmem:[%s4915_s12 + $0x604] ss:$16 sps:$4 sm:$0xff]   ;;  %v4296_v10 = vld [vmem:[%s4915_s12 + $0x600] ss:$16 sps:$4 sm:$0xff]  }
  0x3a   : > { %2519 = vmatpush1.bf16.msra.mxu1 %v4246_v36  ;;  %2479 = vmatprep.subr.bf16.mxu0 %v4247_v37  ;;  %v4301_v11 = vld [vmem:[%s4915_s12 + $0x424] ss:$16 sps:$4 sm:$0xff]   ;;  %v4299_v13 = vld [vmem:[%s4915_s12 + $0x420] ss:$16 sps:$4 sm:$0xff]  }
  0x3b   : > { %2520 = vmatprep.subr.bf16.mxu1 %v4249_v38  ;;  %v4304_v12 = vld [vmem:[%s4915_s12 + $0x624] ss:$16 sps:$4 sm:$0xff]   ;;  %v4302_v14 = vld [vmem:[%s4915_s12 + $0x620] ss:$16 sps:$4 sm:$0xff]   ;;  %v5036_v38 = vcombine.high %v5026_v34, %v5026_v34 }
  0x3c   : > { %v4307_v15 = vld [vmem:[%s4915_s12 + $0x444] ss:$16 sps:$4 sm:$0xff]   ;;  %v4305_v17 = vld [vmem:[%s4915_s12 + $0x440] ss:$16 sps:$4 sm:$0xff]  }
  0x3d   : > { %2480 = vmatpush1.bf16.msra.mxu0 %v4251_v39  ;;  %v4310_v16 = vld [vmem:[%s4915_s12 + $0x644] ss:$16 sps:$4 sm:$0xff]   ;;  %v4308_v18 = vld [vmem:[%s4915_s12 + $0x640] ss:$16 sps:$4 sm:$0xff]  }
  0x3e   : > { %2521 = vmatpush1.bf16.msra.mxu1 %v4252_v40  ;;  %2481 = vmatprep.subr.bf16.mxu0 %v4253_v41  ;;  %v4313_v19 = vld [vmem:[%s4915_s12 + $0x464] ss:$16 sps:$4 sm:$0xff]   ;;  %v4311_v21 = vld [vmem:[%s4915_s12 + $0x460] ss:$16 sps:$4 sm:$0xff]  }
  0x3f   : > { %2522 = vmatprep.subr.bf16.mxu1 %v4255_v42  ;;  %v4316_v20 = vld [vmem:[%s4915_s12 + $0x664] ss:$16 sps:$4 sm:$0xff]   ;;  %v4314_v22 = vld [vmem:[%s4915_s12 + $0x660] ss:$16 sps:$4 sm:$0xff]  }
  0x40   : > { %v4319_v23 = vld [vmem:[%s4915_s12 + $0x484] ss:$16 sps:$4 sm:$0xff]   ;;  %v4317_v25 = vld [vmem:[%s4915_s12 + $0x480] ss:$16 sps:$4 sm:$0xff]  }
  0x41   : > { %2482 = vmatpush1.bf16.msra.mxu0 %v4257_v43  ;;  %v4322_v24 = vld [vmem:[%s4915_s12 + $0x684] ss:$16 sps:$4 sm:$0xff]   ;;  %v4320_v26 = vld [vmem:[%s4915_s12 + $0x680] ss:$16 sps:$4 sm:$0xff]  }
  0x42   : > { %2523 = vmatpush1.bf16.msra.mxu1 %v4258_v44  ;;  %2483 = vmatprep.subr.bf16.mxu0 %v4259_v45  ;;  %v4325_v27 = vld [vmem:[%s4915_s12 + $0x4a4] ss:$16 sps:$4 sm:$0xff]   ;;  %v4323_v29 = vld [vmem:[%s4915_s12 + $0x4a0] ss:$16 sps:$4 sm:$0xff]  }
  0x43   : > { %2524 = vmatprep.subr.bf16.mxu1 %v4261_v46  ;;  %v4328_v28 = vld [vmem:[%s4915_s12 + $0x6a4] ss:$16 sps:$4 sm:$0xff]   ;;  %v4326_v30 = vld [vmem:[%s4915_s12 + $0x6a0] ss:$16 sps:$4 sm:$0xff]  }
  0x44   : > { %v4331_v31 = vld [vmem:[%s4915_s12 + $0x4c4] ss:$16 sps:$4 sm:$0xff]   ;;  %v4329_v35 = vld [vmem:[%s4915_s12 + $0x4c0] ss:$16 sps:$4 sm:$0xff]  }
  0x45   : > { %2484 = vmatpush1.bf16.msra.mxu0 %v4263_v50  ;;  %v4334_v32 = vld [vmem:[%s4915_s12 + $0x6c4] ss:$16 sps:$4 sm:$0xff]   ;;  %v4332_v36 = vld [vmem:[%s4915_s12 + $0x6c0] ss:$16 sps:$4 sm:$0xff]  }
  0x46   : > { %2525 = vmatpush1.bf16.msra.mxu1 %v4264_v51  ;;  %2485 = vmatprep.subr.bf16.mxu0 %v4265_v53  ;;  %v5023_v33 = vld [vmem:[%s4910_s8 + $0x10] sm:$0xff] }
  0x47   : > { %2526 = vmatprep.subr.bf16.mxu1 %v4267_v54  ;;  %v5032_v37 = vcombine.high %v5023_v33, %v5023_v33  ;;  %v4337_v39 = vld [vmem:[%s4915_s12 + $0x4e4] ss:$16 sps:$4 sm:$0xff]   ;;  %v4335_v41 = vld [vmem:[%s4915_s12 + $0x4e0] ss:$16 sps:$4 sm:$0xff]  }
  0x48   : > { %v4340_v40 = vld [vmem:[%s4915_s12 + $0x6e4] ss:$16 sps:$4 sm:$0xff]   ;;  %v4338_v42 = vld [vmem:[%s4915_s12 + $0x6e0] ss:$16 sps:$4 sm:$0xff]  }
  0x49   : > { %2486 = vmatpush1.bf16.msra.mxu0 %v4269_v55  ;;  %v4343_v43 = vld [vmem:[%s4915_s12 + $0x504] ss:$16 sps:$4 sm:$0xff]   ;;  %v4341_v45 = vld [vmem:[%s4915_s12 + $0x500] ss:$16 sps:$4 sm:$0xff]  }
  0x4a   : > { %2527 = vmatpush1.bf16.msra.mxu1 %v4270_v56  ;;  %2487 = vmatprep.subr.bf16.mxu0 %v4271_v57  ;;  %v4346_v44 = vld [vmem:[%s4915_s12 + $0x704] ss:$16 sps:$4 sm:$0xff]   ;;  %v4344_v46 = vld [vmem:[%s4915_s12 + $0x700] ss:$16 sps:$4 sm:$0xff]  }
  0x4b   : > { %2528 = vmatprep.subr.bf16.mxu1 %v4273_v58  ;;  %v4349_v47 = vld [vmem:[%s4915_s12 + $0x524] ss:$16 sps:$4 sm:$0xff]   ;;  %v4347_v50 = vld [vmem:[%s4915_s12 + $0x520] ss:$16 sps:$4 sm:$0xff]  }
  0x4c   : > { %v4352_v49 = vld [vmem:[%s4915_s12 + $0x724] ss:$16 sps:$4 sm:$0xff]   ;;  %v4350_v51 = vld [vmem:[%s4915_s12 + $0x720] ss:$16 sps:$4 sm:$0xff]  }
  0x4d   : > { %2488 = vmatpush1.bf16.msra.mxu0 %v4275_v59  ;;  %v4355_v53 = vld [vmem:[%s4915_s12 + $0x544] ss:$16 sps:$4 sm:$0xff]   ;;  %v4353_v55 = vld [vmem:[%s4915_s12 + $0x540] ss:$16 sps:$4 sm:$0xff]  }
  0x4e   : > { %2529 = vmatpush1.bf16.msra.mxu1 %v4276_v60  ;;  %2489 = vmatprep.subr.bf16.mxu0 %v4277_v61  ;;  %v4358_v54 = vld [vmem:[%s4915_s12 + $0x744] ss:$16 sps:$4 sm:$0xff]   ;;  %v4356_v56 = vld [vmem:[%s4915_s12 + $0x740] ss:$16 sps:$4 sm:$0xff]  }
  0x4f   : > { %2530 = vmatprep.subr.bf16.mxu1 %v4279_v62  ;;  %v4361_v57 = vld [vmem:[%s4915_s12 + $0x564] ss:$16 sps:$4 sm:$0xff]   ;;  %v4359_v59 = vld [vmem:[%s4915_s12 + $0x560] ss:$16 sps:$4 sm:$0xff]  }
  0x50   : > { %v4364_v58 = vld [vmem:[%s4915_s12 + $0x764] ss:$16 sps:$4 sm:$0xff]   ;;  %v4362_v60 = vld [vmem:[%s4915_s12 + $0x760] ss:$16 sps:$4 sm:$0xff]  }
  0x51   : > { %2490 = vmatpush1.bf16.msra.mxu0 %v4281_v63  ;;  %v4367_v61 = vld [vmem:[%s4915_s12 + $0x584] ss:$16 sps:$4 sm:$0xff]   ;;  %v4365_v63 = vld [vmem:[%s4915_s12 + $0x580] ss:$16 sps:$4 sm:$0xff]  }
  0x52   : > { %2531 = vmatpush1.bf16.msra.mxu1 %v4282_v0  ;;  %2491 = vmatprep.subr.bf16.mxu0 %v4283_v1  ;;  %v4370_v62 = vld [vmem:[%s4915_s12 + $0x784] ss:$16 sps:$4 sm:$0xff]   ;;  %v4368_v0 = vld [vmem:[%s4915_s12 + $0x780] ss:$16 sps:$4 sm:$0xff]  }
  0x53   : > { %2532 = vmatprep.subr.bf16.mxu1 %v4285_v2  ;;  %v4373_v1 = vld [vmem:[%s4915_s12 + $0x5a4] ss:$16 sps:$4 sm:$0xff]  }
  0x54   : > { %v4376_v2 = vld [vmem:[%s4915_s12 + $0x7a4] ss:$16 sps:$4 sm:$0xff]  }
  0x55   : > { %2492 = vmatpush1.bf16.msra.mxu0 %v4287_v3  ;;  %v4371_v3 = vld [vmem:[%s4915_s12 + $0x5a0] ss:$16 sps:$4 sm:$0xff]  }
  0x56   : > { %2533 = vmatpush1.bf16.msra.mxu1 %v4288_v4  ;;  %2543 = vmatprep.subr.bf16.mxu0 %v4295_v5  ;;  %v4374_v4 = vld [vmem:[%s4915_s12 + $0x7a0] ss:$16 sps:$4 sm:$0xff]   ;;  %v4379_v5 = vld [vmem:[%s4915_s12 + $0x5c4] ss:$16 sps:$4 sm:$0xff]  }
  0x57   : > { %2584 = vmatprep.subr.bf16.mxu1 %v4298_v6  ;;  %v4382_v6 = vld [vmem:[%s4915_s12 + $0x7c4] ss:$16 sps:$4 sm:$0xff]  }
  0x58   : > { %2494 = vmatmul.mubr.bf16.vlgmr.msra.gmra.mrb[0].mxu0 %v4992_v7 }
  0x59   : > { %2535 = vmatmul.mubr.bf16.vlgmr.msra.gmra.mrb[0].mxu1 %v4994_v8  ;;  %2544 = vmatpush1.bf16.msra.mxu0 %v4293_v9  ;;  %v4377_v9 = vld [vmem:[%s4915_s12 + $0x5c0] ss:$16 sps:$4 sm:$0xff]  }
  0x5a   : > { %2585 = vmatpush1.bf16.msra.mxu1 %v4296_v10  ;;  %2545 = vmatprep.subr.bf16.mxu0 %v4301_v11  ;;  %v4380_v10 = vld [vmem:[%s4915_s12 + $0x7c0] ss:$16 sps:$4 sm:$0xff]   ;;  %v4385_v11 = vld [vmem:[%s4915_s12 + $0x5e4] ss:$16 sps:$4 sm:$0xff]  }
  0x5b   : > { %2586 = vmatprep.subr.bf16.mxu1 %v4304_v12  ;;  %2575 = vmatprep.mubr.bf16.mxu0 %v5032_v37  ;;  %v4388_v12 = vld [vmem:[%s4915_s12 + $0x7e4] ss:$16 sps:$4 sm:$0xff]  }
  0x5c   : > { %2616 = vmatprep.mubr.bf16.mxu1 %v5036_v38 }
  0x5d   : > { %2546 = vmatpush1.bf16.msra.mxu0 %v4299_v13  ;;  %v4383_v13 = vld [vmem:[%s4915_s12 + $0x5e0] ss:$16 sps:$4 sm:$0xff]  }
  0x5e   : > { %2587 = vmatpush1.bf16.msra.mxu1 %v4302_v14  ;;  %2547 = vmatprep.subr.bf16.mxu0 %v4307_v15  ;;  %v4386_v14 = vld [vmem:[%s4915_s12 + $0x7e0] ss:$16 sps:$4 sm:$0xff]   ;;  %v4395_v15 = vld [vmem:[%s4915_s12 + $0x804] ss:$16 sps:$4 sm:$0xff]  }
  0x5f   : > { %2588 = vmatprep.subr.bf16.mxu1 %v4310_v16  ;;  %v4398_v16 = vld [vmem:[%s4915_s12 + $0xa04] ss:$16 sps:$4 sm:$0xff]  }
  0x61   : > { %2548 = vmatpush1.bf16.msra.mxu0 %v4305_v17  ;;  %v5080_v17 = vcombine.low %v5023_v33, %v5023_v33  ;;  %v4416_v33 = vld [vmem:[%s4915_s12 + $0xa64] ss:$16 sps:$4 sm:$0xff]  }
  0x62   : > { %2589 = vmatpush1.bf16.msra.mxu1 %v4308_v18  ;;  %2549 = vmatprep.subr.bf16.mxu0 %v4313_v19  ;;  %v5084_v18 = vcombine.low %v5026_v34, %v5026_v34  ;;  %v4393_v19 = vld [vmem:[%s4915_s12 + $0x800] ss:$16 sps:$4 sm:$0xff]  }
  0x63   : > { %2590 = vmatprep.subr.bf16.mxu1 %v4316_v20  ;;  %v4396_v20 = vld [vmem:[%s4915_s12 + $0xa00] ss:$16 sps:$4 sm:$0xff]  }
  0x64   : > { %v4411_v34 = vld [vmem:[%s4915_s12 + $0x860] ss:$16 sps:$4 sm:$0xff]  }
  0x65   : > { %2550 = vmatpush1.bf16.msra.mxu0 %v4311_v21  ;;  %v4401_v21 = vld [vmem:[%s4915_s12 + $0x824] ss:$16 sps:$4 sm:$0xff]  }
  0x66   : > { %2591 = vmatpush1.bf16.msra.mxu1 %v4314_v22  ;;  %2551 = vmatprep.subr.bf16.mxu0 %v4319_v23  ;;  %v4404_v22 = vld [vmem:[%s4915_s12 + $0xa24] ss:$16 sps:$4 sm:$0xff]  }
  0x67   : > { %2592 = vmatprep.subr.bf16.mxu1 %v4322_v24  ;;  %v5091_v23 = vld [vmem:[%s4910_s8 + $0x20] sm:$0xff] }
  0x68   : > { %v4399_v24 = vld [vmem:[%s4915_s12 + $0x820] ss:$16 sps:$4 sm:$0xff]  }
  0x69   : > { %2552 = vmatpush1.bf16.msra.mxu0 %v4317_v25  ;;  %v5098_v25 = vcombine.high %v5091_v23, %v5091_v23 }
  0x6a   : > { %2593 = vmatpush1.bf16.msra.mxu1 %v4320_v26  ;;  %2553 = vmatprep.subr.bf16.mxu0 %v4325_v27  ;;  %v4402_v26 = vld [vmem:[%s4915_s12 + $0xa20] ss:$16 sps:$4 sm:$0xff]   ;;  %v4407_v27 = vld [vmem:[%s4915_s12 + $0x844] ss:$16 sps:$4 sm:$0xff]  }
  0x6b   : > { %2594 = vmatprep.subr.bf16.mxu1 %v4328_v28  ;;  %v4410_v28 = vld [vmem:[%s4915_s12 + $0xa44] ss:$16 sps:$4 sm:$0xff]  }
  0x6d   : > { %2554 = vmatpush1.bf16.msra.mxu0 %v4323_v29  ;;  %v4854_v29 = vmov 0  }
  0x6e   : > { %2595 = vmatpush1.bf16.msra.mxu1 %v4326_v30  ;;  %2555 = vmatprep.subr.bf16.mxu0 %v4331_v31  ;;  %v4405_v30 = vld [vmem:[%s4915_s12 + $0x840] ss:$16 sps:$4 sm:$0xff]  }
  0x6f   : > { %2596 = vmatprep.subr.bf16.mxu1 %v4334_v32  ;;  %v4408_v31 = vld [vmem:[%s4915_s12 + $0xa40] ss:$16 sps:$4 sm:$0xff]   ;;  %v4413_v32 = vld [vmem:[%s4915_s12 + $0x864] ss:$16 sps:$4 sm:$0xff]  }
  0x71   : > { %2556 = vmatpush1.bf16.msra.mxu0 %v4329_v35  ;;  %v4414_v35 = vld [vmem:[%s4915_s12 + $0xa60] ss:$16 sps:$4 sm:$0xff]  }
  0x72   : > { %2597 = vmatpush1.bf16.msra.mxu1 %v4332_v36  ;;  %2557 = vmatprep.subr.bf16.mxu0 %v4337_v39  ;;  %v4419_v36 = vld [vmem:[%s4915_s12 + $0x884] ss:$16 sps:$4 sm:$0xff]  }
  0x73   : > { %2598 = vmatprep.subr.bf16.mxu1 %v4340_v40  ;;  %v4422_v39 = vld [vmem:[%s4915_s12 + $0xa84] ss:$16 sps:$4 sm:$0xff]   ;;  %v4417_v40 = vld [vmem:[%s4915_s12 + $0x880] ss:$16 sps:$4 sm:$0xff]  }
  0x75   : > { %2558 = vmatpush1.bf16.msra.mxu0 %v4335_v41  ;;  %v4420_v41 = vld [vmem:[%s4915_s12 + $0xa80] ss:$16 sps:$4 sm:$0xff]  }
  0x76   : > { %2599 = vmatpush1.bf16.msra.mxu1 %v4338_v42  ;;  %2559 = vmatprep.subr.bf16.mxu0 %v4343_v43  ;;  %v4425_v42 = vld [vmem:[%s4915_s12 + $0x8a4] ss:$16 sps:$4 sm:$0xff]  }
  0x77   : > { %2600 = vmatprep.subr.bf16.mxu1 %v4346_v44  ;;  %v4428_v43 = vld [vmem:[%s4915_s12 + $0xaa4] ss:$16 sps:$4 sm:$0xff]   ;;  %v4423_v44 = vld [vmem:[%s4915_s12 + $0x8a0] ss:$16 sps:$4 sm:$0xff]  }
  0x79   : > { %2560 = vmatpush1.bf16.msra.mxu0 %v4341_v45  ;;  %v4426_v45 = vld [vmem:[%s4915_s12 + $0xaa0] ss:$16 sps:$4 sm:$0xff]  }
  0x7a   : > { %2601 = vmatpush1.bf16.msra.mxu1 %v4344_v46  ;;  %2561 = vmatprep.subr.bf16.mxu0 %v4349_v47  ;;  %v4431_v46 = vld [vmem:[%s4915_s12 + $0x8c4] ss:$16 sps:$4 sm:$0xff]  }
  0x7b   : > { %2602 = vmatprep.subr.bf16.mxu1 %v4352_v49  ;;  %v4434_v47 = vld [vmem:[%s4915_s12 + $0xac4] ss:$16 sps:$4 sm:$0xff]   ;;  %v4429_v49 = vld [vmem:[%s4915_s12 + $0x8c0] ss:$16 sps:$4 sm:$0xff]  }
  0x7d   : > { %2562 = vmatpush1.bf16.msra.mxu0 %v4347_v50  ;;  %v4432_v50 = vld [vmem:[%s4915_s12 + $0xac0] ss:$16 sps:$4 sm:$0xff]  }
  0x7e   : > { %2603 = vmatpush1.bf16.msra.mxu1 %v4350_v51  ;;  %2563 = vmatprep.subr.bf16.mxu0 %v4355_v53  ;;  %v4437_v51 = vld [vmem:[%s4915_s12 + $0x8e4] ss:$16 sps:$4 sm:$0xff]  }
  0x7f   : > { %2604 = vmatprep.subr.bf16.mxu1 %v4358_v54  ;;  %v4440_v53 = vld [vmem:[%s4915_s12 + $0xae4] ss:$16 sps:$4 sm:$0xff]   ;;  %v4435_v54 = vld [vmem:[%s4915_s12 + $0x8e0] ss:$16 sps:$4 sm:$0xff]  }
  0x81   : > { %2564 = vmatpush1.bf16.msra.mxu0 %v4353_v55  ;;  %v4438_v55 = vld [vmem:[%s4915_s12 + $0xae0] ss:$16 sps:$4 sm:$0xff]  }
  0x82   : > { %2605 = vmatpush1.bf16.msra.mxu1 %v4356_v56  ;;  %2565 = vmatprep.subr.bf16.mxu0 %v4361_v57  ;;  %v4443_v56 = vld [vmem:[%s4915_s12 + $0x904] ss:$16 sps:$4 sm:$0xff]   ;;  %v4447_v57 = vld [vmem:[%s4915_s12 + $0xc] ss:$16 sps:$4 sm:$0xff]  }
  0x83   : > { %2606 = vmatprep.subr.bf16.mxu1 %v4364_v58  ;;  %v4441_v58 = vld [vmem:[%s4915_s12 + $0x900] ss:$16 sps:$4 sm:$0xff]  }
  0x85   : > { %2566 = vmatpush1.bf16.msra.mxu0 %v4359_v59  ;;  %v4444_v59 = vld [vmem:[%s4910_s8 + $0x28] ss:$0 sps:$4 sm:$0xff]  }
  0x86   : > { %2607 = vmatpush1.bf16.msra.mxu1 %v4362_v60  ;;  %2567 = vmatprep.subr.bf16.mxu0 %v4367_v61  ;;  %v4445_v60 = vld [vmem:[%s4915_s12 + $0x8] ss:$16 sps:$4 sm:$0xff]   ;;  %v4450_v61 = vld [vmem:[%s4915_s12 + $0x924] ss:$16 sps:$4 sm:$0xff]  }
  0x87   : > { %2608 = vmatprep.subr.bf16.mxu1 %v4370_v62  ;;  %v4453_v62 = vld [vmem:[%s4915_s12 + $0x2c] ss:$16 sps:$4 sm:$0xff]  }
  0x89   : > { %2568 = vmatpush1.bf16.msra.mxu0 %v4365_v63  ;;  %v4448_v63 = vld [vmem:[%s4915_s12 + $0x920] ss:$16 sps:$4 sm:$0xff]  }
  0x8a   : > { %2609 = vmatpush1.bf16.msra.mxu1 %v4368_v0  ;;  %2569 = vmatprep.subr.bf16.mxu0 %v4373_v1  ;;  %v4451_v0 = vld [vmem:[%s4915_s12 + $0x28] ss:$16 sps:$4 sm:$0xff]   ;;  %v4456_v1 = vld [vmem:[%s4915_s12 + $0x944] ss:$16 sps:$4 sm:$0xff]  }
  0x8b   : > { %2610 = vmatprep.subr.bf16.mxu1 %v4376_v2  ;;  %v4459_v2 = vld [vmem:[%s4915_s12 + $0x4c] ss:$16 sps:$4 sm:$0xff]  }
  0x8d   : > { %2570 = vmatpush1.bf16.msra.mxu0 %v4371_v3  ;;  %v4454_v3 = vld [vmem:[%s4915_s12 + $0x940] ss:$16 sps:$4 sm:$0xff]  }
  0x8e   : > { %2611 = vmatpush1.bf16.msra.mxu1 %v4374_v4  ;;  %2571 = vmatprep.subr.bf16.mxu0 %v4379_v5  ;;  %v4457_v4 = vld [vmem:[%s4915_s12 + $0x48] ss:$16 sps:$4 sm:$0xff]   ;;  %v4462_v5 = vld [vmem:[%s4915_s12 + $0x964] ss:$16 sps:$4 sm:$0xff]  }
  0x8f   : > { %2612 = vmatprep.subr.bf16.mxu1 %v4382_v6  ;;  %v4465_v6 = vld [vmem:[%s4915_s12 + $0x6c] ss:$16 sps:$4 sm:$0xff]  }
  0x91   : > { %2572 = vmatpush1.bf16.msra.mxu0 %v4377_v9  ;;  %v4460_v9 = vld [vmem:[%s4915_s12 + $0x960] ss:$16 sps:$4 sm:$0xff]  }
  0x92   : > { %2613 = vmatpush1.bf16.msra.mxu1 %v4380_v10  ;;  %2573 = vmatprep.subr.bf16.mxu0 %v4385_v11  ;;  %v4463_v10 = vld [vmem:[%s4915_s12 + $0x68] ss:$16 sps:$4 sm:$0xff]   ;;  %v4471_v11 = vld [vmem:[%s4915_s12 + $0x8c] ss:$16 sps:$4 sm:$0xff]  }
  0x93   : > { %2614 = vmatprep.subr.bf16.mxu1 %v4388_v12  ;;  %v4466_v12 = vld [vmem:[%s4915_s12 + $0x980] ss:$16 sps:$4 sm:$0xff]  }
  0x95   : > { %2574 = vmatpush1.bf16.msra.mxu0 %v4383_v13  ;;  %v4469_v13 = vld [vmem:[%s4915_s12 + $0x88] ss:$16 sps:$4 sm:$0xff]  }
  0x96   : > { %2615 = vmatpush1.bf16.msra.mxu1 %v4386_v14  ;;  %2625 = vmatprep.subr.bf16.mxu0 %v4395_v15  ;;  %v4474_v14 = vld [vmem:[%s4915_s12 + $0x9a4] ss:$16 sps:$4 sm:$0xff]   ;;  %v4477_v15 = vld [vmem:[%s4915_s12 + $0xac] ss:$16 sps:$4 sm:$0xff]  }
  0x97   : > { %2666 = vmatprep.subr.bf16.mxu1 %v4398_v16  ;;  %v4472_v16 = vld [vmem:[%s4915_s12 + $0x9a0] ss:$16 sps:$4 sm:$0xff]  }
  0x98   : > { %2576 = vmatmul.mubr.bf16.vlgmr.msra.gmra.mrb[4].mxu0 %v5080_v17 }
  0x99   : > { %2617 = vmatmul.mubr.bf16.vlgmr.msra.gmra.mrb[4].mxu1 %v5084_v18  ;;  %2626 = vmatpush1.bf16.msra.mxu0 %v4393_v19  ;;  %v4475_v19 = vld [vmem:[%s4915_s12 + $0xa8] ss:$16 sps:$4 sm:$0xff]  }
  0x9a   : > { %2667 = vmatpush1.bf16.msra.mxu1 %v4396_v20  ;;  %2627 = vmatprep.subr.bf16.mxu0 %v4401_v21  ;;  %v4480_v20 = vld [vmem:[%s4915_s12 + $0x9c4] ss:$16 sps:$4 sm:$0xff]   ;;  %v4483_v21 = vld [vmem:[%s4915_s12 + $0xcc] ss:$16 sps:$4 sm:$0xff]  }
  0x9b   : > { %2668 = vmatprep.subr.bf16.mxu1 %v4404_v22  ;;  %2698 = vmatprep.mubr.bf16.mxu1 %v4854_v29  ;;  %v4478_v22 = vld [vmem:[%s4915_s12 + $0x9c0] ss:$16 sps:$4 sm:$0xff]  }
  0x9c   : > { %2657 = vmatprep.mubr.bf16.mxu0 %v5098_v25 }
  0x9d   : > { %2628 = vmatpush1.bf16.msra.mxu0 %v4399_v24  ;;  %v4481_v24 = vld [vmem:[%s4915_s12 + $0xc8] ss:$16 sps:$4 sm:$0xff]  }
  0x9e   : > { %2669 = vmatpush1.bf16.msra.mxu1 %v4402_v26  ;;  %2629 = vmatprep.subr.bf16.mxu0 %v4407_v27  ;;  %v4486_v26 = vld [vmem:[%s4915_s12 + $0x9e4] ss:$16 sps:$4 sm:$0xff]   ;;  %v4489_v27 = vld [vmem:[%s4915_s12 + $0xec] ss:$16 sps:$4 sm:$0xff]  }
  0x9f   : > { %2670 = vmatprep.subr.bf16.mxu1 %v4410_v28  ;;  %v4484_v28 = vld [vmem:[%s4915_s12 + $0x9e0] ss:$16 sps:$4 sm:$0xff]  }
  0xa1   : > { %2630 = vmatpush1.bf16.msra.mxu0 %v4405_v30  ;;  %v4487_v30 = vld [vmem:[%s4915_s12 + $0xe8] ss:$16 sps:$4 sm:$0xff]  }
  0xa2   : > { %2671 = vmatpush1.bf16.msra.mxu1 %v4408_v31  ;;  %2631 = vmatprep.subr.bf16.mxu0 %v4413_v32  ;;  %v4494_v31 = vld [vmem:[%s4915_s12 + $0x10c] ss:$16 sps:$4 sm:$0xff]  }
  0xa3   : > { %2672 = vmatprep.subr.bf16.mxu1 %v4416_v33  ;;  %v4497_v32 = vld [vmem:[%s4915_s12 + $0x20c] ss:$16 sps:$4 sm:$0xff]   ;;  %v5165_v33 = vcombine.low %v5091_v23, %v5091_v23  ;;  %v4501_v23 = vld [vmem:[%s4915_s12 + $0x228] ss:$16 sps:$4 sm:$0xff]  }
  0xa5   : > { %2632 = vmatpush1.bf16.msra.mxu0 %v4411_v34  ;;  %v4492_v34 = vld [vmem:[%s4915_s12 + $0x108] ss:$16 sps:$4 sm:$0xff]  }
  0xa6   : > { %2673 = vmatpush1.bf16.msra.mxu1 %v4414_v35  ;;  %2633 = vmatprep.subr.bf16.mxu0 %v4419_v36  ;;  %v4495_v35 = vld [vmem:[%s4915_s12 + $0x208] ss:$16 sps:$4 sm:$0xff]   ;;  %v4500_v36 = vld [vmem:[%s4915_s12 + $0x12c] ss:$16 sps:$4 sm:$0xff]  }
  0xa7   : > { %2674 = vmatprep.subr.bf16.mxu1 %v4422_v39  ;;  %v4503_v39 = vld [vmem:[%s4915_s12 + $0x22c] ss:$16 sps:$4 sm:$0xff]  }
  0xa9   : > { %2634 = vmatpush1.bf16.msra.mxu0 %v4417_v40  ;;  %v4498_v40 = vld [vmem:[%s4915_s12 + $0x128] ss:$16 sps:$4 sm:$0xff]  }
  0xaa   : > { %2675 = vmatpush1.bf16.msra.mxu1 %v4420_v41  ;;  %2635 = vmatprep.subr.bf16.mxu0 %v4425_v42  ;;  %v4506_v41 = vld [vmem:[%s4915_s12 + $0x14c] ss:$16 sps:$4 sm:$0xff]  }
  0xab   : > { %2676 = vmatprep.subr.bf16.mxu1 %v4428_v43  ;;  %v4509_v42 = vld [vmem:[%s4915_s12 + $0x24c] ss:$16 sps:$4 sm:$0xff]   ;;  %v4504_v43 = vld [vmem:[%s4915_s12 + $0x148] ss:$16 sps:$4 sm:$0xff]  }
  0xad   : > { %2636 = vmatpush1.bf16.msra.mxu0 %v4423_v44  ;;  %v4507_v44 = vld [vmem:[%s4915_s12 + $0x248] ss:$16 sps:$4 sm:$0xff]  }
  0xae   : > { %2677 = vmatpush1.bf16.msra.mxu1 %v4426_v45  ;;  %2637 = vmatprep.subr.bf16.mxu0 %v4431_v46  ;;  %v4512_v45 = vld [vmem:[%s4915_s12 + $0x16c] ss:$16 sps:$4 sm:$0xff]  }
  0xaf   : > { %2678 = vmatprep.subr.bf16.mxu1 %v4434_v47  ;;  %v4515_v46 = vld [vmem:[%s4915_s12 + $0x26c] ss:$16 sps:$4 sm:$0xff]   ;;  %v4510_v47 = vld [vmem:[%s4915_s12 + $0x168] ss:$16 sps:$4 sm:$0xff]  }
  0xb1   : > { %2638 = vmatpush1.bf16.msra.mxu0 %v4429_v49  ;;  %v4513_v49 = vld [vmem:[%s4915_s12 + $0x268] ss:$16 sps:$4 sm:$0xff]  }
  0xb2   : > { %2679 = vmatpush1.bf16.msra.mxu1 %v4432_v50  ;;  %2639 = vmatprep.subr.bf16.mxu0 %v4437_v51  ;;  %v4521_v50 = vld [vmem:[%s4915_s12 + $0x28c] ss:$16 sps:$4 sm:$0xff]   ;;  %v4516_v51 = vld [vmem:[%s4915_s12 + $0x188] ss:$16 sps:$4 sm:$0xff]  }
  0xb3   : > { %2680 = vmatprep.subr.bf16.mxu1 %v4440_v53  ;;  %v4519_v53 = vld [vmem:[%s4915_s12 + $0x288] ss:$16 sps:$4 sm:$0xff]  }
  0xb5   : > { %2640 = vmatpush1.bf16.msra.mxu0 %v4435_v54  ;;  %v4524_v54 = vld [vmem:[%s4915_s12 + $0x1ac] ss:$16 sps:$4 sm:$0xff]  }
  0xb6   : > { %2681 = vmatpush1.bf16.msra.mxu1 %v4438_v55  ;;  %2641 = vmatprep.subr.bf16.mxu0 %v4443_v56  ;;  %v4527_v55 = vld [vmem:[%s4915_s12 + $0x2ac] ss:$16 sps:$4 sm:$0xff]   ;;  %v4522_v56 = vld [vmem:[%s4915_s12 + $0x1a8] ss:$16 sps:$4 sm:$0xff]  }
  0xb7   : > { %2707 = vmatprep.subr.bf16.mxu1 %v4447_v57  ;;  %v4525_v57 = vld [vmem:[%s4915_s12 + $0x2a8] ss:$16 sps:$4 sm:$0xff]  }
  0xb9   : > { %2699 = vmatmul.mubr.bf16.vlgmr.msra.gmra.mrb[8].mxu1 %v4444_v59  ;;  %2642 = vmatpush1.bf16.msra.mxu0 %v4441_v58  ;;  %v4530_v58 = vld [vmem:[%s4915_s12 + $0x1cc] ss:$16 sps:$4 sm:$0xff]  }
  0xba   : > { %2708 = vmatpush1.bf16.msra.mxu1 %v4445_v60  ;;  %2643 = vmatprep.subr.bf16.mxu0 %v4450_v61  ;;  %v4533_v59 = vld [vmem:[%s4915_s12 + $0x2cc] ss:$16 sps:$4 sm:$0xff]   ;;  %v4528_v60 = vld [vmem:[%s4915_s12 + $0x1c8] ss:$16 sps:$4 sm:$0xff]  }
  0xbb   : > { %2709 = vmatprep.subr.bf16.mxu1 %v4453_v62  ;;  %2739 = vmatprep.mubr.bf16.mxu1 %v4965_v48  ;;  %v4468_v48 = vld [vmem:[%s4915_s12 + $0x984] ss:$16 sps:$4 sm:$0xff]   ;;  %v4531_v61 = vld [vmem:[%s4915_s12 + $0x2c8] ss:$16 sps:$4 sm:$0xff]   ;;  %v4536_v62 = vld [vmem:[%s4915_s12 + $0x1ec] ss:$16 sps:$4 sm:$0xff]  }
  0xbd   : > { %2644 = vmatpush1.bf16.msra.mxu0 %v4448_v63  ;;  %v4539_v63 = vld [vmem:[%s4915_s12 + $0x2ec] ss:$16 sps:$4 sm:$0xff]  }
  0xbe   : > { %2710 = vmatpush1.bf16.msra.mxu1 %v4451_v0  ;;  %2645 = vmatprep.subr.bf16.mxu0 %v4456_v1  ;;  %v4534_v0 = vld [vmem:[%s4915_s12 + $0x1e8] ss:$16 sps:$4 sm:$0xff]  }
  0xbf   : > { %2711 = vmatprep.subr.bf16.mxu1 %v4459_v2  ;;  %v4537_v1 = vld [vmem:[%s4915_s12 + $0x2e8] ss:$16 sps:$4 sm:$0xff]   ;;  %v4542_v2 = vld [vmem:[%s4915_s12 + $0x30c] ss:$16 sps:$4 sm:$0xff]  }
  0xc1   : > { %2646 = vmatpush1.bf16.msra.mxu0 %v4454_v3  ;;  %v4545_v3 = vld [vmem:[%s4915_s12 + $0x40c] ss:$16 sps:$4 sm:$0xff]  }
  0xc2   : > { %2712 = vmatpush1.bf16.msra.mxu1 %v4457_v4  ;;  %2647 = vmatprep.subr.bf16.mxu0 %v4462_v5  ;;  %v4540_v4 = vld [vmem:[%s4915_s12 + $0x308] ss:$16 sps:$4 sm:$0xff]  }
  0xc3   : > { %2713 = vmatprep.subr.bf16.mxu1 %v4465_v6  ;;  %v4543_v5 = vld [vmem:[%s4915_s12 + $0x408] ss:$16 sps:$4 sm:$0xff]   ;;  %v4548_v6 = vld [vmem:[%s4915_s12 + $0x32c] ss:$16 sps:$4 sm:$0xff]  }
  0xc5   : > { %2648 = vmatpush1.bf16.msra.mxu0 %v4460_v9  ;;  %v4551_v9 = vld [vmem:[%s4915_s12 + $0x42c] ss:$16 sps:$4 sm:$0xff]  }
  0xc6   : > { %2714 = vmatpush1.bf16.msra.mxu1 %v4463_v10  ;;  %2649 = vmatprep.subr.bf16.mxu0 %v4468_v48  ;;  %v4546_v10 = vld [vmem:[%s4915_s12 + $0x328] ss:$16 sps:$4 sm:$0xff]  }
  0xc7   : > { %2715 = vmatprep.subr.bf16.mxu1 %v4471_v11  ;;  %v4549_v48 = vld [vmem:[%s4915_s12 + $0x428] ss:$16 sps:$4 sm:$0xff]   ;;  %v4554_v11 = vld [vmem:[%s4915_s12 + $0x34c] ss:$16 sps:$4 sm:$0xff]  }
  0xc9   : > { %2650 = vmatpush1.bf16.msra.mxu0 %v4466_v12  ;;  %v4557_v12 = vld [vmem:[%s4915_s12 + $0x44c] ss:$16 sps:$4 sm:$0xff]  }
  0xca   : > { %2716 = vmatpush1.bf16.msra.mxu1 %v4469_v13  ;;  %2651 = vmatprep.subr.bf16.mxu0 %v4474_v14  ;;  %v4552_v13 = vld [vmem:[%s4915_s12 + $0x348] ss:$16 sps:$4 sm:$0xff]   ;;  %v4560_v14 = vld [vmem:[%s4915_s12 + $0x36c] ss:$16 sps:$4 sm:$0xff]  }
  0xcb   : > { %2717 = vmatprep.subr.bf16.mxu1 %v4477_v15  ;;  %v4563_v15 = vld [vmem:[%s4915_s12 + $0x46c] ss:$16 sps:$4 sm:$0xff]  }
  0xcd   : > { %2652 = vmatpush1.bf16.msra.mxu0 %v4472_v16  ;;  %v4558_v16 = vld [vmem:[%s4915_s12 + $0x368] ss:$16 sps:$4 sm:$0xff]  }
  0xce   : > { %2718 = vmatpush1.bf16.msra.mxu1 %v4475_v19  ;;  %2653 = vmatprep.subr.bf16.mxu0 %v4480_v20  ;;  %v4561_v19 = vld [vmem:[%s4915_s12 + $0x468] ss:$16 sps:$4 sm:$0xff]   ;;  %v4569_v20 = vld [vmem:[%s4915_s12 + $0x48c] ss:$16 sps:$4 sm:$0xff]  }
  0xcf   : > { %2719 = vmatprep.subr.bf16.mxu1 %v4483_v21  ;;  %v4564_v21 = vld [vmem:[%s4915_s12 + $0x388] ss:$16 sps:$4 sm:$0xff]  }
  0xd1   : > { %2654 = vmatpush1.bf16.msra.mxu0 %v4478_v22  ;;  %v4567_v22 = vld [vmem:[%s4915_s12 + $0x488] ss:$16 sps:$4 sm:$0xff]  }
  0xd2   : > { %2720 = vmatpush1.bf16.msra.mxu1 %v4481_v24  ;;  %2655 = vmatprep.subr.bf16.mxu0 %v4486_v26  ;;  %v4572_v24 = vld [vmem:[%s4915_s12 + $0x3ac] ss:$16 sps:$4 sm:$0xff]  }
  0xd3   : > { %2721 = vmatprep.subr.bf16.mxu1 %v4489_v27  ;;  %v4575_v26 = vld [vmem:[%s4915_s12 + $0x4ac] ss:$16 sps:$4 sm:$0xff]   ;;  %v4570_v27 = vld [vmem:[%s4915_s12 + $0x3a8] ss:$16 sps:$4 sm:$0xff]  }
  0xd5   : > { %2656 = vmatpush1.bf16.msra.mxu0 %v4484_v28  ;;  %v4573_v28 = vld [vmem:[%s4915_s12 + $0x4a8] ss:$16 sps:$4 sm:$0xff]  }
  0xd6   : > { %2722 = vmatpush1.bf16.msra.mxu1 %v4487_v30  ;;  %2748 = vmatprep.subr.bf16.mxu0 %v4497_v32  ;;  %v4578_v30 = vld [vmem:[%s4915_s12 + $0x3cc] ss:$16 sps:$4 sm:$0xff]   ;;  %v4576_v32 = vld [vmem:[%s4915_s12 + $0x3c8] ss:$16 sps:$4 sm:$0xff]  }
  0xd7   : > { %2723 = vmatprep.subr.bf16.mxu1 %v4494_v31  ;;  %v4581_v31 = vld [vmem:[%s4915_s12 + $0x4cc] ss:$16 sps:$4 sm:$0xff]  }
  0xd8   : > { %2658 = vmatmul.mubr.bf16.vlgmr.msra.gmra.mrb[8].mxu0 %v5165_v33 }
  0xd9   : > { %2749 = vmatpush1.bf16.msra.mxu0 %v4495_v35  ;;  %2780 = vmatprep.mubr.bf16.mxu0 %v4970_v52  ;;  %v4518_v52 = vld [vmem:[%s4915_s12 + $0x18c] ss:$16 sps:$4 sm:$0xff]  }
  0xda   : > { %2724 = vmatpush1.bf16.msra.mxu1 %v4492_v34  ;;  %2750 = vmatprep.subr.bf16.mxu0 %v4503_v39  ;;  %v4579_v34 = vld [vmem:[%s4915_s12 + $0x4c8] ss:$16 sps:$4 sm:$0xff]   ;;  %v4584_v35 = vld [vmem:[%s4915_s12 + $0x3ec] ss:$16 sps:$4 sm:$0xff]  }
  0xdb   : > { %2725 = vmatprep.subr.bf16.mxu1 %v4500_v36  ;;  %v4587_v36 = vld [vmem:[%s4915_s12 + $0x4ec] ss:$16 sps:$4 sm:$0xff]   ;;  %v4582_v39 = vld [vmem:[%s4915_s12 + $0x3e8] ss:$16 sps:$4 sm:$0xff]  }
  0xdd   : > { %2751 = vmatpush1.bf16.msra.mxu0 %v4501_v23  ;;  %v4590_v23 = vld [vmem:[%s4915_s12 + $0x50c] ss:$16 sps:$4 sm:$0xff]  }
  0xde   : > { %2726 = vmatpush1.bf16.msra.mxu1 %v4498_v40  ;;  %2752 = vmatprep.subr.bf16.mxu0 %v4509_v42  ;;  %v4585_v40 = vld [vmem:[%s4915_s12 + $0x4e8] ss:$16 sps:$4 sm:$0xff]  }
  0xdf   : > { %2727 = vmatprep.subr.bf16.mxu1 %v4506_v41  ;;  %v4593_v41 = vld [vmem:[%s4915_s12 + $0x60c] ss:$16 sps:$4 sm:$0xff]   ;;  %v4588_v42 = vld [vmem:[%s4915_s12 + $0x508] ss:$16 sps:$4 sm:$0xff]  }
  0xe1   : > { %2753 = vmatpush1.bf16.msra.mxu0 %v4507_v44  ;;  %v4596_v44 = vld [vmem:[%s4915_s12 + $0x52c] ss:$16 sps:$4 sm:$0xff]  }
  0xe2   : > { %2728 = vmatpush1.bf16.msra.mxu1 %v4504_v43  ;;  %2754 = vmatprep.subr.bf16.mxu0 %v4515_v46  ;;  %v4591_v43 = vld [vmem:[%s4915_s12 + $0x608] ss:$16 sps:$4 sm:$0xff]  }
  0xe3   : > { %2729 = vmatprep.subr.bf16.mxu1 %v4512_v45  ;;  %v4599_v45 = vld [vmem:[%s4915_s12 + $0x62c] ss:$16 sps:$4 sm:$0xff]   ;;  %v4594_v46 = vld [vmem:[%s4915_s12 + $0x528] ss:$16 sps:$4 sm:$0xff]  }
  0xe5   : > { %2755 = vmatpush1.bf16.msra.mxu0 %v4513_v49  ;;  %v4602_v49 = vld [vmem:[%s4915_s12 + $0x54c] ss:$16 sps:$4 sm:$0xff]  }
  0xe6   : > { %2730 = vmatpush1.bf16.msra.mxu1 %v4510_v47  ;;  %2756 = vmatprep.subr.bf16.mxu0 %v4521_v50  ;;  %v4597_v47 = vld [vmem:[%s4915_s12 + $0x628] ss:$16 sps:$4 sm:$0xff]  }
  0xe7   : > { %2731 = vmatprep.subr.bf16.mxu1 %v4518_v52  ;;  %v4605_v52 = vld [vmem:[%s4915_s12 + $0x64c] ss:$16 sps:$4 sm:$0xff]   ;;  %v4600_v50 = vld [vmem:[%s4915_s12 + $0x548] ss:$16 sps:$4 sm:$0xff]  }
  0xe9   : > { %2757 = vmatpush1.bf16.msra.mxu0 %v4519_v53  ;;  %v4611_v53 = vld [vmem:[%s4915_s12 + $0x66c] ss:$16 sps:$4 sm:$0xff]  }
  0xea   : > { %2732 = vmatpush1.bf16.msra.mxu1 %v4516_v51  ;;  %2758 = vmatprep.subr.bf16.mxu0 %v4527_v55  ;;  %v4608_v51 = vld [vmem:[%s4915_s12 + $0x56c] ss:$16 sps:$4 sm:$0xff]   ;;  %v4609_v55 = vld [vmem:[%s4915_s12 + $0x668] ss:$16 sps:$4 sm:$0xff]  }
  0xeb   : > { %2733 = vmatprep.subr.bf16.mxu1 %v4524_v54  ;;  %v4606_v54 = vld [vmem:[%s4915_s12 + $0x568] ss:$16 sps:$4 sm:$0xff]  }
  0xed   : > { %2759 = vmatpush1.bf16.msra.mxu0 %v4525_v57  ;;  %v4612_v57 = vld [vmem:[%s4915_s12 + $0x588] ss:$16 sps:$4 sm:$0xff]  }
  0xee   : > { %2734 = vmatpush1.bf16.msra.mxu1 %v4522_v56  ;;  %2760 = vmatprep.subr.bf16.mxu0 %v4533_v59  ;;  %v4617_v56 = vld [vmem:[%s4915_s12 + $0x68c] ss:$16 sps:$4 sm:$0xff]  }
  0xef   : > { %2735 = vmatprep.subr.bf16.mxu1 %v4530_v58  ;;  %v4615_v58 = vld [vmem:[%s4915_s12 + $0x688] ss:$16 sps:$4 sm:$0xff]   ;;  %v4620_v59 = vld [vmem:[%s4915_s12 + $0x5ac] ss:$16 sps:$4 sm:$0xff]  }
  0xf1   : > { %2761 = vmatpush1.bf16.msra.mxu0 %v4531_v61  ;;  %v4618_v61 = vld [vmem:[%s4915_s12 + $0x5a8] ss:$16 sps:$4 sm:$0xff]  }
  0xf2   : > { %2736 = vmatpush1.bf16.msra.mxu1 %v4528_v60  ;;  %2762 = vmatprep.subr.bf16.mxu0 %v4539_v63  ;;  %v4623_v60 = vld [vmem:[%s4915_s12 + $0x6ac] ss:$16 sps:$4 sm:$0xff]  }
  0xf3   : > { %2737 = vmatprep.subr.bf16.mxu1 %v4536_v62  ;;  %v4621_v62 = vld [vmem:[%s4915_s12 + $0x6a8] ss:$16 sps:$4 sm:$0xff]   ;;  %v4626_v63 = vld [vmem:[%s4915_s12 + $0x5cc] ss:$16 sps:$4 sm:$0xff]  }
  0xf5   : > { %2763 = vmatpush1.bf16.msra.mxu0 %v4537_v1 }
  0xf6   : > { %2738 = vmatpush1.bf16.msra.mxu1 %v4534_v0  ;;  %2764 = vmatprep.subr.bf16.mxu0 %v4542_v2  ;;  %v4629_v0 = vld [vmem:[%s4915_s12 + $0x6cc] ss:$16 sps:$4 sm:$0xff]  }
  0xf7   : > { %2789 = vmatprep.subr.bf16.mxu1 %v4545_v3 }
  0xf9   : > { %2740 = vmatmul.mubr.bf16.vlgmr.msra.gmra.mrb[12].mxu1 %v4992_v7  ;;  %2765 = vmatpush1.bf16.msra.mxu0 %v4540_v4  ;;  %v4555_v7 = vld [vmem:[%s4915_s12 + $0x448] ss:$16 sps:$4 sm:$0xff]  }
  0xfa   : > { %2790 = vmatpush1.bf16.msra.mxu1 %v4543_v5  ;;  %2766 = vmatprep.subr.bf16.mxu0 %v4548_v6 }
  0xfb   : > { %2791 = vmatprep.subr.bf16.mxu1 %v4551_v9  ;;  %2821 = vmatprep.mubr.bf16.mxu1 %v5032_v37  ;;  %v4566_v37 = vld [vmem:[%s4915_s12 + $0x38c] ss:$16 sps:$4 sm:$0xff]  }
  0xfd   : > { %2767 = vmatpush1.bf16.msra.mxu0 %v4546_v10 }
  0xfe   : > { %2792 = vmatpush1.bf16.msra.mxu1 %v4549_v48  ;;  %2768 = vmatprep.subr.bf16.mxu0 %v4554_v11  ;;  %v4624_v48 = vld [vmem:[%s4915_s12 + $0x5c8] ss:$16 sps:$4 sm:$0xff]  }
  0xff   : > { %2793 = vmatprep.subr.bf16.mxu1 %v4557_v12  ;;  %v4627_v11 = vld [vmem:[%s4915_s12 + $0x6c8] ss:$16 sps:$4 sm:$0xff]  }
 0x101   : > { %2769 = vmatpush1.bf16.msra.mxu0 %v4552_v13 }
 0x102   : > { %2794 = vmatpush1.bf16.msra.mxu1 %v4555_v7  ;;  %2770 = vmatprep.subr.bf16.mxu0 %v4560_v14  ;;  %v4632_v7 = vld [vmem:[%s4915_s12 + $0x5ec] ss:$16 sps:$4 sm:$0xff]  }
 0x103   : > { %2795 = vmatprep.subr.bf16.mxu1 %v4563_v15  ;;  %v4635_v14 = vld [vmem:[%s4915_s12 + $0x6ec] ss:$16 sps:$4 sm:$0xff]   ;;  %v4630_v15 = vld [vmem:[%s4915_s12 + $0x5e8] ss:$16 sps:$4 sm:$0xff]  }
 0x105   : > { %2771 = vmatpush1.bf16.msra.mxu0 %v4558_v16  ;;  %v4633_v16 = vld [vmem:[%s4915_s12 + $0x6e8] ss:$16 sps:$4 sm:$0xff]  }
 0x106   : > { %2796 = vmatpush1.bf16.msra.mxu1 %v4561_v19  ;;  %2772 = vmatprep.subr.bf16.mxu0 %v4566_v37  ;;  %v4638_v19 = vld [vmem:[%s4915_s12 + $0x70c] ss:$16 sps:$4 sm:$0xff]  }
 0x107   : > { %2797 = vmatprep.subr.bf16.mxu1 %v4569_v20  ;;  %v4641_v37 = vld [vmem:[%s4915_s12 + $0x80c] ss:$16 sps:$4 sm:$0xff]   ;;  %v4636_v20 = vld [vmem:[%s4915_s12 + $0x708] ss:$16 sps:$4 sm:$0xff]  }
 0x109   : > { %2773 = vmatpush1.bf16.msra.mxu0 %v4564_v21  ;;  %v4639_v21 = vld [vmem:[%s4915_s12 + $0x808] ss:$16 sps:$4 sm:$0xff]  }
 0x10a   : > { %2798 = vmatpush1.bf16.msra.mxu1 %v4567_v22  ;;  %2774 = vmatprep.subr.bf16.mxu0 %v4572_v24  ;;  %v4644_v22 = vld [vmem:[%s4915_s12 + $0x72c] ss:$16 sps:$4 sm:$0xff]  }
 0x10b   : > { %2799 = vmatprep.subr.bf16.mxu1 %v4575_v26  ;;  %v4647_v24 = vld [vmem:[%s4915_s12 + $0x82c] ss:$16 sps:$4 sm:$0xff]   ;;  %v4642_v26 = vld [vmem:[%s4915_s12 + $0x728] ss:$16 sps:$4 sm:$0xff]  }
 0x10d   : > { %2775 = vmatpush1.bf16.msra.mxu0 %v4570_v27  ;;  %v4645_v27 = vld [vmem:[%s4915_s12 + $0x828] ss:$16 sps:$4 sm:$0xff]  }
 0x10e   : > { %2800 = vmatpush1.bf16.msra.mxu1 %v4573_v28  ;;  %2776 = vmatprep.subr.bf16.mxu0 %v4578_v30  ;;  %v4650_v28 = vld [vmem:[%s4915_s12 + $0x74c] ss:$16 sps:$4 sm:$0xff]  }
 0x10f   : > { %2801 = vmatprep.subr.bf16.mxu1 %v4581_v31  ;;  %v4653_v30 = vld [vmem:[%s4915_s12 + $0x84c] ss:$16 sps:$4 sm:$0xff]   ;;  %v4648_v31 = vld [vmem:[%s4915_s12 + $0x748] ss:$16 sps:$4 sm:$0xff]  }
 0x111   : > { %2777 = vmatpush1.bf16.msra.mxu0 %v4576_v32  ;;  %v4656_v32 = vld [vmem:[%s4915_s12 + $0x76c] ss:$16 sps:$4 sm:$0xff]  }
 0x112   : > { %2802 = vmatpush1.bf16.msra.mxu1 %v4579_v34  ;;  %2778 = vmatprep.subr.bf16.mxu0 %v4584_v35  ;;  %v4659_v34 = vld [vmem:[%s4915_s12 + $0x86c] ss:$16 sps:$4 sm:$0xff]   ;;  %v4654_v35 = vld [vmem:[%s4915_s12 + $0x768] ss:$16 sps:$4 sm:$0xff]  }
 0x113   : > { %2803 = vmatprep.subr.bf16.mxu1 %v4587_v36  ;;  %v4657_v36 = vld [vmem:[%s4915_s12 + $0x868] ss:$16 sps:$4 sm:$0xff]  }
 0x115   : > { %2779 = vmatpush1.bf16.msra.mxu0 %v4582_v39  ;;  %v4665_v39 = vld [vmem:[%s4915_s12 + $0x88c] ss:$16 sps:$4 sm:$0xff]  }
 0x116   : > { %2804 = vmatpush1.bf16.msra.mxu1 %v4585_v40  ;;  %2830 = vmatprep.subr.bf16.mxu0 %v4593_v41  ;;  %v4660_v40 = vld [vmem:[%s4915_s12 + $0x788] ss:$16 sps:$4 sm:$0xff]   ;;  %v4668_v41 = vld [vmem:[%s4915_s12 + $0x7ac] ss:$16 sps:$4 sm:$0xff]  }
 0x117   : > { %2805 = vmatprep.subr.bf16.mxu1 %v4590_v23  ;;  %v4663_v23 = vld [vmem:[%s4915_s12 + $0x888] ss:$16 sps:$4 sm:$0xff]  }
 0x118   : > { %2781 = vmatmul.mubr.bf16.vlgmr.msra.gmra.mrb[12].mxu0 %v4994_v8  ;;  %v4603_v8 = vld [vmem:[%s4915_s12 + $0x648] ss:$16 sps:$4 sm:$0xff]  }
 0x119   : > { %2831 = vmatpush1.bf16.msra.mxu0 %v4591_v43  ;;  %2862 = vmatprep.mubr.bf16.mxu0 %v5036_v38  ;;  %v4614_v38 = vld [vmem:[%s4915_s12 + $0x58c] ss:$16 sps:$4 sm:$0xff]   ;;  %v4666_v43 = vld [vmem:[%s4915_s12 + $0x7a8] ss:$16 sps:$4 sm:$0xff]  }
 0x11a   : > { %2806 = vmatpush1.bf16.msra.mxu1 %v4588_v42  ;;  %2832 = vmatprep.subr.bf16.mxu0 %v4599_v45  ;;  %v4671_v42 = vld [vmem:[%s4915_s12 + $0x8ac] ss:$16 sps:$4 sm:$0xff]  }
 0x11b   : > { %2807 = vmatprep.subr.bf16.mxu1 %v4596_v44  ;;  %v4669_v44 = vld [vmem:[%s4915_s12 + $0x8a8] ss:$16 sps:$4 sm:$0xff]   ;;  %v4674_v45 = vld [vmem:[%s4915_s12 + $0x7cc] ss:$16 sps:$4 sm:$0xff]  }
 0x11d   : > { %2833 = vmatpush1.bf16.msra.mxu0 %v4597_v47  ;;  %v4672_v47 = vld [vmem:[%s4915_s12 + $0x7c8] ss:$16 sps:$4 sm:$0xff]  }
 0x11e   : > { %2808 = vmatpush1.bf16.msra.mxu1 %v4594_v46  ;;  %2834 = vmatprep.subr.bf16.mxu0 %v4605_v52  ;;  %v4677_v46 = vld [vmem:[%s4915_s12 + $0x8cc] ss:$16 sps:$4 sm:$0xff]  }
 0x11f   : > { %2809 = vmatprep.subr.bf16.mxu1 %v4602_v49  ;;  %v4675_v49 = vld [vmem:[%s4915_s12 + $0x8c8] ss:$16 sps:$4 sm:$0xff]   ;;  %v4680_v52 = vld [vmem:[%s4915_s12 + $0x7ec] ss:$16 sps:$4 sm:$0xff]  }
 0x121   : > { %2835 = vmatpush1.bf16.msra.mxu0 %v4603_v8  ;;  %v4678_v8 = vld [vmem:[%s4915_s12 + $0x7e8] ss:$16 sps:$4 sm:$0xff]  }
 0x122   : > { %2810 = vmatpush1.bf16.msra.mxu1 %v4600_v50  ;;  %2836 = vmatprep.subr.bf16.mxu0 %v4611_v53  ;;  %v4683_v50 = vld [vmem:[%s4915_s12 + $0x8ec] ss:$16 sps:$4 sm:$0xff]  }
 0x123   : > { %2811 = vmatprep.subr.bf16.mxu1 %v4608_v51  ;;  %v4681_v51 = vld [vmem:[%s4915_s12 + $0x8e8] ss:$16 sps:$4 sm:$0xff]   ;;  %v4686_v53 = vld [vmem:[%s4915_s12 + $0x90c] ss:$16 sps:$4 sm:$0xff]  }
 0x125   : > { %2837 = vmatpush1.bf16.msra.mxu0 %v4609_v55  ;;  %v4684_v55 = vld [vmem:[%s4915_s12 + $0x908] ss:$16 sps:$4 sm:$0xff]  }
 0x126   : > { %2812 = vmatpush1.bf16.msra.mxu1 %v4606_v54  ;;  %2838 = vmatprep.subr.bf16.mxu0 %v4617_v56  ;;  %v4689_v54 = vld [vmem:[%s4915_s12 + $0xa0c] ss:$16 sps:$4 sm:$0xff]  }
 0x127   : > { %2813 = vmatprep.subr.bf16.mxu1 %v4614_v38  ;;  %v4687_v38 = vld [vmem:[%s4915_s12 + $0xa08] ss:$16 sps:$4 sm:$0xff]   ;;  %v4692_v56 = vld [vmem:[%s4915_s12 + $0x92c] ss:$16 sps:$4 sm:$0xff]  }
 0x129   : > { %2839 = vmatpush1.bf16.msra.mxu0 %v4615_v58  ;;  %v4690_v58 = vld [vmem:[%s4915_s12 + $0x928] ss:$16 sps:$4 sm:$0xff]  }
 0x12a   : > { %2814 = vmatpush1.bf16.msra.mxu1 %v4612_v57  ;;  %2840 = vmatprep.subr.bf16.mxu0 %v4623_v60  ;;  %v4695_v57 = vld [vmem:[%s4915_s12 + $0xa2c] ss:$16 sps:$4 sm:$0xff]  }
 0x12b   : > { %2815 = vmatprep.subr.bf16.mxu1 %v4620_v59  ;;  %v2495_v1 = vpop.f32.mrb[0].mxu0  ;;  %v4693_v59 = vld [vmem:[%s4915_s12 + $0xa28] ss:$16 sps:$4 sm:$0xff]   ;;  %v4698_v60 = vld [vmem:[%s4915_s12 + $0x94c] ss:$16 sps:$4 sm:$0xff]  }
 0x12c   : > { %v2536_v2 = vpop.f32.mrb[0].mxu1  ;;  %v2497_v4 = vpop.f32.mrb[1].mxu0 }
 0x12d   : > { %v5261_v3 = vadd.f32 %v2536_v2, %v2495_v1  ;;  %v2538_v5 = vpop.f32.mrb[1].mxu1  ;;  %v2499_v9 = vpop.f32.mrb[2].mxu0  ;;  %2841 = vmatpush1.bf16.msra.mxu0 %v4621_v62  ;;  %v4696_v62 = vld [vmem:[%s4915_s12 + $0x948] ss:$16 sps:$4 sm:$0xff]  }
 0x12e   : > { %v5263_v6 = vadd.f32 %v2538_v5, %v2497_v4  ;;  %v2540_v10 = vpop.f32.mrb[2].mxu1  ;;  %2816 = vmatpush1.bf16.msra.mxu1 %v4618_v61  ;;  %v2500_v12 = vpop.f32.mrb[3].mxu0  ;;  %2842 = vmatprep.subr.bf16.mxu0 %v4629_v0  ;;  %v4701_v61 = vld [vmem:[%s4915_s12 + $0xa4c] ss:$16 sps:$4 sm:$0xff]   ;;  %v4702_v1 = vld [vmem:[%s4915_s12 + $0x968] ss:$16 sps:$4 sm:$0xff]  }
 0x12f   : > { %v2541_v13 = vpop.f32.mrb[3].mxu1  ;;  %2817 = vmatprep.subr.bf16.mxu1 %v4626_v63  ;;  %v4704_v63 = vld [vmem:[%s4915_s12 + $0x96c] ss:$16 sps:$4 sm:$0xff]   ;;  %v4705_v2 = vld [vmem:[%s4915_s12 + $0xa68] ss:$16 sps:$4 sm:$0xff]  }
 0x130   : > { %v4707_v0 = vld [vmem:[%s4915_s12 + $0xa6c] ss:$16 sps:$4 sm:$0xff]   ;;  %v4708_v5 = vld [vmem:[%s4915_s12 + $0x988] ss:$16 sps:$4 sm:$0xff]  }
 0x131   : > { %2843 = vmatpush1.bf16.msra.mxu0 %v4627_v11  ;;  %v4713_v4 = vld [vmem:[%s4915_s12 + $0xa8c] ss:$16 sps:$4 sm:$0xff]   ;;  %v4711_v9 = vld [vmem:[%s4915_s12 + $0xa88] ss:$16 sps:$4 sm:$0xff]  }
 0x132   : > { %2818 = vmatpush1.bf16.msra.mxu1 %v4624_v48  ;;  %2844 = vmatprep.subr.bf16.mxu0 %v4635_v14  ;;  %v4716_v10 = vld [vmem:[%s4915_s12 + $0x9ac] ss:$16 sps:$4 sm:$0xff]   ;;  %v4714_v11 = vld [vmem:[%s4915_s12 + $0x9a8] ss:$16 sps:$4 sm:$0xff]  }
 0x133   : > { %2819 = vmatprep.subr.bf16.mxu1 %v4632_v7  ;;  %v4719_v48 = vld [vmem:[%s4915_s12 + $0xaac] ss:$16 sps:$4 sm:$0xff]   ;;  %v4717_v12 = vld [vmem:[%s4915_s12 + $0xaa8] ss:$16 sps:$4 sm:$0xff]  }
 0x134   : > { %v4722_v13 = vld [vmem:[%s4915_s12 + $0x9cc] ss:$16 sps:$4 sm:$0xff]  }
 0x135   : > { %2845 = vmatpush1.bf16.msra.mxu0 %v4633_v16  ;;  %v4725_v7 = vld [vmem:[%s4915_s12 + $0xacc] ss:$16 sps:$4 sm:$0xff]  }
 0x136   : > { %2820 = vmatpush1.bf16.msra.mxu1 %v4630_v15  ;;  %2846 = vmatprep.subr.bf16.mxu0 %v4638_v19 }
 0x137   : > { %2871 = vmatprep.subr.bf16.mxu1 %v4641_v37 }
 0x139   : > { %2822 = vmatmul.mubr.bf16.vlgmr.msra.gmra.mrb[16].mxu1 %v5080_v17  ;;  %2847 = vmatpush1.bf16.msra.mxu0 %v4636_v20  ;;  %v4651_v17 = vld [vmem:[%s4915_s12 + $0x848] ss:$16 sps:$4 sm:$0xff]  }
 0x13a   : > { %2872 = vmatpush1.bf16.msra.mxu1 %v4639_v21  ;;  %2848 = vmatprep.subr.bf16.mxu0 %v4644_v22 }
 0x13b   : > { %2873 = vmatprep.subr.bf16.mxu1 %v4647_v24  ;;  %2903 = vmatprep.mubr.bf16.mxu1 %v5098_v25  ;;  %v4662_v25 = vld [vmem:[%s4915_s12 + $0x78c] ss:$16 sps:$4 sm:$0xff]   ;;  %v4720_v24 = vld [vmem:[%s4915_s12 + $0x9c8] ss:$16 sps:$4 sm:$0xff]  }
 0x13d   : > { %2849 = vmatpush1.bf16.msra.mxu0 %v4642_v26  ;;  %v4723_v26 = vld [vmem:[%s4915_s12 + $0xac8] ss:$16 sps:$4 sm:$0xff]  }
 0x13e   : > { %2874 = vmatpush1.bf16.msra.mxu1 %v4645_v27  ;;  %2850 = vmatprep.subr.bf16.mxu0 %v4650_v28 }
 0x13f   : > { %2875 = vmatprep.subr.bf16.mxu1 %v4653_v30 }
 0x141   : > { %2851 = vmatpush1.bf16.msra.mxu0 %v4648_v31  ;;  %v4731_v31 = vld [vmem:[%s4915_s12 + $0xaec] ss:$16 sps:$4 sm:$0xff]  }
 0x142   : > { %2876 = vmatpush1.bf16.msra.mxu1 %v4651_v17  ;;  %2852 = vmatprep.subr.bf16.mxu0 %v4656_v32  ;;  %v4729_v32 = vld [vmem:[%s4915_s12 + $0xae8] ss:$16 sps:$4 sm:$0xff]  }
 0x143   : > { %2877 = vmatprep.subr.bf16.mxu1 %v4659_v34  ;;  %v4732_v34 = vld [vmem:[%s4910_s8 + $0x28] ss:$0 sps:$4 sm:$0xff]  }
 0x145   : > { %2853 = vmatpush1.bf16.msra.mxu0 %v4654_v35 }
 0x146   : > { %2878 = vmatpush1.bf16.msra.mxu1 %v4657_v36  ;;  %2854 = vmatprep.subr.bf16.mxu0 %v4662_v25 }
 0x147   : > { %2879 = vmatprep.subr.bf16.mxu1 %v4665_v39 }
 0x149   : > { %2855 = vmatpush1.bf16.msra.mxu0 %v4660_v40 }
 0x14a   : > { %2880 = vmatpush1.bf16.msra.mxu1 %v4663_v23  ;;  %2856 = vmatprep.subr.bf16.mxu0 %v4668_v41 }
 0x14b   : > { %2881 = vmatprep.subr.bf16.mxu1 %v4671_v42  ;;  %v300_v42 = vld [vmem:[#allocation2] sm:$0xff] }
 0x14d   : > { %2857 = vmatpush1.bf16.msra.mxu0 %v4666_v43 }
 0x14e   : > { %2882 = vmatpush1.bf16.msra.mxu1 %v4669_v44  ;;  %2858 = vmatprep.subr.bf16.mxu0 %v4674_v45 }
 0x14f   : > { %2883 = vmatprep.subr.bf16.mxu1 %v4677_v46  ;;  %v301_v46 = vld [vmem:[#allocation2 + $0x8] sm:$0xff] }
 0x151   : > { %2859 = vmatpush1.bf16.msra.mxu0 %v4672_v47 }
 0x152   : > { %2884 = vmatpush1.bf16.msra.mxu1 %v4675_v49  ;;  %2860 = vmatprep.subr.bf16.mxu0 %v4680_v52 }
 0x153   : > { %2885 = vmatprep.subr.bf16.mxu1 %v4683_v50 }
 0x155   : > { %2861 = vmatpush1.bf16.msra.mxu0 %v4678_v8 }
 0x156   : > { %2886 = vmatpush1.bf16.msra.mxu1 %v4681_v51  ;;  %2912 = vmatprep.subr.bf16.mxu0 %v4689_v54 }
 0x157   : > { %2887 = vmatprep.subr.bf16.mxu1 %v4686_v53 }
 0x158   : > { %2863 = vmatmul.mubr.bf16.vlgmr.msra.gmra.mrb[16].mxu0 %v5084_v18  ;;  %v4699_v18 = vld [vmem:[%s4915_s12 + $0xa48] ss:$16 sps:$4 sm:$0xff]  }
 0x159   : > { %2913 = vmatpush1.bf16.msra.mxu0 %v4687_v38  ;;  %2944 = vmatprep.mubr.bf16.mxu0 %v4854_v29  ;;  %v4710_v29 = vld [vmem:[%s4915_s12 + $0x98c] ss:$16 sps:$4 sm:$0xff]  }
 0x15a   : > { %2888 = vmatpush1.bf16.msra.mxu1 %v4684_v55  ;;  %2914 = vmatprep.subr.bf16.mxu0 %v4695_v57 }
 0x15b   : > { %2889 = vmatprep.subr.bf16.mxu1 %v4692_v56 }
 0x15d   : > { %2915 = vmatpush1.bf16.msra.mxu0 %v4693_v59 }
 0x15e   : > { %2890 = vmatpush1.bf16.msra.mxu1 %v4690_v58  ;;  %2916 = vmatprep.subr.bf16.mxu0 %v4701_v61 }
 0x15f   : > { %2891 = vmatprep.subr.bf16.mxu1 %v4698_v60 }
 0x161   : > { %2917 = vmatpush1.bf16.msra.mxu0 %v4699_v18 }
 0x162   : > { %2892 = vmatpush1.bf16.msra.mxu1 %v4696_v62  ;;  %2918 = vmatprep.subr.bf16.mxu0 %v4707_v0 }
 0x163   : > { %2893 = vmatprep.subr.bf16.mxu1 %v4704_v63 }
 0x165   : > { %2919 = vmatpush1.bf16.msra.mxu0 %v4705_v2 }
 0x166   : > { %2894 = vmatpush1.bf16.msra.mxu1 %v4702_v1  ;;  %2920 = vmatprep.subr.bf16.mxu0 %v4713_v4 }
 0x167   : > { %2895 = vmatprep.subr.bf16.mxu1 %v4710_v29 }
 0x169   : > { %2921 = vmatpush1.bf16.msra.mxu0 %v4711_v9 }
 0x16a   : > { %2896 = vmatpush1.bf16.msra.mxu1 %v4708_v5  ;;  %2922 = vmatprep.subr.bf16.mxu0 %v4719_v48 }
 0x16b   : > { %2897 = vmatprep.subr.bf16.mxu1 %v4716_v10  ;;  %v2577_v14 = vpop.f32.mrb[4].mxu0 }
 0x16c   : > { %v2618_v15 = vpop.f32.mrb[4].mxu1  ;;  %v2578_v16 = vadd.f32 %v2577_v14, %v5261_v3  ;;  %v2579_v19 = vpop.f32.mrb[5].mxu0  ;;  %v4728_v3 = vld [vmem:[%s4915_s12 + $0x9ec] ss:$16 sps:$4 sm:$0xff]  }
 0x16d   : > { %v2620_v37 = vpop.f32.mrb[5].mxu1  ;;  %v2580_v20 = vadd.f32 %v2579_v19, %v5263_v6  ;;  %v2581_v21 = vpop.f32.mrb[6].mxu0  ;;  %2923 = vmatpush1.bf16.msra.mxu0 %v4717_v12  ;;  %v4726_v6 = vld [vmem:[%s4915_s12 + $0x9e8] ss:$16 sps:$4 sm:$0xff]  }
 0x16e   : > { %v2622_v22 = vpop.f32.mrb[6].mxu1  ;;  %2898 = vmatpush1.bf16.msra.mxu1 %v4714_v11  ;;  %v2619_v27 = vadd.f32 %v2618_v15, %v2578_v16  ;;  %v2582_v28 = vpop.f32.mrb[7].mxu0  ;;  %2924 = vmatprep.subr.bf16.mxu0 %v4725_v7  ;;  %v303_v19 = vld [vmem:[#allocation2 + $0x18] sm:$0xff] }
 0x16f   : > { %v2623_v30 = vpop.f32.mrb[7].mxu1  ;;  %2899 = vmatprep.subr.bf16.mxu1 %v4722_v13  ;;  %v2621_v17 = vadd.f32 %v2620_v37, %v2580_v20  ;;  %v302_v13 = vld [vmem:[#allocation2 + $0x10] sm:$0xff]  ;;  %v4737_v28 = vld [vmem:[%s5616_s3] ss:$8 sps:$4 sm:$0xff] (!%p4072_p6)  }
 0x170   : > { %v4738_v30 = vld [vmem:[%s5616_s3 + $0x100] ss:$8 sps:$4 sm:$0xff] (!%p4072_p6)  }
 0x171   : > { %2925 = vmatpush1.bf16.msra.mxu0 %v4723_v26  ;;  %v4733_v26 = vld [vmem:[%s5616_s3 + $0x4] ss:$8 sps:$4 sm:$0xff] (!%p4072_p6)  }
 0x172   : > { %2900 = vmatpush1.bf16.msra.mxu1 %v4720_v24  ;;  %2926 = vmatprep.subr.bf16.mxu0 %v4731_v31  ;;  %v4741_v31 = vld [vmem:[%s5616_s3 + $0x114] ss:$8 sps:$4 sm:$0xff] (!%p4072_p6)  }
 0x173   : > { %2901 = vmatprep.subr.bf16.mxu1 %v4728_v3  ;;  %v4739_v3 = vld [vmem:[%s5616_s3 + $0x14] ss:$8 sps:$4 sm:$0xff] (!%p4072_p6)  }
 0x175   : > { %2927 = vmatpush1.bf16.msra.mxu0 %v4729_v32  ;;  %v4745_v32 = vld [vmem:[%s5616_s3 + $0x24] ss:$8 sps:$4 sm:$0xff] (!%p4072_p6)  }
 0x176   : > { %2902 = vmatpush1.bf16.msra.mxu1 %v4726_v6  ;;  %v4744_v6 = vld [vmem:[%s5616_s3 + $0x110] ss:$8 sps:$4 sm:$0xff] (!%p4072_p6)  }
 0x177   : > { %3399 = vmatprep.subr.bf16.mxu1 (!%p4072_p6), %v4733_v26  ;;  %v4810_v26 = vld [vmem:[%s5616_s3 + $0x1c0] ss:$8 sps:$4 sm:$0xff] (!%p4072_p6)  }
 0x178   : > { %2945 = vmatmul.mubr.bf16.vlgmr.msra.gmra.mrb[20].mxu0 %v4732_v34  ;;  %v4747_v34 = vld [vmem:[%s5616_s3 + $0x124] ss:$8 sps:$4 sm:$0xff] (!%p4072_p6)  }
 0x179   : > { %2904 = vmatmul.mubr.bf16.vlgmr.msra.gmra.mrb[20].mxu1 %v5165_v33 }
 0x17a   : > { %3400 = vmatpush1.bf16.msra.mxu1 (!%p4072_p6), %v4737_v28 }
 0x17b   : > { %3401 = vmatprep.subr.bf16.mxu1 (!%p4072_p6), %v4739_v3  ;;  %v4813_v3 = vld [vmem:[%s5616_s3 + $0x1d4] ss:$8 sps:$4 sm:$0xff] (!%p4072_p6)  }
 0x18c   : > { %v2700_v35 = vpop.f32.mrb[8].mxu1 }
 0x18d   : > { %v2702_v36 = vpop.f32.mrb[9].mxu1 }
 0x18e   : > { %v2704_v25 = vpop.f32.mrb[10].mxu1 }
 0x18f   : > { %v2705_v39 = vpop.f32.mrb[11].mxu1  ;;  %v4751_v25 = vld [vmem:[%s5616_s3 + $0x34] ss:$8 sps:$4 sm:$0xff] (!%p4072_p6)  }
 0x190   : > { %v4753_v39 = vld [vmem:[%s5616_s3 + $0x134] ss:$8 sps:$4 sm:$0xff] (!%p4072_p6)  }
 0x1ab   : > { %v2659_v40 = vpop.f32.mrb[8].mxu0 }
 0x1ac   : > { %v2660_v23 = vadd.f32 %v2659_v40, %v2619_v27  ;;  %v2661_v41 = vpop.f32.mrb[9].mxu0  ;;  %v4735_v27 = vld [vmem:[%s5616_s3 + $0x104] ss:$8 sps:$4 sm:$0xff] (!%p4072_p6)   ;;  %v4755_v40 = vld [vmem:[%s5616_s3 + $0x30] ss:$8 sps:$4 sm:$0xff] (!%p4072_p6)  }
 0x1ad   : > { %v2662_v43 = vadd.f32 %v2661_v41, %v2621_v17  ;;  %v2663_v44 = vpop.f32.mrb[10].mxu0  ;;  %3440 = vmatprep.subr.bf16.mxu0 (!%p4072_p6), %v4735_v27  ;;  %v4743_v17 = vld [vmem:[%s5616_s3 + $0x10] ss:$8 sps:$4 sm:$0xff] (!%p4072_p6)   ;;  %v4757_v41 = vld [vmem:[%s5616_s3 + $0x44] ss:$8 sps:$4 sm:$0xff] (!%p4072_p6)  }
 0x1ae   : > { %v2701_v45 = vadd.f32 %v2700_v35, %v2660_v23  ;;  %v2664_v47 = vpop.f32.mrb[11].mxu0  ;;  %3441 = vmatpush1.bf16.msra.mxu0 (!%p4072_p6), %v4738_v30  ;;  %v4749_v35 = vld [vmem:[%s5616_s3 + $0x20] ss:$8 sps:$4 sm:$0xff] (!%p4072_p6)   ;;  %3402 = vmatpush1.bf16.msra.mxu1 (!%p4072_p6), %v4743_v17  ;;  %v4756_v23 = vld [vmem:[%s5616_s3 + $0x130] ss:$8 sps:$4 sm:$0xff] (!%p4072_p6)  }
 0x1af   : > { %v2703_v49 = vadd.f32 %v2702_v36, %v2662_v43  ;;  %3442 = vmatprep.subr.bf16.mxu0 (!%p4072_p6), %v4741_v31  ;;  %v4750_v36 = vld [vmem:[%s5616_s3 + $0x120] ss:$8 sps:$4 sm:$0xff] (!%p4072_p6)   ;;  %3403 = vmatprep.subr.bf16.mxu1 (!%p4072_p6), %v4745_v32  ;;  %v4767_v47 = vld [vmem:[%s5616_s3 + $0x50] ss:$8 sps:$4 sm:$0xff] (!%p4072_p6)   ;;  %v4811_v27 = vld [vmem:[%s5616_s3 + $0xd4] ss:$8 sps:$4 sm:$0xff] (!%p4072_p6)  }
 0x1b0   : > { %v2953_v52 = vadd.f32 %v2701_v45, %v300_v42  ;;  %v4759_v42 = vld [vmem:[%s5616_s3 + $0x144] ss:$8 sps:$4 sm:$0xff] (!%p4072_p6)   ;;  %v4761_v43 = vld [vmem:[%s5616_s3 + $0x40] ss:$8 sps:$4 sm:$0xff] (!%p4072_p6)   ;;  %v4763_v45 = vld [vmem:[%s5616_s3 + $0x54] ss:$8 sps:$4 sm:$0xff] (!%p4072_p6)  }
 0x1b1   : > { %v2954_v50 = vadd.f32 %v2703_v49, %v301_v46  ;;  %v4762_v44 = vld [vmem:[%s5616_s3 + $0x140] ss:$8 sps:$4 sm:$0xff] (!%p4072_p6)   ;;  %v4765_v46 = vld [vmem:[%s5616_s3 + $0x154] ss:$8 sps:$4 sm:$0xff] (!%p4072_p6)   ;;  %v4768_v49 = vld [vmem:[%s5616_s3 + $0x150] ss:$8 sps:$4 sm:$0xff] (!%p4072_p6)  }
 0x1b2   : > { %2957 = vst [vmem:[#allocation2] sm:$0xff] %v2953_v52  ;;  %3443 = vmatpush1.bf16.msra.mxu0 (!%p4072_p6), %v4744_v6  ;;  %3404 = vmatpush1.bf16.msra.mxu1 (!%p4072_p6), %v4749_v35  ;;  %v4769_v52 = vld [vmem:[%s5616_s3 + $0x64] ss:$8 sps:$4 sm:$0xff] (!%p4072_p6)   ;;  %v4815_v31 = vld [vmem:[%s5616_s3 + $0xd0] ss:$8 sps:$4 sm:$0xff] (!%p4072_p6)  }
 0x1b3   : > { %2958 = vst [vmem:[#allocation2 + $0x8] sm:$0xff] %v2954_v50  ;;  %3444 = vmatprep.subr.bf16.mxu0 (!%p4072_p6), %v4747_v34  ;;  %3405 = vmatprep.subr.bf16.mxu1 (!%p4072_p6), %v4751_v25  ;;  %v4771_v50 = vld [vmem:[%s5616_s3 + $0x164] ss:$8 sps:$4 sm:$0xff] (!%p4072_p6)   ;;  %v4816_v17 = vld [vmem:[%s5616_s3 + $0x1d0] ss:$8 sps:$4 sm:$0xff] (!%p4072_p6)  }
 0x1b4   : > { %v4817_v34 = vld [vmem:[%s5616_s3 + $0xe4] ss:$8 sps:$4 sm:$0xff] (!%p4072_p6)  }
 0x1b6   : > { %3445 = vmatpush1.bf16.msra.mxu0 (!%p4072_p6), %v4750_v36  ;;  %3406 = vmatpush1.bf16.msra.mxu1 (!%p4072_p6), %v4755_v40  ;;  %v4819_v40 = vld [vmem:[%s5616_s3 + $0x1e4] ss:$8 sps:$4 sm:$0xff] (!%p4072_p6)  }
 0x1b7   : > { %3446 = vmatprep.subr.bf16.mxu0 (!%p4072_p6), %v4753_v39  ;;  %3407 = vmatprep.subr.bf16.mxu1 (!%p4072_p6), %v4757_v41  ;;  %v4822_v41 = vld [vmem:[%s5616_s3 + $0x1e0] ss:$8 sps:$4 sm:$0xff] (!%p4072_p6)  }
 0x1b9   : > { %v2965_v35 = vld [vmem:[#allocation2] sm:$0xff] (!%p4072_p6) }
 0x1ba   : > { %3447 = vmatpush1.bf16.msra.mxu0 (!%p4072_p6), %v4756_v23  ;;  %3408 = vmatpush1.bf16.msra.mxu1 (!%p4072_p6), %v4761_v43  ;;  %v4821_v23 = vld [vmem:[%s5616_s3 + $0xe0] ss:$8 sps:$4 sm:$0xff] (!%p4072_p6)   ;;  %v4825_v43 = vld [vmem:[%s5616_s3 + $0x1f4] ss:$8 sps:$4 sm:$0xff] (!%p4072_p6)  }
 0x1bb   : > { %3448 = vmatprep.subr.bf16.mxu0 (!%p4072_p6), %v4759_v42  ;;  %3409 = vmatprep.subr.bf16.mxu1 (!%p4072_p6), %v4763_v45  ;;  %v4823_v42 = vld [vmem:[%s5616_s3 + $0xf4] ss:$8 sps:$4 sm:$0xff] (!%p4072_p6)  }
 0x1be   : > { %3449 = vmatpush1.bf16.msra.mxu0 (!%p4072_p6), %v4762_v44  ;;  %3410 = vmatpush1.bf16.msra.mxu1 (!%p4072_p6), %v4767_v47 }
 0x1bf   : > { %3450 = vmatprep.subr.bf16.mxu0 (!%p4072_p6), %v4765_v46  ;;  %3411 = vmatprep.subr.bf16.mxu1 (!%p4072_p6), %v4769_v52  ;;  %v4828_v52 = vld [vmem:[%s5616_s3 + $0x1f0] ss:$8 sps:$4 sm:$0xff] (!%p4072_p6)  }
 0x1c2   : > { %3451 = vmatpush1.bf16.msra.mxu0 (!%p4072_p6), %v4768_v49  ;;  %v4827_v49 = vld [vmem:[%s5616_s3 + $0xf0] ss:$8 sps:$4 sm:$0xff] (!%p4072_p6)  }
 0x1c3   : > { %3452 = vmatprep.subr.bf16.mxu0 (!%p4072_p6), %v4771_v50  ;;  %v4829_v50 = vld [vmem:[%s5618_s5 + $0x40] sm:$0xff] (!%p4072_p6)  }
 0x1cc   : > { %v2741_v33 = vpop.f32.mrb[12].mxu1 }
 0x1cd   : > { %v2743_v8 = vpop.f32.mrb[13].mxu1 }
 0x1ce   : > { %v2745_v51 = vpop.f32.mrb[14].mxu1 }
 0x1cf   : > { %v2746_v53 = vpop.f32.mrb[15].mxu1  ;;  %v4775_v51 = vld [vmem:[%s5616_s3 + $0x74] ss:$8 sps:$4 sm:$0xff] (!%p4072_p6)  }
 0x1d0   : > { %v4777_v53 = vld [vmem:[%s5616_s3 + $0x174] ss:$8 sps:$4 sm:$0xff] (!%p4072_p6)  }
 0x1eb   : > { %v2782_v54 = vpop.f32.mrb[12].mxu0 }
 0x1ec   : > { %v2783_v55 = vadd.f32 %v2782_v54, %v2741_v33  ;;  %v2784_v38 = vpop.f32.mrb[13].mxu0  ;;  %v4773_v33 = vld [vmem:[%s5616_s3 + $0x60] ss:$8 sps:$4 sm:$0xff] (!%p4072_p6)   ;;  %v4779_v54 = vld [vmem:[%s5616_s3 + $0x70] ss:$8 sps:$4 sm:$0xff] (!%p4072_p6)  }
 0x1ed   : > { %v2785_v56 = vadd.f32 %v2784_v38, %v2743_v8  ;;  %v2786_v57 = vpop.f32.mrb[14].mxu0  ;;  %v4774_v8 = vld [vmem:[%s5616_s3 + $0x160] ss:$8 sps:$4 sm:$0xff] (!%p4072_p6)   ;;  %3412 = vmatpush1.bf16.msra.mxu1 (!%p4072_p6), %v4773_v33  ;;  %v4781_v38 = vld [vmem:[%s5616_s3 + $0x84] ss:$8 sps:$4 sm:$0xff] (!%p4072_p6)  }
 0x1ee   : > { %v2787_v58 = vpop.f32.mrb[15].mxu0  ;;  %3453 = vmatpush1.bf16.msra.mxu0 (!%p4072_p6), %v4774_v8  ;;  %3413 = vmatprep.subr.bf16.mxu1 (!%p4072_p6), %v4775_v51  ;;  %v4785_v57 = vld [vmem:[%s5616_s3 + $0x80] ss:$8 sps:$4 sm:$0xff] (!%p4072_p6)  }
 0x1ef   : > { %3454 = vmatprep.subr.bf16.mxu0 (!%p4072_p6), %v4777_v53  ;;  %v4786_v58 = vld [vmem:[%s5616_s3 + $0x180] ss:$8 sps:$4 sm:$0xff] (!%p4072_p6)  }
 0x1f0   : > { %v4830_v51 = vld [vmem:[%s5618_s5] sm:$0xff] (!%p4072_p6)   ;;  %v4831_v53 = vld [vmem:[%s5618_s5 + $0x48] sm:$0xff] (!%p4072_p6)  }
 0x1f1   : > { %3414 = vmatpush1.bf16.msra.mxu1 (!%p4072_p6), %v4779_v54  ;;  %v4832_v54 = vld [vmem:[%s5618_s5 + $0x8] sm:$0xff] (!%p4072_p6)  }
 0x1f2   : > { %3415 = vmatprep.subr.bf16.mxu1 (!%p4072_p6), %v4781_v38  ;;  %v4834_v38 = vld [vmem:[%s5618_s5 + $0x10] sm:$0xff] (!%p4072_p6)  }
 0x1f5   : > { %3416 = vmatpush1.bf16.msra.mxu1 (!%p4072_p6), %v4785_v57  ;;  %v4836_v57 = vld [vmem:[%s5618_s5 + $0x18] sm:$0xff] (!%p4072_p6)  }
 0x20c   : > { %v2823_v59 = vpop.f32.mrb[16].mxu1 }
 0x20d   : > { %v2824_v60 = vadd.f32 %v2823_v59, %v2783_v55  ;;  %v2825_v61 = vpop.f32.mrb[17].mxu1  ;;  %v4780_v55 = vld [vmem:[%s5616_s3 + $0x170] ss:$8 sps:$4 sm:$0xff] (!%p4072_p6)   ;;  %v4787_v59 = vld [vmem:[%s5616_s3 + $0x94] ss:$8 sps:$4 sm:$0xff] (!%p4072_p6)  }
 0x20e   : > { %v2826_v62 = vadd.f32 %v2825_v61, %v2785_v56  ;;  %v2827_v18 = vpop.f32.mrb[18].mxu1  ;;  %v4783_v56 = vld [vmem:[%s5616_s3 + $0x184] ss:$8 sps:$4 sm:$0xff] (!%p4072_p6)   ;;  %3455 = vmatpush1.bf16.msra.mxu0 (!%p4072_p6), %v4780_v55  ;;  %v4789_v61 = vld [vmem:[%s5616_s3 + $0x194] ss:$8 sps:$4 sm:$0xff] (!%p4072_p6)   ;;  %3417 = vmatprep.subr.bf16.mxu1 (!%p4072_p6), %v4787_v59 }
 0x20f   : > { %v2828_v63 = vpop.f32.mrb[19].mxu1  ;;  %3456 = vmatprep.subr.bf16.mxu0 (!%p4072_p6), %v4783_v56  ;;  %v4792_v18 = vld [vmem:[%s5616_s3 + $0x190] ss:$8 sps:$4 sm:$0xff] (!%p4072_p6)   ;;  %v4838_v59 = vld [vmem:[%s5618_s5 + $0x20] sm:$0xff] (!%p4072_p6)  }
 0x210   : > { %v4793_v63 = vld [vmem:[%s5616_s3 + $0xa4] ss:$8 sps:$4 sm:$0xff] (!%p4072_p6)   ;;  %v4833_v55 = vld [vmem:[%s5618_s5 + $0x50] sm:$0xff] (!%p4072_p6)   ;;  %v4835_v56 = vld [vmem:[%s5618_s5 + $0x58] sm:$0xff] (!%p4072_p6)  }
 0x212   : > { %3457 = vmatpush1.bf16.msra.mxu0 (!%p4072_p6), %v4786_v58  ;;  %v4837_v58 = vld [vmem:[%s5618_s5 + $0x60] sm:$0xff] (!%p4072_p6)  }
 0x213   : > { %3458 = vmatprep.subr.bf16.mxu0 (!%p4072_p6), %v4789_v61  ;;  %v4840_v61 = vld [vmem:[%s5618_s5 + $0x28] sm:$0xff] (!%p4072_p6)  }
 0x216   : > { %3459 = vmatpush1.bf16.msra.mxu0 (!%p4072_p6), %v4792_v18  ;;  %v4842_v18 = vld [vmem:[%s5618_s5 + $0x30] sm:$0xff] (!%p4072_p6)  }
 0x22b   : > { %v2864_v0 = vpop.f32.mrb[16].mxu0 }
 0x22c   : > { %v2865_v1 = vadd.f32 %v2864_v0, %v2824_v60  ;;  %v2866_v2 = vpop.f32.mrb[17].mxu0  ;;  %v2971_v60 = vlaneseq (!%p4072_p6) }
 0x22d   : > { %v2867_v29 = vadd.f32 %v2866_v2, %v2826_v62  ;;  %v2868_v4 = vpop.f32.mrb[18].mxu0  ;;  %v4791_v62 = vld [vmem:[%s5616_s3 + $0x90] ss:$8 sps:$4 sm:$0xff] (!%p4072_p6)   ;;  %v4797_v2 = vld [vmem:[%s5616_s3 + $0xa0] ss:$8 sps:$4 sm:$0xff] (!%p4072_p6)  }
 0x22e   : > { %v2869_v5 = vpop.f32.mrb[19].mxu0  ;;  %v5467_v0 = vshrl.u32 (!%p4072_p6), %v2971_v60, 7  ;;  %3418 = vmatpush1.bf16.msra.mxu1 (!%p4072_p6), %v4791_v62  ;;  %v4799_v4 = vld [vmem:[%s5616_s3 + $0xb4] ss:$8 sps:$4 sm:$0xff] (!%p4072_p6)   ;;  %v4839_v60 = vld [vmem:[%s5618_s5 + $0x68] sm:$0xff] (!%p4072_p6)  }
 0x22f   : > { %3419 = vmatprep.subr.bf16.mxu1 (!%p4072_p6), %v4793_v63  ;;  %v4841_v62 = vld [vmem:[%s5618_s5 + $0x70] sm:$0xff] (!%p4072_p6)   ;;  %v4843_v63 = vld [vmem:[%s5618_s5 + $0x78] sm:$0xff] (!%p4072_p6)  }
 0x230   : > { %v2977_v5 = vsub.s32 (!%p4072_p6), 1, %v5467_v0 }
 0x232   : > { %3420 = vmatpush1.bf16.msra.mxu1 (!%p4072_p6), %v4797_v2  ;;  %v3067_v2 = vld [vmem:[%s5617_s4] sm:$0x3] (!%p4072_p6) }
 0x233   : > { %3421 = vmatprep.subr.bf16.mxu1 (!%p4072_p6), %v4799_v4  ;;  %v3076_v4 = vrot.slane (!%p4072_p6), %v3067_v2, %v2977_v5 }
 0x24b   : > { %v2946_v10 = vpop.f32.mrb[20].mxu0 }
 0x24c   : > { %v2905_v9 = vpop.f32.mrb[20].mxu1  ;;  %v2948_v12 = vpop.f32.mrb[21].mxu0 }
 0x24d   : > { %v2906_v48 = vadd.f32 %v2905_v9, %v2865_v1  ;;  %v2907_v11 = vpop.f32.mrb[21].mxu1  ;;  %v2950_v15 = vpop.f32.mrb[22].mxu0  ;;  %v4795_v1 = vld [vmem:[%s5616_s3 + $0x1a4] ss:$8 sps:$4 sm:$0xff] (!%p4072_p6)   ;;  %v2985_v9 = vsub.s32 (!%p4072_p6), 3, %v5467_v0 }
 0x24e   : > { %v2908_v7 = vadd.f32 %v2907_v11, %v2867_v29  ;;  %v2909_v14 = vpop.f32.mrb[22].mxu1  ;;  %v2951_v20 = vpop.f32.mrb[23].mxu0  ;;  %2964 = sbr.rel (%p4072_p6) target bundleno = 1052 (0x41c), region = 56  ;;  %v4798_v29 = vld [vmem:[%s5616_s3 + $0x1a0] ss:$8 sps:$4 sm:$0xff] (!%p4072_p6)   ;;  %3460 = vmatprep.subr.bf16.mxu0 (!%p4072_p6), %v4795_v1  ;;  %v2981_v15 = vsub.s32 (!%p4072_p6), 2, %v5467_v0 }
 0x24f   : > { %v2947_v16 = vadd.f32 %v2946_v10, %v2906_v48  ;;  %v2910_v37 = vpop.f32.mrb[23].mxu1  ;;  %v4801_v10 = vld [vmem:[%s5616_s3 + $0x1b4] ss:$8 sps:$4 sm:$0xff] (!%p4072_p6)   ;;  %v4803_v48 = vld [vmem:[%s5616_s3 + $0xb0] ss:$8 sps:$4 sm:$0xff] (!%p4072_p6)   ;;  %v2973_v14 = vsub.s32 (!%p4072_p6), 0, %v5467_v0  ;;  %3461 = vmatpush1.bf16.msra.mxu0 (!%p4072_p6), %v4798_v29 }
 0x250   : > { %v2949_v21 = vadd.f32 %v2948_v12, %v2908_v7  ;;  %v4804_v11 = vld [vmem:[%s5616_s3 + $0x1b0] ss:$8 sps:$4 sm:$0xff] (!%p4072_p6)   ;;  %v2966_v12 = vld [vmem:[#allocation2 + $0x8] sm:$0xff] (!%p4072_p6)  ;;  %3462 = vmatprep.subr.bf16.mxu0 (!%p4072_p6), %v4801_v10  ;;  %3422 = vmatpush1.bf16.msra.mxu1 (!%p4072_p6), %v4803_v48 }
 0x251   : > { %v2955_v22 = vadd.f32 %v2947_v16, %v302_v13  ;;  %v2969_v13 = vld [vmem:[%s5615_s2] sm:$0xf] (!%p4072_p6)  ;;  %v4805_v16 = vld [vmem:[%s5616_s3 + $0xc4] ss:$8 sps:$4 sm:$0xff] (!%p4072_p6)   ;;  %v4844_v1 = vld [vmem:[%s5618_s5 + $0x38] sm:$0xff] (!%p4072_p6)   ;;  %v3072_v29 = vrot.slane (!%p4072_p6), %v3067_v2, %v2973_v14 }
 0x252   : > { %v2956_v24 = vadd.f32 %v2949_v21, %v303_v19  ;;  %v2978_v19 = vrot.slane (!%p4072_p6), %v2969_v13, %v2977_v5  ;;  %v2986_v37 = vrot.slane (!%p4072_p6), %v2969_v13, %v2985_v9  ;;  %v4807_v20 = vld [vmem:[%s5616_s3 + $0x1c4] ss:$8 sps:$4 sm:$0xff] (!%p4072_p6)   ;;  %v4809_v21 = vld [vmem:[%s5616_s3 + $0xc0] ss:$8 sps:$4 sm:$0xff] (!%p4072_p6)   ;;  %3423 = vmatprep.subr.bf16.mxu1 (!%p4072_p6), %v4805_v16  ;;  %v2974_v36 = vrot.slane (!%p4072_p6), %v2969_v13, %v2973_v14 }
 0x253   : > { %2959 = vst [vmem:[#allocation2 + $0x10] sm:$0xff] %v2955_v22  ;;  %3463 = vmatpush1.bf16.msra.mxu0 (!%p4072_p6), %v4804_v11  ;;  %v2982_v25 = vrot.slane (!%p4072_p6), %v2969_v13, %v2981_v15  ;;  %v4137_v5 = vld [vmem:[%s5619_s6] ss:$0 sm:$0xff] (!%p4072_p6) }
 0x254   : > { %2960 = vst [vmem:[#allocation2 + $0x18] sm:$0xff] %v2956_v24  ;;  %v2992_v22 = vadd.f32 (!%p4072_p6), %v2978_v19, %v2966_v12  ;;  %3464 = vmatprep.subr.bf16.mxu0 (!%p4072_p6), %v4807_v20  ;;  %3424 = vmatpush1.bf16.msra.mxu1 (!%p4072_p6), %v4809_v21  ;;  %v2991_v44 = vadd.f32 (!%p4072_p6), %v2974_v36, %v2965_v35 }
 0x255   : > { %3425 = vmatprep.subr.bf16.mxu1 %v4811_v27 }
 0x256   : > { %v2996_v28 = vmax.f32 %v2992_v22, 0.0  ;;  %v2995_v46 = vmax.f32 %v2991_v44, 0.0 }
 0x257   : > { %3465 = vmatpush1.bf16.msra.mxu0 %v4810_v26 }
 0x258   : > { %v3000_v6 = vpack.c.bf16 %v2996_v28, %v2996_v28  ;;  %3466 = vmatprep.subr.bf16.mxu0 %v4813_v3  ;;  %3426 = vmatpush1.bf16.msra.mxu1 %v4815_v31  ;;  %v2999_v33 = vpack.c.bf16 %v2995_v46, %v2995_v46 }
 0x259   : > { %3427 = vmatprep.subr.bf16.mxu1 %v4817_v34 }
 0x25a   : > { %v2967_v39 = vld [vmem:[#allocation2 + $0x10] sm:$0xff]  ;;  %3431 = vmatprep.mubr.bf16.mxu1 %v3000_v6 }
 0x25b   : > { %v2968_v7 = vld [vmem:[#allocation2 + $0x18] sm:$0xff]  ;;  %v2993_v45 = vadd.f32 %v2982_v25, %v2967_v39  ;;  %3467 = vmatpush1.bf16.msra.mxu0 %v4816_v17 }
 0x25c   : > { %v2994_v24 = vadd.f32 %v2986_v37, %v2968_v7  ;;  %3468 = vmatprep.subr.bf16.mxu0 %v4819_v40  ;;  %3428 = vmatpush1.bf16.msra.mxu1 %v4821_v23 }
 0x25d   : > { %v2997_v47 = vmax.f32 %v2993_v45, 0.0  ;;  %3429 = vmatprep.subr.bf16.mxu1 %v4823_v42 }
 0x25e   : > { %v2998_v30 = vmax.f32 %v2994_v24, 0.0 }
 0x25f   : > { %3469 = vmatpush1.bf16.msra.mxu0 %v4822_v41  ;;  %v3001_v8 = vpack.c.bf16 %v2997_v47, %v2997_v47 }
 0x260   : > { %v3002_v32 = vpack.c.bf16 %v2998_v30, %v2998_v30  ;;  %3470 = vmatprep.subr.bf16.mxu0 %v4825_v43  ;;  %3430 = vmatpush1.bf16.msra.mxu1 %v4827_v49 }
 0x261   : > { %4157 = vmatprep.subr.bf16.mxu1 %v4829_v50 }
 0x262   : > { %3472 = vmatprep.mubr.bf16.mxu0 %v3002_v32 }
 0x263   : > { %3471 = vmatpush1.bf16.msra.mxu0 %v4828_v52  ;;  %3432 = vmatmul.mubr.bf16.vlgmr.msra.gmra.mrb[0].mxu1 %v2999_v33 }
 0x264   : > { %4158 = vmatpush3.bf16.msra.mxu1 %v4830_v51 }
 0x265   : > { %4159 = vmatprep.subr.bf16.mxu1 %v4831_v53 }
 0x266   : > { %3473 = vmatmul.mubr.bf16.vlgmr.msra.gmra.mrb[0].mxu0 %v3001_v8 }
 0x268   : > { %4160 = vmatpush3.bf16.msra.mxu1 %v4832_v54 }
 0x269   : > { %4161 = vmatprep.subr.bf16.mxu1 %v4833_v55 }
 0x26c   : > { %4162 = vmatpush3.bf16.msra.mxu1 %v4834_v38 }
 0x26d   : > { %4163 = vmatprep.subr.bf16.mxu1 %v4835_v56 }
 0x270   : > { %4164 = vmatpush3.bf16.msra.mxu1 %v4836_v57 }
 0x271   : > { %4165 = vmatprep.subr.bf16.mxu1 %v4837_v58 }
 0x274   : > { %4166 = vmatpush3.bf16.msra.mxu1 %v4838_v59 }
 0x275   : > { %4167 = vmatprep.subr.bf16.mxu1 %v4839_v60 }
 0x278   : > { %4168 = vmatpush3.bf16.msra.mxu1 %v4840_v61 }
 0x279   : > { %4169 = vmatprep.subr.bf16.mxu1 %v4841_v62 }
 0x27c   : > { %4170 = vmatpush3.bf16.msra.mxu1 %v4842_v18 }
 0x27d   : > { %4171 = vmatprep.subr.bf16.mxu1 %v4843_v63 }
 0x280   : > { %4172 = vmatpush3.bf16.msra.mxu1 %v4844_v1 }
 0x336   : > { %v3433_v9 = vpop.f32.mrb[0].mxu1 }
 0x337   : > { %v3434_v48 = vadd.f32 %v3433_v9, %v3072_v29  ;;  %v3435_v11 = vpop.f32.mrb[1].mxu1 }
 0x338   : > { %v3436_v13 = vadd.f32 %v3435_v11, %v3076_v4  ;;  %v3437_v7 = vpop.f32.mrb[2].mxu1 }
 0x339   : > { %v3474_v10 = vpop.f32.mrb[0].mxu0  ;;  %v3438_v19 = vpop.f32.mrb[3].mxu1 }
 0x33a   : > { %v3476_v12 = vpop.f32.mrb[1].mxu0  ;;  %v3475_v16 = vadd.f32 %v3474_v10, %v3434_v48 }
 0x33b   : > { %v3478_v15 = vpop.f32.mrb[2].mxu0  ;;  %v3477_v20 = vadd.f32 %v3476_v12, %v3436_v13 }
 0x33c   : > { %v3479_v37 = vpop.f32.mrb[3].mxu0  ;;  %v3481_v21 = vmax.f32 %v3475_v16, 0.0 }
 0x33d   : > { %v3482_v22 = vmax.f32 %v3477_v20, 0.0 }
 0x33e   : > { %v3483_v26 = vpack.c.bf16 %v3481_v21, %v3481_v21 }
 0x33f   : > { %v3484_v24 = vpack.c.bf16 %v3482_v22, %v3482_v22 }
 0x341   : > { %3652 = vmatprep.mubr.bf16.mxu1 %v3484_v24 }
 0x342   : > { %3653 = vmatmul.mubr.bf16.vlgmr.msra.gmra.mrb[4].mxu1 %v3483_v26 }
 0x415   : > { %v4173_v0 = vpop.f32.mrb[4].mxu1 }
 0x416   : > { %v4174_v14 = vpop.f32.mrb[5].mxu1 }
 0x417   : > { %v4175_v27 = vadd.f32 %v4174_v14, %v4173_v0  ;;  %v4176_v28 = vpop.f32.mrb[6].mxu1 }
 0x418   : > { %v4177_v30 = vpop.f32.mrb[7].mxu1 }
 0x419   : > { %v3655_v3 = vadd.f32 %v4175_v27, %v4137_v5 }
 0x41b   : > { %3660 = vst [vmem:[%s5620_s7] sm:$0xff] %v3655_v3 }
 0x41c PF: > { %s17_s24 = sadd.s32 1, %s4851_s24  }
 0x41d   : > { %p14_p7 = scmp.ge.s32.totalorder %s17_s24, 13  }
 0x41f   :  { %16 = sbr.rel (!%p14_p7) target bundleno = 1 (0x1), region = 85 }

</bundles_post_ra>
